<compile_context>
chip_gen: v7x
topology: tpu7x:2x2x1
jax: 0.10.0
libtpu: 0.0.40
codegen_flags: <defaults>
</compile_context>

<pallas_src>
import functools
import math

import numpy as np
import jax
import jax.numpy as jnp
from jax import lax
from jax.experimental import pallas as pl
from jax.experimental.pallas import tpu as pltpu

LOG19 = math.log(19.0)      # hard-coded in the torch module (even if C != 19)
INV_LOG19 = 1.0 / LOG19
EPS = 1e-6


def _round_up(x, m):
    return ((x + m - 1) // m) * m


# ---------------------------------------------------------------------------
# Separable sliding-window (box) sums, O(log n) passes each.
# ---------------------------------------------------------------------------

def _window_sum_rows(x, n):
    """Leading sliding-window sum of length n along axis -2.

    x: (..., L, Wp) -> (..., L - n + 1, Wp), out[i] = sum_{b<n} x[i+b].
    Static slices + adds only (always lowers); doubling keeps it O(log n).
    """
    if n == 1:
        return x
    L = x.shape[-2]
    out_len = L - n + 1
    pows = {1: x}
    S, w = x, 1
    while w * 2 <= n:
        lw = S.shape[-2]
        S = S[..., : lw - w, :] + S[..., w:, :]
        w *= 2
        pows[w] = S
    result = None
    offset, rem = 0, n
    for w in sorted(pows, reverse=True):
        if rem >= w:
            piece = pows[w][..., offset: offset + out_len, :]
            result = piece if result is None else result + piece
            offset += w
            rem -= w
    return result


def _window_sum_lanes(x, n, r):
    """Centered sliding-window sum of length n = 2r+1 along the last (lane)
    axis via circular pltpu.roll (XLU) + adds (VPU), O(log n) passes.

    Caller guarantees the last >= r lanes of x are zero, so the circular
    wrap-around reproduces zero-padding semantics exactly.  The box window is
    symmetric, so the result is independent of the roll sign convention.
    """
    if n == 1:
        return x
    shape = x.shape
    L = shape[-1]
    x2 = x.reshape(-1, L)                       # merge leading dims: layout no-op
    pows = {1: x2}
    S, w = x2, 1
    while w * 2 <= n:
        sh = w % L
        S = S + (pltpu.roll(S, shift=sh, axis=1) if sh else S)
        w *= 2
        pows[w] = S
    result = None
    offset, rem = 0, n
    for w in sorted(pows, reverse=True):
        if rem >= w:
            sh = (offset - r) % L
            piece = pows[w]
            if sh:
                piece = pltpu.roll(piece, shift=sh, axis=1)
            result = piece if result is None else result + piece
            offset += w
            rem -= w
    return result.reshape(shape)


# ---------------------------------------------------------------------------
# Kernel
# ---------------------------------------------------------------------------

def _frs_kernel(logit_hbm, w_ref, score_ref, impurity_ref, uncert_ref,
                buf_ref, sem_ref, *, C, TH, TH2R, Wp, r, H, W, NT_PER):
    split = pl.program_id(0)                    # "parallel" core split
    j = pl.program_id(1)                        # row tile within the split
    tile = split * NT_PER + j
    slot = j % 2

    # ------------- manual double-buffered halo DMA (HBM -> VMEM) -------------
    def _start_fetch(tile_idx, slot_idx):
        row0 = pl.multiple_of(tile_idx * TH, TH)
        pltpu.make_async_copy(
            logit_hbm.at[:, pl.ds(row0, TH2R), :],
            buf_ref.at[slot_idx],
            sem_ref.at[slot_idx],
        ).start()

    @pl.when(j == 0)
    def _prime():
        _start_fetch(tile, slot)

    pltpu.make_async_copy(                      # wait for this tile's block
        logit_hbm.at[:, pl.ds(0, TH2R), :],
        buf_ref.at[slot],
        sem_ref.at[slot],
    ).wait()

    @pl.when(j + 1 < NT_PER)
    def _prefetch_next():
        _start_fetch(tile + 1, 1 - slot)

    # ------------- per-pixel stage on the halo-extended block ---------------
    x = buf_ref[slot]                           # (C, TH2R, Wp) f32
    lmax = jnp.max(x, axis=0, keepdims=True)
    shifted = x - lmax
    e = jnp.exp(shifted)
    se = jnp.sum(e, axis=0)                     # (TH2R, Wp)
    inv_se = pl.reciprocal(se, approx=True)
    # analytic softmax entropy: H = log(sum e) - sum(e * shifted) / sum(e)
    pixel_entropy = jnp.log(se) - jnp.sum(e * shifted, axis=0) * inv_se

    # argmax over classes (first max, like torch.argmax) as a one-hot
    iota_c = lax.broadcasted_iota(jnp.int32, (C, TH2R, Wp), 0)
    idx = jnp.min(jnp.where(shifted >= 0.0, iota_c, C), axis=0, keepdims=True)

    # in-image mask of the halo-extended block (zero-padding semantics)
    row_img = tile * TH - r + lax.broadcasted_iota(jnp.int32, (TH2R, Wp), 0)
    col_img = lax.broadcasted_iota(jnp.int32, (TH2R, Wp), 1)
    in_img = (row_img >= 0) & (row_img < H) & (col_img < W)

    one_hot = ((iota_c == idx) & in_img[None, :, :]).astype(jnp.float32)

    # per-class entropy weighting fused in-kernel (torch does a host loop)
    wt = jnp.sum(one_hot * w_ref[...], axis=0)              # (TH2R, Wp)
    wpe = pixel_entropy * wt * INV_LOG19                    # zero outside image

    # ------------- separable size x size box sums ---------------------------
    n = 2 * r + 1
    summary = _window_sum_lanes(_window_sum_rows(one_hot, n), n, r)  # (C,TH,Wp)
    ent_box = _window_sum_lanes(_window_sum_rows(wpe, n), n, r)      # (TH,Wp)

    # ------------- normalize / finalize --------------------------------------
    # closed-form window pixel count (data-independent under zero padding)
    row_out = tile * TH + lax.broadcasted_iota(jnp.int32, (TH, Wp), 0)
    col_out = lax.broadcasted_iota(jnp.int32, (TH, Wp), 1)
    rh = jnp.minimum(row_out + r, H - 1) - jnp.maximum(row_out - r, 0) + 1
    rw = jnp.minimum(col_out + r, W - 1) - jnp.maximum(col_out - r, 0) + 1
    count = jnp.maximum(rh * rw, 1).astype(jnp.float32)
    inv_count = pl.reciprocal(count, approx=True)

    dist = summary * inv_count[None, :, :]
    region_impurity = jnp.sum(-dist * jnp.log(dist + EPS), axis=0) * INV_LOG19
    prediction_uncertainty = ent_box * inv_count

    impurity_ref[...] = region_impurity
    uncert_ref[...] = prediction_uncertainty
    score_ref[...] = region_impurity * prediction_uncertainty


# ---------------------------------------------------------------------------
# Wrapper
# ---------------------------------------------------------------------------

def _vmem_capacity_bytes():
    try:
        cap = int(pltpu.get_tpu_info().vmem_capacity_bytes)
        if cap >= 32 * 1024 * 1024:
            return cap
    except Exception:
        pass
    return 64 * 1024 * 1024        # conservative fallback (v7x per-core VMEM)


def _pick_tile_h(C, H, Wp, r, budget_bytes):
    """Largest row tile TH (multiple of 8, <= padded H) whose per-step VMEM
    footprint (double-buffered halo input block + live f32 temporaries +
    double-buffered output blocks) fits the per-generation budget."""
    th_cap = _round_up(max(H, 8), 8)
    cands = sorted({c for c in (256, 224, 192, 160, 128, 96, 64, 48, 32, 24, 16, 8)
                    if c <= th_cap} | {th_cap}, reverse=True)
    for th in cands:
        th2r = th + 2 * r
        est = (2 * C * th2r * Wp * 4      # double-buffered halo input block
               + 5 * C * th2r * Wp * 4    # live (C, TH2R, Wp) f32 temporaries
               + 3 * 2 * th * Wp * 4)     # three double-buffered output blocks
        if est <= budget_bytes:
            return th
    return 8


def make_class_weights(mious):
    """Mirrors the torch __init__ exactly."""
    mious = np.asarray(mious, dtype=np.float64)
    ratios = 1.0 / (mious / (np.sum(mious) + 1e-06) + 1e-06)
    r_max, r_min = np.max(ratios), np.min(ratios)
    return ((ratios - r_min + 1e-06) / (r_max - r_min + 1e-06)).astype(np.float32)


def floating_region_score(logit, class_weights, size, *, tile_h=None):
    """logit: (1, C, H, W) f32.
    Returns (score, region_impurity, prediction_uncertainty), each (H, W) f32."""
    assert size % 2 == 1 and size >= 1, 'error size'
    logit = jnp.squeeze(logit, axis=0).astype(jnp.float32)       # (C, H, W)
    C, H, W = logit.shape
    r = size // 2

    # lane-dense padded width; >= W + r so circular lane rolls only wrap zeros
    Wp = _round_up(W + r, 128)

    cap = _vmem_capacity_bytes()
    vmem_limit = int(min(cap * 0.75, cap - 8 * 1024 * 1024))
    TH = tile_h if tile_h is not None else _pick_tile_h(
        C, H, Wp, r, int(vmem_limit * 0.85))
    assert TH % 8 == 0 and TH >= 8, "row tile must be a multiple of 8"
    TH2R = TH + 2 * r                                            # halo block rows

    nt_needed = -(-H // TH)
    n_split = 2 if nt_needed >= 2 else 1        # feed both v7x TensorCores
    nt_per = -(-nt_needed // n_split)
    ntot = n_split * nt_per
    Hp = ntot * TH

    # zero padding: r halo rows on top, enough rows below so every halo block
    # [tile*TH, tile*TH + TH2R) is in-bounds; zero lanes beyond W.
    logit_p = jnp.pad(logit, ((0, 0), (r, Hp + r - H), (0, Wp - W)))
    w = jnp.asarray(class_weights, dtype=jnp.float32).reshape(C, 1, 1)

    kernel = functools.partial(_frs_kernel, C=C, TH=TH, TH2R=TH2R, Wp=Wp, r=r,
                               H=H, W=W, NT_PER=nt_per)

    out_shape = tuple(jax.ShapeDtypeStruct((Hp, Wp), jnp.float32)
                      for _ in range(3))
    out_spec = pl.BlockSpec((TH, Wp), lambda s, j: (s * nt_per + j, 0))

    grid_spec = pltpu.PrefetchScalarGridSpec(
        num_scalar_prefetch=0,
        grid=(n_split, nt_per),
        in_specs=[
            pl.BlockSpec(memory_space=pl.ANY),                # logits stay in HBM
            pl.BlockSpec((C, 1, 1), lambda s, j: (0, 0, 0)),  # class weights
        ],
        out_specs=(out_spec, out_spec, out_spec),
        scratch_shapes=[
            pltpu.VMEM((2, C, TH2R, Wp), jnp.float32),        # double-buffered halo block
            pltpu.SemaphoreType.DMA((2,)),
        ],
    )

    score, impurity, uncertainty = pl.pallas_call(
        kernel,
        out_shape=out_shape,
        grid_spec=grid_spec,
        compiler_params=pltpu.CompilerParams(
            dimension_semantics=("parallel", "arbitrary"),
            vmem_limit_bytes=vmem_limit),
    )(logit_p, w)

    return score[:H, :W], impurity[:H, :W], uncertainty[:H, :W]


# ---------------------------------------------------------------------------
# Pure-JAX reference (validation only)
# ---------------------------------------------------------------------------

def _reference(logit, class_weights, size):
    x = jnp.squeeze(jnp.asarray(logit, jnp.float32), axis=0)    # (C, H, W)
    C, H, W = x.shape
    r = size // 2
    p = jax.nn.softmax(x, axis=0)
    predict = jnp.argmax(x, axis=0)
    one_hot = jax.nn.one_hot(predict, C, axis=0, dtype=jnp.float32)
    ih = jnp.arange(H)
    bh = (jnp.abs(ih[:, None] - ih[None, :]) <= r).astype(jnp.float32)
    iw = jnp.arange(W)
    bw = (jnp.abs(iw[:, None] - iw[None, :]) <= r).astype(jnp.float32)
    box = lambda v: jnp.einsum('ij,...jk,kl->...il', bh, v, bw,
                               precision=jax.lax.Precision.HIGHEST)
    summary = box(one_hot)
    count = jnp.sum(summary, axis=0)
    dist = summary / count
    impurity = jnp.sum(-dist * jnp.log(dist + 1e-6), axis=0) / LOG19
    pixel_entropy = jnp.sum(-p * jnp.log(p + 1e-6), axis=0)
    wts = jnp.asarray(class_weights, jnp.float32)[predict]
    wpe = pixel_entropy * wts / LOG19
    uncertainty = box(wpe) / count
    return impurity * uncertainty, impurity, uncertainty


if __name__ == "__main__":
    C = 19
    mious = np.linspace(0.2, 0.8, C)
    class_weights = make_class_weights(mious)
    key0, key1 = jax.random.split(jax.random.PRNGKey(0))

    # Tolerance has headroom for the EUP approx reciprocals and the analytic
    # (logsumexp) pixel-entropy identity vs torch's log(p + 1e-6).
    TOL = dict(rtol=1e-2, atol=1e-2)

    # Case 1: small square demo (single row tile, single split).
    H, W, SIZE = 16, 16, 9
    logit = jax.random.normal(key0, (1, C, H, W), dtype=jnp.float32)
    outs = floating_region_score(logit, class_weights, SIZE)
    jax.block_until_ready(outs)
    refs = _reference(logit, class_weights, SIZE)
    for o, rf in zip(outs, refs):
        assert o.shape == (H, W)
        np.testing.assert_allclose(np.asarray(o), np.asarray(rf), **TOL)

    # Case 2: non-multiple-of-128 width + multiple row tiles; exercises the
    # overlap-halo DMA pipeline, the 2-way "parallel" split, a fully padded
    # trailing tile, and the padding masks.
    H2, W2, SIZE2 = 20, 20, 5
    logit2 = jax.random.normal(key1, (1, C, H2, W2), dtype=jnp.float32)
    outs2 = floating_region_score(logit2, class_weights, SIZE2, tile_h=8)
    jax.block_until_ready(outs2)
    refs2 = _reference(logit2, class_weights, SIZE2)
    for o, rf in zip(outs2, refs2):
        assert o.shape == (H2, W2)
        np.testing.assert_allclose(np.asarray(o), np.asarray(rf), **TOL)

    print("KERNEL_OK")
</pallas_src>

<mosaic_0001>
module attributes {stable_mosaic.version = 11 : i64} {
  func.func @_frs_kernel(%arg0: i32, %arg1: i32, %arg2: memref<19x24x128xf32, #tpu.memory_space<any>>, %arg3: memref<19x1x1xf32, #tpu.memory_space<vmem>>, %arg4: memref<16x128xf32, #tpu.memory_space<vmem>>, %arg5: memref<16x128xf32, #tpu.memory_space<vmem>>, %arg6: memref<16x128xf32, #tpu.memory_space<vmem>>, %arg7: memref<2x19x24x128xf32, #tpu.memory_space<vmem>>, %arg8: memref<2x!tpu.dma_semaphore, #tpu.memory_space<semaphore_mem>>) attributes {dimension_semantics = [#tpu.dimension_semantics<parallel>, #tpu.dimension_semantics<arbitrary>], iteration_bounds = array<i64: 1, 1>, scalar_prefetch = 0 : i64, scratch_operands = 2 : i64, tpu.core_type = #tpu.core_type<tc>, window_params = [{}, {pipeline_mode = #tpu.pipeline_mode<synchronous>, transform_indices = @transform_1, window_bounds = array<i64: 19, 1, 1>}, {transform_indices = @transform_2, window_bounds = array<i64: 16, 128>}, {transform_indices = @transform_3, window_bounds = array<i64: 16, 128>}, {transform_indices = @transform_4, window_bounds = array<i64: 16, 128>}]} {
    %c1_i32 = arith.constant 1 : i32
    %0 = arith.muli %arg0, %c1_i32 : i32
    %1 = arith.addi %0, %arg1 : i32
    %c2_i32 = arith.constant 2 : i32
    %c0_i32 = arith.constant 0 : i32
    %2 = arith.cmpi eq, %c2_i32, %c0_i32 : i32
    %c1_i32_0 = arith.constant 1 : i32
    %3 = arith.select %2, %c1_i32_0, %c2_i32 : i32
    %4 = arith.remsi %arg1, %3 : i32
    %c0_i32_1 = arith.constant 0 : i32
    %5 = arith.cmpi ne, %4, %c0_i32_1 : i32
    %c0_i32_2 = arith.constant 0 : i32
    %6 = arith.cmpi slt, %4, %c0_i32_2 : i32
    %c0_i32_3 = arith.constant 0 : i32
    %7 = arith.cmpi slt, %3, %c0_i32_3 : i32
    %8 = arith.xori %6, %7 : i1
    %9 = arith.andi %8, %5 : i1
    %10 = arith.addi %4, %3 : i32
    %11 = arith.select %9, %10, %4 : i32
    %c0_i32_4 = arith.constant 0 : i32
    %12 = arith.cmpi eq, %arg1, %c0_i32_4 : i32
    %13 = arith.extui %12 : i1 to i32
    %c0_i32_5 = arith.constant 0 : i32
    %14 = arith.cmpi ne, %13, %c0_i32_5 : i32
    scf.if %14 {
      %c16_i32_59 = arith.constant 16 : i32
      %167 = arith.muli %1, %c16_i32_59 : i32
      %168 = tpu.assume_multiple %167, 16 : i32
      %c0_i32_60 = arith.constant 0 : i32
      %c0_i32_61 = arith.constant 0 : i32
      %169 = tpu.memref_slice %arg2[%c0_i32_60, %168, %c0_i32_61] : memref<19x24x128xf32, #tpu.memory_space<any>> -> memref<19x24x128xf32, #tpu.memory_space<any>>
      %c0_i32_62 = arith.constant 0 : i32
      %c0_i32_63 = arith.constant 0 : i32
      %c0_i32_64 = arith.constant 0 : i32
      %170 = tpu.memref_slice %arg7[%11, %c0_i32_62, %c0_i32_63, %c0_i32_64] : memref<2x19x24x128xf32, #tpu.memory_space<vmem>> -> memref<1x19x24x128xf32, #tpu.memory_space<vmem>>
      %171 = tpu.memref_squeeze %170 : memref<1x19x24x128xf32, #tpu.memory_space<vmem>> -> memref<19x24x128xf32, #tpu.memory_space<vmem>>
      %172 = tpu.memref_slice %arg8[%11] : memref<2x!tpu.dma_semaphore, #tpu.memory_space<semaphore_mem>> -> memref<1x!tpu.dma_semaphore, #tpu.memory_space<semaphore_mem>>
      %173 = tpu.memref_squeeze %172 : memref<1x!tpu.dma_semaphore, #tpu.memory_space<semaphore_mem>> -> memref<!tpu.dma_semaphore, #tpu.memory_space<semaphore_mem>>
      tpu.enqueue_dma source(%169 : memref<19x24x128xf32, #tpu.memory_space<any>>) target(%171 : memref<19x24x128xf32, #tpu.memory_space<vmem>>) target_semaphore(%173 : memref<!tpu.dma_semaphore, #tpu.memory_space<semaphore_mem>>)
    } else {
    }
    %c0_i32_6 = arith.constant 0 : i32
    %c0_i32_7 = arith.constant 0 : i32
    %c0_i32_8 = arith.constant 0 : i32
    %15 = tpu.memref_slice %arg2[%c0_i32_6, %c0_i32_7, %c0_i32_8] : memref<19x24x128xf32, #tpu.memory_space<any>> -> memref<19x24x128xf32, #tpu.memory_space<any>>
    %c0_i32_9 = arith.constant 0 : i32
    %c0_i32_10 = arith.constant 0 : i32
    %c0_i32_11 = arith.constant 0 : i32
    %16 = tpu.memref_slice %arg7[%11, %c0_i32_9, %c0_i32_10, %c0_i32_11] : memref<2x19x24x128xf32, #tpu.memory_space<vmem>> -> memref<1x19x24x128xf32, #tpu.memory_space<vmem>>
    %17 = tpu.memref_squeeze %16 : memref<1x19x24x128xf32, #tpu.memory_space<vmem>> -> memref<19x24x128xf32, #tpu.memory_space<vmem>>
    %18 = tpu.memref_slice %arg8[%11] : memref<2x!tpu.dma_semaphore, #tpu.memory_space<semaphore_mem>> -> memref<1x!tpu.dma_semaphore, #tpu.memory_space<semaphore_mem>>
    %19 = tpu.memref_squeeze %18 : memref<1x!tpu.dma_semaphore, #tpu.memory_space<semaphore_mem>> -> memref<!tpu.dma_semaphore, #tpu.memory_space<semaphore_mem>>
    tpu.wait_dma2 semaphore(%19 : memref<!tpu.dma_semaphore, #tpu.memory_space<semaphore_mem>>) src(%15 : memref<19x24x128xf32, #tpu.memory_space<any>>) dst(%17 : memref<19x24x128xf32, #tpu.memory_space<vmem>>)
    %c1_i32_12 = arith.constant 1 : i32
    %20 = arith.addi %arg1, %c1_i32_12 : i32
    %c1_i32_13 = arith.constant 1 : i32
    %21 = arith.cmpi slt, %20, %c1_i32_13 : i32
    %22 = arith.extui %21 : i1 to i32
    %c0_i32_14 = arith.constant 0 : i32
    %23 = arith.cmpi ne, %22, %c0_i32_14 : i32
    scf.if %23 {
      %c1_i32_59 = arith.constant 1 : i32
      %167 = arith.addi %1, %c1_i32_59 : i32
      %c1_i32_60 = arith.constant 1 : i32
      %168 = arith.subi %c1_i32_60, %11 : i32
      %c16_i32_61 = arith.constant 16 : i32
      %169 = arith.muli %167, %c16_i32_61 : i32
      %170 = tpu.assume_multiple %169, 16 : i32
      %c0_i32_62 = arith.constant 0 : i32
      %c0_i32_63 = arith.constant 0 : i32
      %171 = tpu.memref_slice %arg2[%c0_i32_62, %170, %c0_i32_63] : memref<19x24x128xf32, #tpu.memory_space<any>> -> memref<19x24x128xf32, #tpu.memory_space<any>>
      %c0_i32_64 = arith.constant 0 : i32
      %c0_i32_65 = arith.constant 0 : i32
      %c0_i32_66 = arith.constant 0 : i32
      %172 = tpu.memref_slice %arg7[%168, %c0_i32_64, %c0_i32_65, %c0_i32_66] : memref<2x19x24x128xf32, #tpu.memory_space<vmem>> -> memref<1x19x24x128xf32, #tpu.memory_space<vmem>>
      %173 = tpu.memref_squeeze %172 : memref<1x19x24x128xf32, #tpu.memory_space<vmem>> -> memref<19x24x128xf32, #tpu.memory_space<vmem>>
      %174 = tpu.memref_slice %arg8[%168] : memref<2x!tpu.dma_semaphore, #tpu.memory_space<semaphore_mem>> -> memref<1x!tpu.dma_semaphore, #tpu.memory_space<semaphore_mem>>
      %175 = tpu.memref_squeeze %174 : memref<1x!tpu.dma_semaphore, #tpu.memory_space<semaphore_mem>> -> memref<!tpu.dma_semaphore, #tpu.memory_space<semaphore_mem>>
      tpu.enqueue_dma source(%171 : memref<19x24x128xf32, #tpu.memory_space<any>>) target(%173 : memref<19x24x128xf32, #tpu.memory_space<vmem>>) target_semaphore(%175 : memref<!tpu.dma_semaphore, #tpu.memory_space<semaphore_mem>>)
    } else {
    }
    %24 = arith.index_cast %11 : i32 to index
    %c0 = arith.constant 0 : index
    %c0_15 = arith.constant 0 : index
    %c0_16 = arith.constant 0 : index
    %25 = vector.load %arg7[%24, %c0, %c0_15, %c0_16] : memref<2x19x24x128xf32, #tpu.memory_space<vmem>>, vector<1x19x24x128xf32>
    %26 = vector.shape_cast %25 : vector<1x19x24x128xf32> to vector<19x24x128xf32>
    %cst = arith.constant dense<0xFF800000> : vector<24x128xf32>
    %27 = vector.multi_reduction <maximumf>, %26, %cst [0] : vector<19x24x128xf32> to vector<24x128xf32>
    %28 = vector.shape_cast %27 : vector<24x128xf32> to vector<1x24x128xf32>
    %29 = vector.broadcast %28 : vector<1x24x128xf32> to vector<19x24x128xf32>
    %30 = arith.subf %26, %29 : vector<19x24x128xf32>
    %31 = math.exp %30 : vector<19x24x128xf32>
    %cst_17 = arith.constant dense<0.000000e+00> : vector<24x128xf32>
    %32 = vector.multi_reduction <add>, %31, %cst_17 [0] : vector<19x24x128xf32> to vector<24x128xf32>
    %33 = tpu.reciprocal %32 {approx = true} : vector<24x128xf32> -> vector<24x128xf32>
    %34 = math.log %32 : vector<24x128xf32>
    %35 = arith.mulf %31, %30 : vector<19x24x128xf32>
    %cst_18 = arith.constant dense<0.000000e+00> : vector<24x128xf32>
    %36 = vector.multi_reduction <add>, %35, %cst_18 [0] : vector<19x24x128xf32> to vector<24x128xf32>
    %37 = arith.mulf %36, %33 : vector<24x128xf32>
    %38 = arith.subf %34, %37 : vector<24x128xf32>
    %39 = tpu.iota {dimensions = array<i32: 0>} : vector<19x24x128xi32>
    %cst_19 = arith.constant 0.000000e+00 : f32
    %40 = vector.broadcast %cst_19 : f32 to vector<19x24x128xf32>
    %41 = arith.cmpf oge, %30, %40 : vector<19x24x128xf32>
    %c19_i32 = arith.constant 19 : i32
    %42 = vector.broadcast %c19_i32 : i32 to vector<19x24x128xi32>
    %43 = arith.select %41, %39, %42 : vector<19x24x128xi1>, vector<19x24x128xi32>
    %cst_20 = arith.constant dense<2147483647> : vector<24x128xi32>
    %44 = vector.multi_reduction <minsi>, %43, %cst_20 [0] : vector<19x24x128xi32> to vector<24x128xi32>
    %45 = vector.shape_cast %44 : vector<24x128xi32> to vector<1x24x128xi32>
    %c16_i32 = arith.constant 16 : i32
    %46 = arith.muli %1, %c16_i32 : i32
    %c4_i32 = arith.constant 4 : i32
    %47 = arith.subi %46, %c4_i32 : i32
    %48 = tpu.iota {dimensions = array<i32: 0>} : vector<24x128xi32>
    %49 = vector.broadcast %47 : i32 to vector<24x128xi32>
    %50 = arith.addi %49, %48 : vector<24x128xi32>
    %51 = tpu.iota {dimensions = array<i32: 1>} : vector<24x128xi32>
    %c0_i32_21 = arith.constant 0 : i32
    %52 = vector.broadcast %c0_i32_21 : i32 to vector<24x128xi32>
    %53 = arith.cmpi sge, %50, %52 : vector<24x128xi32>
    %c16_i32_22 = arith.constant 16 : i32
    %54 = vector.broadcast %c16_i32_22 : i32 to vector<24x128xi32>
    %55 = arith.cmpi slt, %50, %54 : vector<24x128xi32>
    %56 = arith.andi %53, %55 : vector<24x128xi1>
    %c16_i32_23 = arith.constant 16 : i32
    %57 = vector.broadcast %c16_i32_23 : i32 to vector<24x128xi32>
    %58 = arith.cmpi slt, %51, %57 : vector<24x128xi32>
    %59 = arith.andi %56, %58 : vector<24x128xi1>
    %60 = vector.broadcast %45 : vector<1x24x128xi32> to vector<19x24x128xi32>
    %61 = arith.cmpi eq, %39, %60 : vector<19x24x128xi32>
    %62 = vector.shape_cast %59 : vector<24x128xi1> to vector<1x24x128xi1>
    %63 = vector.broadcast %62 : vector<1x24x128xi1> to vector<19x24x128xi1>
    %64 = arith.andi %61, %63 : vector<19x24x128xi1>
    %65 = arith.extui %64 : vector<19x24x128xi1> to vector<19x24x128xi32>
    %66 = arith.sitofp %65 : vector<19x24x128xi32> to vector<19x24x128xf32>
    %c0_24 = arith.constant 0 : index
    %c0_25 = arith.constant 0 : index
    %c0_26 = arith.constant 0 : index
    %67 = vector.load %arg3[%c0_24, %c0_25, %c0_26] : memref<19x1x1xf32, #tpu.memory_space<vmem>>, vector<19x1x1xf32>
    %68 = vector.broadcast %67 : vector<19x1x1xf32> to vector<19x24x128xf32>
    %69 = arith.mulf %66, %68 : vector<19x24x128xf32>
    %cst_27 = arith.constant dense<0.000000e+00> : vector<24x128xf32>
    %70 = vector.multi_reduction <add>, %69, %cst_27 [0] : vector<19x24x128xf32> to vector<24x128xf32>
    %71 = arith.mulf %38, %70 : vector<24x128xf32>
    %cst_28 = arith.constant 0.339623272 : f32
    %72 = vector.broadcast %cst_28 : f32 to vector<24x128xf32>
    %73 = arith.mulf %71, %72 : vector<24x128xf32>
    %74 = vector.extract_strided_slice %66 {offsets = [0, 0, 0], sizes = [19, 23, 128], strides = [1, 1, 1]} : vector<19x24x128xf32> to vector<19x23x128xf32>
    %75 = vector.extract_strided_slice %66 {offsets = [0, 1, 0], sizes = [19, 23, 128], strides = [1, 1, 1]} : vector<19x24x128xf32> to vector<19x23x128xf32>
    %76 = arith.addf %74, %75 : vector<19x23x128xf32>
    %77 = vector.extract_strided_slice %76 {offsets = [0, 0, 0], sizes = [19, 21, 128], strides = [1, 1, 1]} : vector<19x23x128xf32> to vector<19x21x128xf32>
    %78 = vector.extract_strided_slice %76 {offsets = [0, 2, 0], sizes = [19, 21, 128], strides = [1, 1, 1]} : vector<19x23x128xf32> to vector<19x21x128xf32>
    %79 = arith.addf %77, %78 : vector<19x21x128xf32>
    %80 = vector.extract_strided_slice %79 {offsets = [0, 0, 0], sizes = [19, 17, 128], strides = [1, 1, 1]} : vector<19x21x128xf32> to vector<19x17x128xf32>
    %81 = vector.extract_strided_slice %79 {offsets = [0, 4, 0], sizes = [19, 17, 128], strides = [1, 1, 1]} : vector<19x21x128xf32> to vector<19x17x128xf32>
    %82 = arith.addf %80, %81 : vector<19x17x128xf32>
    %83 = vector.extract_strided_slice %82 {offsets = [0, 0, 0], sizes = [19, 16, 128], strides = [1, 1, 1]} : vector<19x17x128xf32> to vector<19x16x128xf32>
    %84 = vector.extract_strided_slice %66 {offsets = [0, 8, 0], sizes = [19, 16, 128], strides = [1, 1, 1]} : vector<19x24x128xf32> to vector<19x16x128xf32>
    %85 = arith.addf %83, %84 : vector<19x16x128xf32>
    %86 = vector.shape_cast %85 : vector<19x16x128xf32> to vector<304x128xf32>
    %c1_i32_29 = arith.constant 1 : i32
    %87 = tpu.dynamic_rotate %86 by %c1_i32_29 dim 1 : vector<304x128xf32>, i32 -> vector<304x128xf32>
    %88 = arith.addf %86, %87 : vector<304x128xf32>
    %c2_i32_30 = arith.constant 2 : i32
    %89 = tpu.dynamic_rotate %88 by %c2_i32_30 dim 1 : vector<304x128xf32>, i32 -> vector<304x128xf32>
    %90 = arith.addf %88, %89 : vector<304x128xf32>
    %c4_i32_31 = arith.constant 4 : i32
    %91 = tpu.dynamic_rotate %90 by %c4_i32_31 dim 1 : vector<304x128xf32>, i32 -> vector<304x128xf32>
    %92 = arith.addf %90, %91 : vector<304x128xf32>
    %c124_i32 = arith.constant 124 : i32
    %93 = tpu.dynamic_rotate %92 by %c124_i32 dim 1 : vector<304x128xf32>, i32 -> vector<304x128xf32>
    %c4_i32_32 = arith.constant 4 : i32
    %94 = tpu.dynamic_rotate %86 by %c4_i32_32 dim 1 : vector<304x128xf32>, i32 -> vector<304x128xf32>
    %95 = arith.addf %93, %94 : vector<304x128xf32>
    %96 = vector.shape_cast %95 : vector<304x128xf32> to vector<19x16x128xf32>
    %97 = vector.extract_strided_slice %73 {offsets = [0, 0], sizes = [23, 128], strides = [1, 1]} : vector<24x128xf32> to vector<23x128xf32>
    %98 = vector.extract_strided_slice %73 {offsets = [1, 0], sizes = [23, 128], strides = [1, 1]} : vector<24x128xf32> to vector<23x128xf32>
    %99 = arith.addf %97, %98 : vector<23x128xf32>
    %100 = vector.extract_strided_slice %99 {offsets = [0, 0], sizes = [21, 128], strides = [1, 1]} : vector<23x128xf32> to vector<21x128xf32>
    %101 = vector.extract_strided_slice %99 {offsets = [2, 0], sizes = [21, 128], strides = [1, 1]} : vector<23x128xf32> to vector<21x128xf32>
    %102 = arith.addf %100, %101 : vector<21x128xf32>
    %103 = vector.extract_strided_slice %102 {offsets = [0, 0], sizes = [17, 128], strides = [1, 1]} : vector<21x128xf32> to vector<17x128xf32>
    %104 = vector.extract_strided_slice %102 {offsets = [4, 0], sizes = [17, 128], strides = [1, 1]} : vector<21x128xf32> to vector<17x128xf32>
    %105 = arith.addf %103, %104 : vector<17x128xf32>
    %106 = vector.extract_strided_slice %105 {offsets = [0, 0], sizes = [16, 128], strides = [1, 1]} : vector<17x128xf32> to vector<16x128xf32>
    %107 = vector.extract_strided_slice %73 {offsets = [8, 0], sizes = [16, 128], strides = [1, 1]} : vector<24x128xf32> to vector<16x128xf32>
    %108 = arith.addf %106, %107 : vector<16x128xf32>
    %c1_i32_33 = arith.constant 1 : i32
    %109 = tpu.dynamic_rotate %108 by %c1_i32_33 dim 1 : vector<16x128xf32>, i32 -> vector<16x128xf32>
    %110 = arith.addf %108, %109 : vector<16x128xf32>
    %c2_i32_34 = arith.constant 2 : i32
    %111 = tpu.dynamic_rotate %110 by %c2_i32_34 dim 1 : vector<16x128xf32>, i32 -> vector<16x128xf32>
    %112 = arith.addf %110, %111 : vector<16x128xf32>
    %c4_i32_35 = arith.constant 4 : i32
    %113 = tpu.dynamic_rotate %112 by %c4_i32_35 dim 1 : vector<16x128xf32>, i32 -> vector<16x128xf32>
    %114 = arith.addf %112, %113 : vector<16x128xf32>
    %c124_i32_36 = arith.constant 124 : i32
    %115 = tpu.dynamic_rotate %114 by %c124_i32_36 dim 1 : vector<16x128xf32>, i32 -> vector<16x128xf32>
    %c4_i32_37 = arith.constant 4 : i32
    %116 = tpu.dynamic_rotate %108 by %c4_i32_37 dim 1 : vector<16x128xf32>, i32 -> vector<16x128xf32>
    %117 = arith.addf %115, %116 : vector<16x128xf32>
    %c16_i32_38 = arith.constant 16 : i32
    %118 = arith.muli %1, %c16_i32_38 : i32
    %119 = tpu.iota {dimensions = array<i32: 0>} : vector<16x128xi32>
    %120 = vector.broadcast %118 : i32 to vector<16x128xi32>
    %121 = arith.addi %120, %119 : vector<16x128xi32>
    %122 = tpu.iota {dimensions = array<i32: 1>} : vector<16x128xi32>
    %c4_i32_39 = arith.constant 4 : i32
    %123 = vector.broadcast %c4_i32_39 : i32 to vector<16x128xi32>
    %124 = arith.addi %121, %123 : vector<16x128xi32>
    %c15_i32 = arith.constant 15 : i32
    %125 = vector.broadcast %c15_i32 : i32 to vector<16x128xi32>
    %126 = arith.minsi %124, %125 : vector<16x128xi32>
    %c4_i32_40 = arith.constant 4 : i32
    %127 = vector.broadcast %c4_i32_40 : i32 to vector<16x128xi32>
    %128 = arith.subi %121, %127 : vector<16x128xi32>
    %c0_i32_41 = arith.constant 0 : i32
    %129 = vector.broadcast %c0_i32_41 : i32 to vector<16x128xi32>
    %130 = arith.maxsi %128, %129 : vector<16x128xi32>
    %131 = arith.subi %126, %130 : vector<16x128xi32>
    %c1_i32_42 = arith.constant 1 : i32
    %132 = vector.broadcast %c1_i32_42 : i32 to vector<16x128xi32>
    %133 = arith.addi %131, %132 : vector<16x128xi32>
    %c4_i32_43 = arith.constant 4 : i32
    %134 = vector.broadcast %c4_i32_43 : i32 to vector<16x128xi32>
    %135 = arith.addi %122, %134 : vector<16x128xi32>
    %c15_i32_44 = arith.constant 15 : i32
    %136 = vector.broadcast %c15_i32_44 : i32 to vector<16x128xi32>
    %137 = arith.minsi %135, %136 : vector<16x128xi32>
    %c4_i32_45 = arith.constant 4 : i32
    %138 = vector.broadcast %c4_i32_45 : i32 to vector<16x128xi32>
    %139 = arith.subi %122, %138 : vector<16x128xi32>
    %c0_i32_46 = arith.constant 0 : i32
    %140 = vector.broadcast %c0_i32_46 : i32 to vector<16x128xi32>
    %141 = arith.maxsi %139, %140 : vector<16x128xi32>
    %142 = arith.subi %137, %141 : vector<16x128xi32>
    %c1_i32_47 = arith.constant 1 : i32
    %143 = vector.broadcast %c1_i32_47 : i32 to vector<16x128xi32>
    %144 = arith.addi %142, %143 : vector<16x128xi32>
    %145 = arith.muli %133, %144 : vector<16x128xi32>
    %c1_i32_48 = arith.constant 1 : i32
    %146 = vector.broadcast %c1_i32_48 : i32 to vector<16x128xi32>
    %147 = arith.maxsi %145, %146 : vector<16x128xi32>
    %148 = arith.sitofp %147 : vector<16x128xi32> to vector<16x128xf32>
    %149 = tpu.reciprocal %148 {approx = true} : vector<16x128xf32> -> vector<16x128xf32>
    %150 = vector.shape_cast %149 : vector<16x128xf32> to vector<1x16x128xf32>
    %151 = vector.broadcast %150 : vector<1x16x128xf32> to vector<19x16x128xf32>
    %152 = arith.mulf %96, %151 : vector<19x16x128xf32>
    %cst_49 = arith.constant 0.000000e+00 : f32
    %153 = vector.broadcast %cst_49 : f32 to vector<19x16x128xf32>
    %154 = arith.subf %153, %152 : vector<19x16x128xf32>
    %cst_50 = arith.constant 9.99999997E-7 : f32
    %155 = vector.broadcast %cst_50 : f32 to vector<19x16x128xf32>
    %156 = arith.addf %152, %155 : vector<19x16x128xf32>
    %157 = math.log %156 : vector<19x16x128xf32>
    %158 = arith.mulf %154, %157 : vector<19x16x128xf32>
    %cst_51 = arith.constant dense<0.000000e+00> : vector<16x128xf32>
    %159 = vector.multi_reduction <add>, %158, %cst_51 [0] : vector<19x16x128xf32> to vector<16x128xf32>
    %cst_52 = arith.constant 0.339623272 : f32
    %160 = vector.broadcast %cst_52 : f32 to vector<16x128xf32>
    %161 = arith.mulf %159, %160 : vector<16x128xf32>
    %162 = arith.mulf %117, %149 : vector<16x128xf32>
    %c0_53 = arith.constant 0 : index
    %c0_54 = arith.constant 0 : index
    %163 = vector.load %arg5[%c0_53, %c0_54] : memref<16x128xf32, #tpu.memory_space<vmem>>, vector<16x128xf32>
    tpu.vector_store %arg5[%c0_53, %c0_54], %161 {strides = array<i32>} : memref<16x128xf32, #tpu.memory_space<vmem>>, vector<16x128xf32>,
    %c0_55 = arith.constant 0 : index
    %c0_56 = arith.constant 0 : index
    %164 = vector.load %arg6[%c0_55, %c0_56] : memref<16x128xf32, #tpu.memory_space<vmem>>, vector<16x128xf32>
    tpu.vector_store %arg6[%c0_55, %c0_56], %162 {strides = array<i32>} : memref<16x128xf32, #tpu.memory_space<vmem>>, vector<16x128xf32>,
    %165 = arith.mulf %161, %162 : vector<16x128xf32>
    %c0_57 = arith.constant 0 : index
    %c0_58 = arith.constant 0 : index
    %166 = vector.load %arg4[%c0_57, %c0_58] : memref<16x128xf32, #tpu.memory_space<vmem>>, vector<16x128xf32>
    tpu.vector_store %arg4[%c0_57, %c0_58], %165 {strides = array<i32>} : memref<16x128xf32, #tpu.memory_space<vmem>>, vector<16x128xf32>,
    return
  }
  func.func @transform_1(%arg0: i32, %arg1: i32) -> (i32, i32, i32) {
    %c0_i32 = arith.constant 0 : i32
    %c0_i32_0 = arith.constant 0 : i32
    %c0_i32_1 = arith.constant 0 : i32
    %c0_i32_2 = arith.constant 0 : i32
    return %c0_i32, %c0_i32_0, %c0_i32_1 : i32, i32, i32
  }
  func.func @transform_2(%arg0: i32, %arg1: i32) -> (i32, i32) {
    %c1_i32 = arith.constant 1 : i32
    %0 = arith.muli %arg0, %c1_i32 : i32
    %1 = arith.addi %0, %arg1 : i32
    %c0_i32 = arith.constant 0 : i32
    %c0_i32_0 = arith.constant 0 : i32
    return %1, %c0_i32 : i32, i32
  }
  func.func @transform_3(%arg0: i32, %arg1: i32) -> (i32, i32) {
    %c1_i32 = arith.constant 1 : i32
    %0 = arith.muli %arg0, %c1_i32 : i32
    %1 = arith.addi %0, %arg1 : i32
    %c0_i32 = arith.constant 0 : i32
    %c0_i32_0 = arith.constant 0 : i32
    return %1, %c0_i32 : i32, i32
  }
  func.func @transform_4(%arg0: i32, %arg1: i32) -> (i32, i32) {
    %c1_i32 = arith.constant 1 : i32
    %0 = arith.muli %arg0, %c1_i32 : i32
    %1 = arith.addi %0, %arg1 : i32
    %c0_i32 = arith.constant 0 : i32
    %c0_i32_0 = arith.constant 0 : i32
    return %1, %c0_i32 : i32, i32
  }
}

</mosaic_0001>

<bundles_post_ra>
// kernel: tpu_custom_call.1
= control target key start
LH: loop header
LB: loop body
LE: loop exit
PB: predicated region body
PF: predicated region fallthrough
CT: control target
= control target key end

     0   :  { %10 = vsyncpa [#allocation5], 0  ;;  %s6614_s0 = inlined_call_operand.hbm [shape: f32[19,24,128], index: 0, kind: input, shape index: {}]   ;;  %s6615_s1 = inlined_call_operand.vmem [shape: f32[19,1,1], index: 1, kind: input, shape index: {}]   ;;  %s6616_s2 = inlined_call_operand.hbm [shape: f32[16,128], index: 2, kind: output, shape index: {0}]   ;;  %s6617_s3 = inlined_call_operand.hbm [shape: f32[16,128], index: 3, kind: output, shape index: {1}]   ;;  %s6618_s4 = inlined_call_operand.hbm [shape: f32[16,128], index: 4, kind: output, shape index: {2}]  }
   0x1   :  { %11 = vsyncpa [#allocation7], 0  ;;  %s3525_s15 = smov [#allocation2]   ;;  %s3431_s19 = scalar_lea.hbm %s6614_s0, 7296 }
   0x2   :  { %s46_s16 = sshll.u32 %s3525_s15, 4  ;;  %p3432_p0 = scmp.ne.s32.totalorder %s6614_s0, %s3431_s19  ;;  %s47_s16 = int_to_ptr.vmem [resolvable:$true] %s46_s16 }
   0x3   :  { %p3435_p1 = scmp.lt.u32.totalorder %s3431_s19, %s6614_s0 }
   0x5   :  { %p3437_p2 = pnand %p3435_p1, %p3432_p0 }
   0x7   :  { %3440 = shalt.err (!%p3437_p2)  }
   0x8   :  { %s3441_s24 = scalar_lea.vmem %s47_s16, 7296  ;;  %s3445_s25 = scalar_lea.vmem %s47_s16, 14592 }
   0x9   :  { %p3442_p3 = scmp.ne.s32.totalorder %s47_s16, %s3441_s24  ;;  %p3446_p4 = scmp.lt.s32.totalorder %s47_s16, %s47_s16 }
   0xa   :  { %p3447_p5 = scmp.lt.s32.totalorder %s3445_s25, %s3441_s24 }
   0xc   :  { %p3448_p6 = por %p3447_p5, %p3446_p4 }
   0xe   :  { %p3449_p7 = pnand %p3448_p6, %p3442_p3 }
  0x10   :  { %3452 = shalt.err (!%p3449_p7)  }
  0x11   :  { %49 = dma.hbm_to_vmem [thread:$0]  %s6614_s0, 7296, %s47_s16, [#allocation3] }
  0x12   :  { %3519 = dma.done.wait [#allocation3], 7296 }
  0x13   :  { %3520 = vsyncadd [#allocation3], 4294960000  ;;  %v767_v0 = vlaneseq  ;;  %v3526_v1 = vmov 0   ;;  %v3188_v4 = vld [vmem:[%s6615_s1 + $0x2] ss:$0 sm:$0xff]  ;;  %v3600_v14 = vld [vmem:[#allocation2 + $0x8] sm:$0xff] }
  0x14   :  { %3224 = vset.pattern.permute.xlu1 %v3526_v1  ;;  %3223 = vset.pattern.permute.xlu0 %v3526_v1  ;;  %v3186_v5 = vld [vmem:[%s6615_s1] ss:$0 sm:$0xff]  ;;  %v3189_v7 = vld [vmem:[%s6615_s1 + $0x3] ss:$0 sm:$0xff]  ;;  %v3187_v8 = vld [vmem:[%s6615_s1 + $0x1] ss:$0 sm:$0xff] }
  0x15   :  { %v3575_v2 = vshrl.u32 %v767_v0, 7  ;;  %1147 = vperm.xlu1 %3224, %v3188_v4   ;;  %1139 = vperm.xlu0 %3223, %v3186_v5   ;;  %v3584_v6 = vand.u32 127, %v767_v0  ;;  %v3191_v12 = vld [vmem:[%s6615_s1 + $0x5] ss:$0 sm:$0xff]  ;;  %v3190_v13 = vld [vmem:[%s6615_s1 + $0x4] ss:$0 sm:$0xff] }
  0x16   :  { %v3602_v15 = vld [vmem:[#allocation2 + $0x10] sm:$0xff]  ;;  %v3604_v17 = vld [vmem:[#allocation2 + $0x20] sm:$0xff]  ;;  %v3606_v18 = vld [vmem:[#allocation2 + $0x28] sm:$0xff]  ;;  %s3530_s12 = smov 4   ;;  %s3531_s13 = smov 2  }
  0x17   :  { %v769_v3 = vadd.s32 8, %v3575_v2  ;;  %v2753_v10 = vadd.s32 4, %v3584_v6  ;;  %v3207_v11 = vadd.s32 4294967292, %v3584_v6  ;;  %v3608_v19 = vld [vmem:[#allocation2 + $0x38] sm:$0xff]  ;;  %v3193_v21 = vld [vmem:[%s6615_s1 + $0x7] ss:$0 sm:$0xff] }
  0x18   :  { %v3192_v22 = vld [vmem:[%s6615_s1 + $0x6] ss:$0 sm:$0xff]  ;;  %v3618_v24 = vld [vmem:[#allocation2 + $0x50] sm:$0xff]  ;;  %v3620_v25 = vld [vmem:[#allocation2 + $0x58] sm:$0xff]  ;;  %v156_v26 = vmax.f32 %v3600_v14, %v3608_v19  ;;  %v3662_v50 = vadd.s32 4294967292, %v3575_v2  ;;  %v2737_v57 = vadd.s32 4, %v3575_v2 }
  0x19   :  { %v2738_v9 = vadd.s32 4, %v769_v3  ;;  %1151 = vperm.xlu1 %3224, %v3189_v7   ;;  %1143 = vperm.xlu0 %3223, %v3187_v8   ;;  %v3206_v16 = vadd.s32 4294967292, %v769_v3  ;;  %vm2754_vm1 = vcmp.lt.s32.totalorder %v2753_v10, 15  ;;  %v3616_v23 = vld [vmem:[#allocation2 + $0x40] sm:$0xff]  ;;  %vm2757_vm2 = vcmp.gt.s32.totalorder %v3207_v11, 0  ;;  %v3624_v27 = vld [vmem:[#allocation2 + $0x68] sm:$0xff] }
  0x1a   :  { %v3626_v28 = vld [vmem:[#allocation2 + $0x70] sm:$0xff]  ;;  %v3628_v29 = vld [vmem:[#allocation2 + $0x80] sm:$0xff]  ;;  %v157_v30 = vmax.f32 %v3604_v17, %v3618_v24  ;;  %v174_v31 = vmax.f32 %v3602_v15, %v3616_v23  ;;  %v175_v32 = vmax.f32 %v3606_v18, %v3620_v25  ;;  %v3636_v33 = vld [vmem:[#allocation2 + $0x88] sm:$0xff]  ;;  %v158_v36 = vmax.f32 %v156_v26, %v3624_v27  ;;  %6878 = vst [vmem:[#allocation18_spill] sm:$0xff] %v3662_v50  ;;  %s3532_s14 = smov 124   ;;  %s3533_s15 = smov [#allocation6]  }
  0x1b   :  { %vm2741_vm0 = vcmp.lt.s32.totalorder %v2738_v9, 15  ;;  %v3638_v34 = vld [vmem:[#allocation2 + $0x98] sm:$0xff]  ;;  %v3640_v35 = vld [vmem:[#allocation2 + $0xa0] sm:$0xff]  ;;  %v2755_v38 = vsel %vm2754_vm1, %v2753_v10, 15  ;;  %v3644_v39 = vld [vmem:[#allocation2 + $0xb0] sm:$0xff]  ;;  %v2758_v45 = vsel %vm2757_vm2, %v3207_v11, 0 }
  0x1c   :  { %v2742_v20 = vsel %vm2741_vm0, %v2738_v9, 15  ;;  %v3646_v40 = vld [vmem:[#allocation2 + $0xb8] sm:$0xff]  ;;  %v3648_v41 = vld [vmem:[#allocation2 + $0xc8] sm:$0xff]  ;;  %v159_v42 = vmax.f32 %v157_v30, %v3628_v29  ;;  %v176_v43 = vmax.f32 %v174_v31, %v3626_v28  ;;  %v177_v44 = vmax.f32 %v175_v32, %v3636_v33  ;;  %v3654_v46 = vld [vmem:[#allocation2 + $0xd0] sm:$0xff]  ;;  %s3072_s16 = sshll.u32 %s3533_s15, 4  ;;  %s3073_s16 = int_to_ptr.vmem [resolvable:$true] %s3072_s16 }
  0x1d   :  { %1159 = vperm.xlu1 %3224, %v3191_v12   ;;  %1155 = vperm.xlu0 %3223, %v3190_v13   ;;  %v2750_v37 = vsub.s32 %v2742_v20, %v3206_v16  ;;  %v3656_v47 = vld [vmem:[#allocation2 + $0xe0] sm:$0xff]  ;;  %v3658_v48 = vld [vmem:[#allocation2 + $0xe8] sm:$0xff]  ;;  %v160_v49 = vmax.f32 %v158_v36, %v3638_v34  ;;  %v3670_v53 = vld [vmem:[#allocation2 + $0xf8] sm:$0xff]  ;;  %vm2745_vm3 = vcmp.gt.s32.totalorder %v3662_v50, 0  ;;  %v2759_v63 = vsub.s32 %v2755_v38, %v2758_v45  ;;  %s3453_s17 = scalar_lea.vmem %s3073_s16, 256  ;;  %p3458_p9 = scmp.lt.s32.totalorder %s3073_s16, %s3073_s16 }
  0x1e   :  { %v3195_v51 = vld [vmem:[%s6615_s1 + $0x9] ss:$0 sm:$0xff]  ;;  %v3194_v52 = vld [vmem:[%s6615_s1 + $0x8] ss:$0 sm:$0xff]  ;;  %v161_v54 = vmax.f32 %v159_v42, %v3644_v39  ;;  %v178_v55 = vmax.f32 %v176_v43, %v3640_v35  ;;  %v179_v56 = vmax.f32 %v177_v44, %v3646_v40  ;;  %v3676_v58 = vld [vmem:[#allocation2 + $0x100] sm:$0xff]  ;;  %v2746_v5 = vsel %vm2745_vm3, %v3662_v50, 0  ;;  %p3454_p8 = scmp.ne.s32.totalorder %s3073_s16, %s3453_s17  ;;  %p3459_p10 = scmp.lt.s32.totalorder %s3453_s17, %s3453_s17 }
  0x1f   :  { %v3678_v59 = vld [vmem:[#allocation2 + $0x110] sm:$0xff]  ;;  %v3680_v60 = vld [vmem:[#allocation2 + $0x118] sm:$0xff]  ;;  %v162_v61 = vmax.f32 %v160_v49, %v3648_v41  ;;  %v2752_v62 = vadd.s32 1, %v2750_v37  ;;  %v3684_v0 = vld [vmem:[#allocation2 + $0x128] sm:$0xff]  ;;  %v2749_v13 = vsub.s32 %v2737_v57, %v2746_v5  ;;  %v2760_v16 = vadd.s32 1, %v2759_v63 }
  0x20   :  { %v163_v1 = vmax.f32 %v161_v54, %v3656_v47  ;;  %v180_v3 = vmax.f32 %v178_v55, %v3654_v46  ;;  %v181_v4 = vmax.f32 %v179_v56, %v3658_v48  ;;  %v3197_v7 = vld [vmem:[%s6615_s1 + $0xb] ss:$0 sm:$0xff]  ;;  %v3196_v8 = vld [vmem:[%s6615_s1 + $0xa] ss:$0 sm:$0xff]  ;;  %v3696_v9 = vld [vmem:[#allocation2 + $0x130] sm:$0xff]  ;;  %p3460_p11 = por %p3459_p10, %p3458_p9 }
  0x21   :  { %1167 = vperm.xlu1 %3224, %v3193_v21   ;;  %1163 = vperm.xlu0 %3223, %v3192_v22   ;;  %v3698_v10 = vld [vmem:[#allocation2 + $0x140] sm:$0xff]  ;;  %v3700_v11 = vld [vmem:[#allocation2 + $0x148] sm:$0xff]  ;;  %v164_v12 = vmax.f32 %v162_v61, %v3670_v53  ;;  %v3703_v20 = vld [vmem:[#allocation2 + $0x158] sm:$0xff]  ;;  %v2751_v42 = vadd.s32 1, %v2749_v13  ;;  %v3719_v43 = vmul.u32 %v2760_v16, %v2752_v62 }
  0x22   :  { %v3705_v21 = vld [vmem:[#allocation2 + $0x160] sm:$0xff]  ;;  %v3707_v22 = vld [vmem:[#allocation2 + $0x170] sm:$0xff]  ;;  %v165_v26 = vmax.f32 %v163_v1, %v3678_v59  ;;  %v182_v30 = vmax.f32 %v180_v3, %v3676_v58  ;;  %v183_v31 = vmax.f32 %v181_v4, %v3680_v60  ;;  %v3712_v32 = vld [vmem:[#allocation2 + $0x178] sm:$0xff]  ;;  %p3461_p12 = pnand %p3460_p11, %p3454_p8 }
  0x23   :  { %v3714_v36 = vld [vmem:[#allocation2 + $0x188] sm:$0xff]  ;;  %v3716_v37 = vld [vmem:[#allocation2 + $0x190] sm:$0xff]  ;;  %v166_v38 = vmax.f32 %v164_v12, %v3684_v0  ;;  %6879 = vst [vmem:[#allocation19_spill] sm:$0xff] %v3719_v43  ;;  %v3721_v44 = vld [vmem:[#allocation2 + $0x1a0] sm:$0xff]  ;;  %v3737_v62 = vmul.u32 %v2760_v16, %v2751_v42 }
  0x24   :  { %v167_v45 = vmax.f32 %v165_v26, %v3698_v10  ;;  %v184_v49 = vmax.f32 %v182_v30, %v3696_v9  ;;  %v3728_v54 = vld [vmem:[#allocation2 + $0x18] sm:$0xff]  ;;  %v3730_v55 = vld [vmem:[#allocation2 + $0x1a8] sm:$0xff]  ;;  %v3733_v57 = vld [vmem:[#allocation2 + $0x30] sm:$0xff] }
  0x25   :  { %1175 = vperm.xlu1 %3224, %v3195_v51   ;;  %1171 = vperm.xlu0 %3223, %v3194_v52   ;;  %v185_v51 = vmax.f32 %v183_v31, %v3700_v11  ;;  %v3726_v52 = vld [vmem:[#allocation2] sm:$0xff]  ;;  %v168_v56 = vmax.f32 %v166_v38, %v3703_v20  ;;  %v3735_v61 = vld [vmem:[#allocation2 + $0x48] sm:$0xff]  ;;  %6880 = vst [vmem:[#allocation20_spill] sm:$0xff] %v3737_v62  ;;  %v3739_v63 = vld [vmem:[#allocation2 + $0x1b8] sm:$0xff] }
  0x26   :  { %v169_v1 = vmax.f32 %v167_v45, %v3707_v22  ;;  %v186_v3 = vmax.f32 %v184_v49, %v3705_v21  ;;  %v3744_v5 = vld [vmem:[#allocation2 + $0x60] sm:$0xff]  ;;  %v3746_v12 = vld [vmem:[#allocation2 + $0x78] sm:$0xff]  ;;  %v3199_v13 = vld [vmem:[%s6615_s1 + $0xd] ss:$0 sm:$0xff]  ;;  %v138_v26 = vmax.f32 %v3726_v52, %v3733_v57  ;;  %v139_v30 = vmax.f32 %v3728_v54, %v3735_v61 }
  0x27   :  { %v187_v4 = vmax.f32 %v185_v51, %v3712_v32  ;;  %v170_v16 = vmax.f32 %v168_v56, %v3714_v36  ;;  %v3765_v49 = vld [vmem:[#allocation2 + $0x90] sm:$0xff]  ;;  %v3767_v51 = vld [vmem:[#allocation2 + $0xa8] sm:$0xff] }
  0x28   :  { %v171_v31 = vmax.f32 %v169_v1, %v3721_v44  ;;  %v188_v38 = vmax.f32 %v186_v3, %v3716_v37  ;;  %v3770_v56 = vmax.f32 %v138_v26, %v3744_v5  ;;  %v3773_v62 = vmax.f32 %v139_v30, %v3746_v12  ;;  %v3201_v3 = vld [vmem:[%s6615_s1 + $0xf] ss:$0 sm:$0xff] }
  0x29   :  { %1183 = vperm.xlu1 %3224, %v3197_v7   ;;  %1179 = vperm.xlu0 %3223, %v3196_v8   ;;  %v3198_v7 = vld [vmem:[%s6615_s1 + $0xc] ss:$0 sm:$0xff]  ;;  %v3754_v8 = vld [vmem:[#allocation2 + $0x1c0] sm:$0xff]  ;;  %v189_v42 = vmax.f32 %v187_v4, %v3730_v55  ;;  %v172_v45 = vmax.f32 %v170_v16, %v3739_v63  ;;  %v3200_v4 = vld [vmem:[%s6615_s1 + $0xe] ss:$0 sm:$0xff] }
  0x2a   :  { %v190_v1 = vmax.f32 %v188_v38, %v3754_v8 }
  0x2b   :  { %v173_v16 = vmax.f32 %v172_v45, %v171_v31 }
  0x2c   :  { %v191_v43 = vmax.f32 %v190_v1, %v189_v42 }
  0x2d   :  { %1191 = vperm.xlu1 %3224, %v3199_v13   ;;  %1187 = vperm.xlu0 %3223, %v3198_v7   ;;  %v3787_v13 = vsub.f32 %v3600_v14, %v173_v16  ;;  %v3790_v7 = vsub.f32 %v3604_v17, %v173_v16  ;;  %v3793_v38 = vsub.f32 %v3608_v19, %v173_v16  ;;  %v770_v17 = vadd.s32 16, %v3575_v2  ;;  %v3203_v19 = vld [vmem:[%s6615_s1 + $0x11] ss:$0 sm:$0xff] }
  0x2e   :  { %v3796_v50 = vsub.f32 %v3618_v24, %v173_v16  ;;  %v3799_v31 = vsub.f32 %v3602_v15, %v191_v43  ;;  %v3802_v42 = vsub.f32 %v3606_v18, %v191_v43  ;;  %v3805_v14 = vsub.f32 %v3616_v23, %v191_v43  ;;  %v3202_v24 = vld [vmem:[%s6615_s1 + $0x10] ss:$0 sm:$0xff] }
  0x2f   :  { %6881 = vst [vmem:[#allocation21_spill] sm:$0xff] %v3787_v13  ;;  %6882 = vst [vmem:[#allocation22_spill] sm:$0xff] %v3790_v7  ;;  %v3815_v45 = vsub.f32 %v3620_v25, %v191_v43  ;;  %v3818_v15 = vsub.f32 %v3624_v27, %v173_v16  ;;  %v3821_v18 = vsub.f32 %v3626_v28, %v191_v43  ;;  %vm544_vm4 = vcmp.ge.f32.partialorder %v3787_v13, 0.0 }
  0x30   :  { %6883 = vst [vmem:[#allocation23_spill] sm:$0xff] %v3793_v38  ;;  %6884 = vst [vmem:[#allocation24_spill] sm:$0xff] %v3796_v50  ;;  %v3824_v23 = vsub.f32 %v3628_v29, %v173_v16  ;;  %v3827_v2 = vsub.f32 %v3636_v33, %v191_v43  ;;  %v3830_v1 = vsub.f32 %v3638_v34, %v173_v16  ;;  %vm545_vm5 = vcmp.ge.f32.partialorder %v3799_v31, 0.0 }
  0x31   :  { %1199 = vperm.xlu1 %3224, %v3201_v3   ;;  %1195 = vperm.xlu0 %3223, %v3200_v4   ;;  %6885 = vst [vmem:[#allocation25_spill] sm:$0xff] %v3799_v31  ;;  %6886 = vst [vmem:[#allocation26_spill] sm:$0xff] %v3802_v42  ;;  %v3833_v3 = vsub.f32 %v3640_v35, %v191_v43  ;;  %v3836_v25 = vsub.f32 %v3644_v39, %v173_v16  ;;  %vm547_vm6 = vcmp.ge.f32.partialorder %v3790_v7, 0.0 }
  0x32   :  { %6887 = vst [vmem:[#allocation27_spill] sm:$0xff] %v3805_v14  ;;  %6888 = vst [vmem:[#allocation28_spill] sm:$0xff] %v3815_v45  ;;  %v3839_v27 = vsub.f32 %v3646_v40, %v191_v43  ;;  %v3842_v28 = vsub.f32 %v3648_v41, %v173_v16  ;;  %v3845_v29 = vsub.f32 %v3654_v46, %v191_v43  ;;  %v3859_v40 = vadd.s32 4294967292, %v770_v17  ;;  %v3204_v41 = vld [vmem:[%s6615_s1 + $0x12] ss:$0 sm:$0xff]  ;;  %s3529_s1 = smov 1  }
  0x33   :  { %6889 = vst [vmem:[#allocation29_spill] sm:$0xff] %v3818_v15  ;;  %6890 = vst [vmem:[#allocation30_spill] sm:$0xff] %v3821_v18  ;;  %v3848_v33 = vsub.f32 %v3656_v47, %v173_v16  ;;  %v3851_v34 = vsub.f32 %v3658_v48, %v191_v43  ;;  %v3854_v35 = vsub.f32 %v3670_v53, %v173_v16  ;;  %vm548_vm7 = vcmp.ge.f32.partialorder %v3802_v42, 0.0 }
  0x34   :  { %6891 = vst [vmem:[#allocation31_spill] sm:$0xff] %v3824_v23  ;;  %6892 = vst [vmem:[#allocation32_spill] sm:$0xff] %v3827_v2  ;;  %v3857_v39 = vsub.f32 %v3676_v58, %v191_v43  ;;  %v3865_v46 = vsub.f32 %v3678_v59, %v173_v16  ;;  %v3868_v47 = vsub.f32 %v3680_v60, %v191_v43  ;;  %vm550_vm8 = vcmp.ge.f32.partialorder %v3793_v38, 0.0 }
  0x35   :  { %6893 = vst [vmem:[#allocation33_spill] sm:$0xff] %v3830_v1  ;;  %6894 = vst [vmem:[#allocation34_spill] sm:$0xff] %v3833_v3  ;;  %1207 = vperm.xlu1 %3224, %v3203_v19   ;;  %1203 = vperm.xlu0 %3223, %v3202_v24   ;;  %v3871_v48 = vsub.f32 %v3684_v0, %v173_v16  ;;  %v3874_v53 = vsub.f32 %v3696_v9, %v191_v43  ;;  %vm551_vm9 = vcmp.ge.f32.partialorder %v3805_v14, 0.0 }
  0x36   :  { %6895 = vst [vmem:[#allocation35_spill] sm:$0xff] %v3836_v25  ;;  %6896 = vst [vmem:[#allocation36_spill] sm:$0xff] %v3839_v27  ;;  %v3877_v58 = vsub.f32 %v3698_v10, %v173_v16  ;;  %v3880_v4 = vsub.f32 %v3700_v11, %v191_v43  ;;  %v3883_v17 = vsub.f32 %v3703_v20, %v173_v16 }
  0x37   :  { %6897 = vst [vmem:[#allocation37_spill] sm:$0xff] %v3842_v28  ;;  %6898 = vst [vmem:[#allocation38_spill] sm:$0xff] %v3845_v29  ;;  %v3886_v59 = vsub.f32 %v3705_v21, %v191_v43  ;;  %v3889_v60 = vsub.f32 %v3707_v22, %v173_v16  ;;  %v3892_v0 = vsub.f32 %v3712_v32, %v191_v43  ;;  %v6691_v32 = vmov 19  }
  0x38   :  { %6899 = vst [vmem:[#allocation39_spill] sm:$0xff] %v3848_v33  ;;  %6900 = vst [vmem:[#allocation40_spill] sm:$0xff] %v3851_v34  ;;  %v3895_v9 = vsub.f32 %v3714_v36, %v173_v16  ;;  %v3898_v10 = vsub.f32 %v3716_v37, %v191_v43  ;;  %v3902_v11 = vsub.f32 %v3721_v44, %v173_v16  ;;  %vm586_vm12 = vcmp.ge.f32.partialorder %v3883_v17, 0.0 }
  0x39   :  { %6901 = vst [vmem:[#allocation41_spill] sm:$0xff] %v3854_v35  ;;  %6902 = vst [vmem:[#allocation42_spill] sm:$0xff] %v3857_v39  ;;  %1211 = vperm.xlu0 %3223, %v3204_v41   ;;  %v3905_v20 = vsub.f32 %v3730_v55, %v191_v43  ;;  %v3908_v21 = vsub.f32 %v3739_v63, %v173_v16  ;;  %v3911_v22 = vsub.f32 %v3754_v8, %v191_v43 }
  0x3a   :  { %6903 = vst [vmem:[#allocation43_spill] sm:$0xff] %v3865_v46  ;;  %6904 = vst [vmem:[#allocation44_spill] sm:$0xff] %v3868_v47  ;;  %vm587_vm13 = vcmp.ge.f32.partialorder %v3886_v59, 0.0  ;;  %vm589_vm14 = vcmp.ge.f32.partialorder %v3889_v60, 0.0  ;;  %vm590_vm15 = vcmp.ge.f32.partialorder %v3892_v0, 0.0  ;;  %vm592_vm0 = vcmp.ge.f32.partialorder %v3895_v9, 0.0 }
  0x3b   :  { %6905 = vst [vmem:[#allocation45_spill] sm:$0xff] %v3871_v48  ;;  %6906 = vst [vmem:[#allocation46_spill] sm:$0xff] %v3874_v53  ;;  %vm593_vm1 = vcmp.ge.f32.partialorder %v3898_v10, 0.0  ;;  %vm595_vm2 = vcmp.ge.f32.partialorder %v3902_v11, 0.0  ;;  %vm596_vm3 = vcmp.ge.f32.partialorder %v3905_v20, 0.0  ;;  %vm598_vm10 = vcmp.ge.f32.partialorder %v3908_v21, 0.0 }
  0x3c   :  { %6907 = vst [vmem:[#allocation47_spill] sm:$0xff] %v3877_v58  ;;  %6908 = vst [vmem:[#allocation48_spill] sm:$0xff] %v3880_v4  ;;  %vm599_vm11 = vcmp.ge.f32.partialorder %v3911_v22, 0.0  ;;  %v601_v36 = vsel %vm544_vm4, 0, %v6691_v32  ;;  %v602_v37 = vsel %vm545_vm5, 0, %v6691_v32  ;;  %v604_v43 = vsel %vm547_vm6, 1, %v6691_v32 }
  0x3d   :  { %6909 = vst [vmem:[#allocation49_spill] sm:$0xff] %v3883_v17  ;;  %6910 = vst [vmem:[#allocation50_spill] sm:$0xff] %v3886_v59  ;;  %v605_v44 = vsel %vm548_vm7, 1, %v6691_v32  ;;  %v607_v55 = vsel %vm550_vm8, 2, %v6691_v32  ;;  %v608_v63 = vsel %vm551_vm9, 2, %v6691_v32  ;;  %vm6919_vm4 = vcmp.ge.f32.partialorder %v3796_v50, 0.0 }
  0x3e   :  { %6911 = vst [vmem:[#allocation51_spill] sm:$0xff] %v3889_v60  ;;  %6912 = vst [vmem:[#allocation52_spill] sm:$0xff] %v3892_v0  ;;  %v610_v8 = vsel %vm6919_vm4, 3, %v6691_v32  ;;  %vm6920_vm5 = vcmp.ge.f32.partialorder %v3815_v45, 0.0  ;;  %vm6921_vm6 = vcmp.ge.f32.partialorder %v3818_v15, 0.0  ;;  %vm6922_vm7 = vcmp.ge.f32.partialorder %v3821_v18, 0.0 }
  0x3f   :  { %6913 = vst [vmem:[#allocation53_spill] sm:$0xff] %v3895_v9  ;;  %6914 = vst [vmem:[#allocation54_spill] sm:$0xff] %v3898_v10  ;;  %v611_v16 = vsel %vm6920_vm5, 3, %v6691_v32  ;;  %v613_v19 = vsel %vm6921_vm6, 4, %v6691_v32  ;;  %v614_v24 = vsel %vm6922_vm7, 4, %v6691_v32  ;;  %vm6923_vm8 = vcmp.ge.f32.partialorder %v3824_v23, 0.0 }
  0x40   :  { %6915 = vst [vmem:[#allocation55_spill] sm:$0xff] %v3902_v11  ;;  %6916 = vst [vmem:[#allocation56_spill] sm:$0xff] %v3905_v20  ;;  %v616_v41 = vsel %vm6923_vm8, 5, %v6691_v32  ;;  %vm6924_vm9 = vcmp.ge.f32.partialorder %v3827_v2, 0.0  ;;  %vm6925_vm4 = vcmp.ge.f32.partialorder %v3830_v1, 0.0  ;;  %vm6926_vm5 = vcmp.ge.f32.partialorder %v3833_v3, 0.0 }
  0x41   :  { %6917 = vst [vmem:[#allocation57_spill] sm:$0xff] %v3908_v21  ;;  %6918 = vst [vmem:[#allocation58_spill] sm:$0xff] %v3911_v22  ;;  %v617_v30 = vsel %vm6924_vm9, 5, %v6691_v32  ;;  %v619_v26 = vsel %vm6925_vm4, 6, %v6691_v32  ;;  %v620_v45 = vsel %vm6926_vm5, 6, %v6691_v32  ;;  %vm6927_vm6 = vcmp.ge.f32.partialorder %v3836_v25, 0.0 }
  0x42   :  { %v622_v18 = vsel %vm6927_vm6, 7, %v6691_v32  ;;  %vm6928_vm7 = vcmp.ge.f32.partialorder %v3839_v27, 0.0  ;;  %vm6929_vm8 = vcmp.ge.f32.partialorder %v3842_v28, 0.0  ;;  %vm6930_vm9 = vcmp.ge.f32.partialorder %v3845_v29, 0.0 }
  0x43   :  { %v623_v14 = vsel %vm6928_vm7, 7, %v6691_v32  ;;  %v625_v2 = vsel %vm6929_vm8, 8, %v6691_v32  ;;  %v626_v42 = vsel %vm6930_vm9, 8, %v6691_v32  ;;  %vm6931_vm4 = vcmp.ge.f32.partialorder %v3848_v33, 0.0 }
  0x44   :  { %v628_v3 = vsel %vm6931_vm4, 9, %v6691_v32  ;;  %vm6932_vm5 = vcmp.ge.f32.partialorder %v3851_v34, 0.0  ;;  %vm6933_vm6 = vcmp.ge.f32.partialorder %v3854_v35, 0.0  ;;  %vm6934_vm7 = vcmp.ge.f32.partialorder %v3857_v39, 0.0 }
  0x45   :  { %v629_v31 = vsel %vm6932_vm5, 9, %v6691_v32  ;;  %v631_v27 = vsel %vm6933_vm6, 10, %v6691_v32  ;;  %v632_v28 = vsel %vm6934_vm7, 10, %v6691_v32  ;;  %vm6935_vm8 = vcmp.ge.f32.partialorder %v3865_v46, 0.0 }
  0x46   :  { %v634_v29 = vsel %vm6935_vm8, 11, %v6691_v32  ;;  %vm6936_vm9 = vcmp.ge.f32.partialorder %v3868_v47, 0.0  ;;  %vm6937_vm4 = vcmp.ge.f32.partialorder %v3871_v48, 0.0  ;;  %vm6938_vm5 = vcmp.ge.f32.partialorder %v3874_v53, 0.0 }
  0x47   :  { %v635_v33 = vsel %vm6936_vm9, 11, %v6691_v32  ;;  %v637_v34 = vsel %vm6937_vm4, 12, %v6691_v32  ;;  %v4028_v35 = vsel %vm6938_vm5, 12, %v6691_v32  ;;  %vm6939_vm6 = vcmp.ge.f32.partialorder %v3877_v58, 0.0 }
  0x48   :  { %v640_v39 = vsel %vm6939_vm6, 13, %v6691_v32  ;;  %vm6940_vm7 = vcmp.ge.f32.partialorder %v3880_v4, 0.0  ;;  %v643_v47 = vsel %vm586_vm12, 14, %v6691_v32  ;;  %v4042_v48 = vsel %vm587_vm13, 14, %v6691_v32 }
  0x49   :  { %v641_v46 = vsel %vm6940_vm7, 13, %v6691_v32  ;;  %v4047_v53 = vsel %vm589_vm14, 15, %v6691_v32  ;;  %v4052_v58 = vsel %vm590_vm15, 15, %v6691_v32  ;;  %v4057_v4 = vsel %vm592_vm0, 16, %v6691_v32 }
  0x4a   :  { %v4062_v59 = vsel %vm593_vm1, 16, %v6691_v32  ;;  %v4067_v60 = vsel %vm595_vm2, 17, %v6691_v32  ;;  %v4072_v0 = vsel %vm596_vm3, 17, %v6691_v32  ;;  %v4077_v9 = vsel %vm598_vm10, 18, %v6691_v32 }
  0x4b   :  { %v4082_v10 = vsel %vm599_vm11, 18, %v6691_v32  ;;  %vm693_vm12 = vcmp.lt.s32.totalorder %v601_v36, %v607_v55  ;;  %vm695_vm13 = vcmp.lt.s32.totalorder %v604_v43, %v610_v8  ;;  %vm729_vm14 = vcmp.lt.s32.totalorder %v602_v37, %v608_v63 }
  0x4c   :  { %v694_v17 = vsel %vm693_vm12, %v601_v36, %v607_v55  ;;  %vm731_vm15 = vcmp.lt.s32.totalorder %v605_v44, %v611_v16  ;;  %v696_v11 = vsel %vm695_vm13, %v604_v43, %v610_v8  ;;  %v730_v20 = vsel %vm729_vm14, %v602_v37, %v608_v63  ;;  %v4157_v63 = vld [vmem:[#allocation2 + $0x180] sm:$0xff]  ;;  %v4159_v8 = vld [vmem:[#allocation2 + $0x198] sm:$0xff] }
  0x4d   :  { %vm697_vm0 = vcmp.lt.s32.totalorder %v694_v17, %v613_v19  ;;  %v732_v25 = vsel %vm731_vm15, %v605_v44, %v611_v16  ;;  %vm699_vm1 = vcmp.lt.s32.totalorder %v696_v11, %v616_v41  ;;  %vm733_vm2 = vcmp.lt.s32.totalorder %v730_v20, %v614_v24 }
  0x4e   :  { %v698_v1 = vsel %vm697_vm0, %v694_v17, %v613_v19  ;;  %vm735_vm3 = vcmp.lt.s32.totalorder %v732_v25, %v617_v30  ;;  %v700_v21 = vsel %vm699_vm1, %v696_v11, %v616_v41  ;;  %v734_v23 = vsel %vm733_vm2, %v730_v20, %v614_v24  ;;  %v4141_v11 = vld [vmem:[#allocation2 + $0x150] sm:$0xff]  ;;  %v4143_v20 = vld [vmem:[#allocation2 + $0x168] sm:$0xff] }
  0x4f   :  { %vm701_vm10 = vcmp.lt.s32.totalorder %v698_v1, %v619_v26  ;;  %v736_v15 = vsel %vm735_vm3, %v732_v25, %v617_v30  ;;  %vm703_vm11 = vcmp.lt.s32.totalorder %v700_v21, %v622_v18  ;;  %vm737_vm8 = vcmp.lt.s32.totalorder %v734_v23, %v620_v45  ;;  %v4095_v25 = vld [vmem:[#allocation2 + $0xc0] sm:$0xff] }
  0x50   :  { %v702_v22 = vsel %vm701_vm10, %v698_v1, %v619_v26  ;;  %vm739_vm9 = vcmp.lt.s32.totalorder %v736_v15, %v623_v14  ;;  %v704_v36 = vsel %vm703_vm11, %v700_v21, %v622_v18  ;;  %v738_v55 = vsel %vm737_vm8, %v734_v23, %v620_v45 }
  0x51   :  { %vm705_vm4 = vcmp.lt.s32.totalorder %v702_v22, %v625_v2  ;;  %v740_v32 = vsel %vm739_vm9, %v736_v15, %v623_v14  ;;  %vm707_vm5 = vcmp.lt.s32.totalorder %v704_v36, %v628_v3  ;;  %vm741_vm6 = vcmp.lt.s32.totalorder %v738_v55, %v626_v42 }
  0x52   :  { %v706_v43 = vsel %vm705_vm4, %v702_v22, %v625_v2  ;;  %vm743_vm7 = vcmp.lt.s32.totalorder %v740_v32, %v629_v31  ;;  %v708_v17 = vsel %vm707_vm5, %v704_v36, %v628_v3  ;;  %v742_v37 = vsel %vm741_vm6, %v738_v55, %v626_v42  ;;  %v135_v55 = vld [vmem:[#allocation2 + $0x1b0] sm:$0xff] }
  0x53   :  { %vm709_vm12 = vcmp.lt.s32.totalorder %v706_v43, %v631_v27  ;;  %v744_v44 = vsel %vm743_vm7, %v740_v32, %v629_v31  ;;  %vm782_vm13 = vcmp.lt.s32.totalorder %v3859_v40, 16  ;;  %vm6695_vm14 = vcmp.lt.s32.totalorder %v3584_v6, 16 }
  0x54   :  { %v710_v26 = vsel %vm709_vm12, %v706_v43, %v631_v27  ;;  %vm711_vm15 = vcmp.lt.s32.totalorder %v708_v17, %v634_v29  ;;  %vm745_vm0 = vcmp.lt.s32.totalorder %v742_v37, %v632_v28  ;;  %vm747_vm1 = vcmp.lt.s32.totalorder %v744_v44, %v635_v33  ;;  %v4097_v27 = vld [vmem:[#allocation2 + $0xd8] sm:$0xff] }
  0x55   :  { %v712_v30 = vsel %vm711_vm15, %v708_v17, %v634_v29  ;;  %vm713_vm2 = vcmp.lt.s32.totalorder %v710_v26, %v637_v34  ;;  %v746_v45 = vsel %vm745_vm0, %v742_v37, %v632_v28  ;;  %v748_v14 = vsel %vm747_vm1, %v744_v44, %v635_v33 }
  0x56   :  { %v714_v15 = vsel %vm713_vm2, %v710_v26, %v637_v34  ;;  %vm715_vm3 = vcmp.lt.s32.totalorder %v712_v30, %v640_v39  ;;  %vm749_vm10 = vcmp.lt.s32.totalorder %v746_v45, %v4028_v35  ;;  %vm751_vm11 = vcmp.lt.s32.totalorder %v748_v14, %v641_v46 }
  0x57   :  { %v716_v18 = vsel %vm715_vm3, %v712_v30, %v640_v39  ;;  %vm717_vm8 = vcmp.lt.s32.totalorder %v714_v15, %v643_v47  ;;  %v750_v31 = vsel %vm749_vm10, %v746_v45, %v4028_v35  ;;  %v752_v42 = vsel %vm751_vm11, %v748_v14, %v641_v46  ;;  %v4107_v35 = vld [vmem:[#allocation2 + $0xf0] sm:$0xff]  ;;  %v4109_v39 = vld [vmem:[#allocation2 + $0x108] sm:$0xff]  ;;  %vm4132_vm10 = vmand %vm782_vm13, %vm6695_vm14 }
  0x58   :  { %v718_v23 = vsel %vm717_vm8, %v714_v15, %v643_v47  ;;  %vm719_vm9 = vcmp.lt.s32.totalorder %v716_v18, %v4047_v53  ;;  %vm753_vm4 = vcmp.lt.s32.totalorder %v750_v31, %v4042_v48  ;;  %vm755_vm5 = vcmp.lt.s32.totalorder %v752_v42, %v4052_v58 }
  0x59   :  { %v720_v2 = vsel %vm719_vm9, %v716_v18, %v4047_v53  ;;  %vm721_vm6 = vcmp.lt.s32.totalorder %v718_v23, %v4057_v4  ;;  %v754_v1 = vsel %vm753_vm4, %v750_v31, %v4042_v48  ;;  %v756_v3 = vsel %vm755_vm5, %v752_v42, %v4052_v58 }
  0x5a   :  { %v722_v28 = vsel %vm721_vm6, %v718_v23, %v4057_v4  ;;  %vm723_vm7 = vcmp.lt.s32.totalorder %v720_v2, %v4067_v60  ;;  %vm757_vm12 = vcmp.lt.s32.totalorder %v754_v1, %v4062_v59  ;;  %vm759_vm15 = vcmp.lt.s32.totalorder %v756_v3, %v4072_v0 }
  0x5b   :  { %v724_v29 = vsel %vm723_vm7, %v720_v2, %v4067_v60  ;;  %vm725_vm0 = vcmp.lt.s32.totalorder %v722_v28, %v4077_v9  ;;  %v758_v33 = vsel %vm757_vm12, %v754_v1, %v4062_v59  ;;  %v760_v34 = vsel %vm759_vm15, %v756_v3, %v4072_v0  ;;  %v4122_v59 = vld [vmem:[#allocation2 + $0x120] sm:$0xff]  ;;  %v4124_v60 = vld [vmem:[#allocation2 + $0x138] sm:$0xff] }
  0x5c   :  { %v726_v46 = vsel %vm725_vm0, %v722_v28, %v4077_v9  ;;  %vm761_vm1 = vcmp.lt.s32.totalorder %v758_v33, %v4082_v10  ;;  %v6941_v47 = vmax.f32 %v3770_v56, %v3765_v49  ;;  %v6942_v53 = vmax.f32 %v3773_v62, %v3767_v51 }
  0x5d   :  { %vm727_vm2 = vcmp.lt.s32.totalorder %v726_v46, %v724_v29  ;;  %v762_v4 = vsel %vm761_vm1, %v758_v33, %v4082_v10  ;;  %v6702_v22 = vmov 0.0   ;;  %vm6693_vm6 = vcmask 1046528  }
  0x5e   :  { %v144_v48 = vmax.f32 %v6941_v47, %v4095_v25  ;;  %v145_v58 = vmax.f32 %v6942_v53, %v4097_v27  ;;  %v4126_v0 = vsel %vm727_vm2, %v726_v46, %v724_v29  ;;  %vm763_vm3 = vcmp.lt.s32.totalorder %v762_v4, %v760_v34 }
  0x5f   :  { %v4138_v10 = vsel %vm763_vm3, %v762_v4, %v760_v34  ;;  %vm791_vm11 = vcmp.eq.s32.totalorder %v4126_v0, 0  ;;  %vm794_vm8 = vcmp.eq.s32.totalorder %v4126_v0, 1  ;;  %vm797_vm7 = vcmp.eq.s32.totalorder %v4126_v0, 2 }
  0x60   :  { %v146_v62 = vmax.f32 %v144_v48, %v4107_v35  ;;  %v147_v9 = vmax.f32 %v145_v58, %v4109_v39  ;;  %vm792_vm9 = vcmp.eq.s32.totalorder %v4138_v10, 0  ;;  %vm854_vm13 = vmand %vm791_vm11, %vm6695_vm14  ;;  %vm795_vm4 = vcmp.eq.s32.totalorder %v4138_v10, 1 }
  0x61   :  { %vm855_vm5 = vmand %vm792_vm9, %vm4132_vm10  ;;  %v4155_v32 = vsel %vm854_vm13, 1.0, %v6702_v22  ;;  %vm798_vm12 = vcmp.eq.s32.totalorder %v4138_v10, 2  ;;  %vm6696_vm0 = vcmask 1045504   ;;  %vm800_vm2 = vcmp.eq.s32.totalorder %v4126_v0, 3 }
  0x62   :  { %v148_v40 = vmax.f32 %v146_v62, %v4122_v59  ;;  %v149_v21 = vmax.f32 %v147_v9, %v4124_v60  ;;  %v4164_v16 = vsel %vm855_vm5, 1.0, %v6702_v22  ;;  %v6701_v19 = vrot.slane %v4155_v32, 1  ;;  %vm857_vm15 = vmand %vm794_vm8, %vm6695_vm14 }
  0x63   :  { %v1392_v36 = vrot.slane %v4164_v16, 1  ;;  %vm858_vm1 = vmand %vm795_vm4, %vm4132_vm10  ;;  %v4179_v43 = vsel %vm857_vm15, 1.0, %v6702_v22  ;;  %vm6694_vm3 = vcmask 1043456  }
  0x64   :  { %v150_v24 = vmax.f32 %v148_v40, %v4141_v11  ;;  %v151_v41 = vmax.f32 %v149_v21, %v4143_v20  ;;  %v4185_v44 = vsel %vm858_vm1, 1.0, %v6702_v22  ;;  %v6700_v26 = vrot.slane %v4179_v43, 1  ;;  %vm860_vm11 = vmand %vm797_vm7, %vm6695_vm14 }
  0x65   :  { %v1393_v30 = vsel %vm6693_vm6, %v6701_v19, %v1392_v36  ;;  %v1543_v45 = vadd.f32 %v4164_v16, %v1392_v36  ;;  %v1397_v14 = vrot.slane %v4185_v44, 1  ;;  %vm861_vm8 = vmand %vm798_vm12, %vm4132_vm10  ;;  %v4202_v15 = vsel %vm860_vm11, 1.0, %v6702_v22 }
  0x66   :  { %v152_v17 = vmax.f32 %v150_v24, %v4157_v63  ;;  %v153_v37 = vmax.f32 %v151_v41, %v4159_v8  ;;  %v4205_v18 = vadd.f32 %v4155_v32, %v1393_v30  ;;  %v4208_v42 = vsel %vm861_vm8, 1.0, %v6702_v22  ;;  %vm863_vm9 = vmand %vm800_vm2, %vm6695_vm14 }
  0x67   :  { %v6699_v23 = vrot.slane %v4202_v15, 1  ;;  %v1659_v2 = vrot.slane %v1543_v45, 2  ;;  %v1398_v1 = vsel %vm6693_vm6, %v6700_v26, %v1397_v14  ;;  %v4219_v3 = vadd.f32 %v4185_v44, %v1397_v14 }
  0x68   :  { %v154_v31 = vmax.f32 %v152_v17, %v135_v55  ;;  %v1402_v28 = vrot.slane %v4208_v42, 1  ;;  %v6698_v29 = vrot.slane %v4205_v18, 2  ;;  %v4224_v34 = vadd.f32 %v4179_v43, %v1398_v1 }
  0x69   :  { %v4227_v46 = vsel %vm863_vm9, 1.0, %v6702_v22  ;;  %v1810_v47 = vadd.f32 %v1659_v2, %v1543_v45  ;;  %v1664_v48 = vrot.slane %v4219_v3, 2  ;;  %vm803_vm11 = vcmp.eq.s32.totalorder %v4126_v0, 4 }
  0x6a   :  { %v155_v33 = vmax.f32 %v154_v31, %v153_v37  ;;  %v4233_v53 = vsel %vm6693_vm6, %v6699_v23, %v1402_v28  ;;  %v4236_v58 = vadd.f32 %v4208_v42, %v1402_v28  ;;  %v1660_v4 = vsel %vm6696_vm0, %v6698_v29, %v1659_v2 }
  0x6b   :  { %v4251_v21 = vadd.f32 %v1660_v4, %v4205_v18  ;;  %v1926_v24 = vrot.slane %v1810_v47, 4  ;;  %v6729_v19 = vrot.slane %v4224_v34, 2  ;;  %v1813_v22 = vadd.f32 %v1664_v48, %v4219_v3 }
  0x6c   :  { %v4242_v62 = vsub.f32 %v3726_v52, %v155_v33  ;;  %v4245_v9 = vsub.f32 %v3728_v54, %v155_v33  ;;  %v4248_v40 = vsub.f32 %v3733_v57, %v155_v33  ;;  %v4254_v41 = vsub.f32 %v3735_v61, %v155_v33 }
  0x6d   :  { %v4257_v36 = vsub.f32 %v3744_v5, %v155_v33  ;;  %v4260_v17 = vsub.f32 %v3746_v12, %v155_v33  ;;  %v4263_v52 = vsub.f32 %v3765_v49, %v155_v33  ;;  %v4266_v54 = vsub.f32 %v3767_v51, %v155_v33 }
  0x6e   :  { %6945 = vst [vmem:[#allocation59_spill] sm:$0xff] %v4242_v62  ;;  %6946 = vst [vmem:[#allocation60_spill] sm:$0xff] %v4245_v9  ;;  %v4269_v57 = vsub.f32 %v4095_v25, %v155_v33  ;;  %v6697_v37 = vrot.slane %v4251_v21, 4  ;;  %v4273_v61 = vsub.f32 %v4097_v27, %v155_v33  ;;  %v4276_v5 = vsub.f32 %v4107_v35, %v155_v33 }
  0x6f   :  { %6947 = vst [vmem:[#allocation61_spill] sm:$0xff] %v4248_v40  ;;  %6948 = vst [vmem:[#allocation62_spill] sm:$0xff] %v4254_v41  ;;  %v4279_v12 = vsub.f32 %v4109_v39, %v155_v33  ;;  %v4282_v49 = vsub.f32 %v4122_v59, %v155_v33  ;;  %v4285_v51 = vsub.f32 %v4124_v60, %v155_v33  ;;  %vm543_vm13 = vcmp.ge.f32.partialorder %v4242_v62, 0.0 }
  0x70   :  { %6949 = vst [vmem:[#allocation63_spill] sm:$0xff] %v4257_v36  ;;  %6950 = vst [vmem:[#allocation64_spill] sm:$0xff] %v4260_v17  ;;  %v4288_v25 = vsub.f32 %v4141_v11, %v155_v33  ;;  %v4291_v30 = vsub.f32 %v4143_v20, %v155_v33  ;;  %v1927_v27 = vsel %vm6694_vm3, %v6697_v37, %v1926_v24  ;;  %vm546_vm4 = vcmp.ge.f32.partialorder %v4245_v9, 0.0 }
  0x71   :  { %6951 = vst [vmem:[#allocation65_spill] sm:$0xff] %v4263_v52  ;;  %6952 = vst [vmem:[#allocation66_spill] sm:$0xff] %v4266_v54  ;;  %v4297_v35 = vsub.f32 %v4157_v63, %v155_v33  ;;  %v4300_v39 = vsub.f32 %v4159_v8, %v155_v33  ;;  %v4302_v59 = vsub.f32 %v135_v55, %v155_v33  ;;  %vm549_vm5 = vcmp.ge.f32.partialorder %v4248_v40, 0.0 }
  0x72   :  { %6953 = vst [vmem:[#allocation67_spill] sm:$0xff] %v4269_v57  ;;  %6954 = vst [vmem:[#allocation68_spill] sm:$0xff] %v4273_v61  ;;  %v2057_v60 = vadd.f32 %v1927_v27, %v4251_v21  ;;  %vm552_vm12 = vcmp.ge.f32.partialorder %v4254_v41, 0.0  ;;  %vm555_vm15 = vcmp.ge.f32.partialorder %v4257_v36, 0.0  ;;  %vm558_vm1 = vcmp.ge.f32.partialorder %v4260_v17, 0.0 }
  0x73   :  { %6955 = vst [vmem:[#allocation69_spill] sm:$0xff] %v4276_v5  ;;  %6956 = vst [vmem:[#allocation70_spill] sm:$0xff] %v4279_v12  ;;  %vm561_vm2 = vcmp.ge.f32.partialorder %v4263_v52, 0.0  ;;  %vm576_vm3 = vcmp.ge.f32.partialorder %v4279_v12, 0.0  ;;  %vm579_vm14 = vcmp.ge.f32.partialorder %v4282_v49, 0.0  ;;  %vm582_vm0 = vcmp.ge.f32.partialorder %v4285_v51, 0.0 }
  0x74   :  { %6957 = vst [vmem:[#allocation71_spill] sm:$0xff] %v4282_v49  ;;  %6958 = vst [vmem:[#allocation72_spill] sm:$0xff] %v4285_v51  ;;  %v4314_v11 = vadd.f32 %v4164_v16, %v2057_v60  ;;  %vm585_vm7 = vcmp.ge.f32.partialorder %v4288_v25, 0.0  ;;  %vm591_vm8 = vcmp.ge.f32.partialorder %v4297_v35, 0.0  ;;  %vm594_vm9 = vcmp.ge.f32.partialorder %v4300_v39, 0.0 }
  0x75   :  { %6959 = vst [vmem:[#allocation73_spill] sm:$0xff] %v4288_v25  ;;  %6960 = vst [vmem:[#allocation74_spill] sm:$0xff] %v4291_v30  ;;  %vm597_vm6 = vcmp.ge.f32.partialorder %v4302_v59, 0.0  ;;  %v6965_v20 = vmov 19   ;;  %v6973_v25 = vmov 0.0  }
  0x76   :  { %6961 = vst [vmem:[#allocation75_spill] sm:$0xff] %v4297_v35  ;;  %6962 = vst [vmem:[#allocation76_spill] sm:$0xff] %v4300_v39  ;;  %2134 = vrot.lane.b32.xlu0 %v4314_v11, %s3529_s1  ;;  %v600_v63 = vsel %vm543_vm13, 0, %v6965_v20  ;;  %v603_v8 = vsel %vm546_vm4, 1, %v6965_v20  ;;  %v606_v55 = vsel %vm549_vm5, 2, %v6965_v20  ;;  %v609_v45 = vsel %vm552_vm12, 3, %v6965_v20 }
  0x77   :  { %6963 = vst [vmem:[#allocation77_spill] sm:$0xff] %v4302_v59  ;;  %6964 = vst [vmem:[#allocation78_spill] sm:$0xff] %v4314_v11  ;;  %v612_v14 = vsel %vm555_vm15, 4, %v6965_v20  ;;  %v615_v31 = vsel %vm558_vm1, 5, %v6965_v20  ;;  %v618_v2 = vsel %vm561_vm2, 6, %v6965_v20  ;;  %vm6966_vm13 = vcmp.ge.f32.partialorder %v4266_v54, 0.0 }
  0x78   :  { %v621_v1 = vsel %vm6966_vm13, 7, %v6965_v20  ;;  %vm6967_vm4 = vcmp.ge.f32.partialorder %v4269_v57, 0.0  ;;  %vm6968_vm5 = vcmp.ge.f32.partialorder %v4273_v61, 0.0  ;;  %vm6969_vm12 = vcmp.ge.f32.partialorder %v4276_v5, 0.0 }
  0x79   :  { %v624_v28 = vsel %vm6967_vm4, 8, %v6965_v20  ;;  %v627_v33 = vsel %vm6968_vm5, 9, %v6965_v20  ;;  %v630_v47 = vsel %vm6969_vm12, 10, %v6965_v20  ;;  %v633_v4 = vsel %vm576_vm3, 11, %v6965_v20 }
  0x7a   :  { %v636_v24 = vsel %vm579_vm14, 12, %v6965_v20  ;;  %v639_v27 = vsel %vm582_vm0, 13, %v6965_v20  ;;  %v4376_v60 = vsel %vm585_vm7, 14, %v6965_v20  ;;  %vm6970_vm15 = vcmp.ge.f32.partialorder %v4291_v30, 0.0 }
  0x7b   :  { %v4381_v37 = vsel %vm6970_vm15, 15, %v6965_v20  ;;  %v4386_v29 = vsel %vm591_vm8, 16, %v6965_v20  ;;  %v4391_v23 = vsel %vm594_vm9, 17, %v6965_v20  ;;  %v4396_v26 = vsel %vm597_vm6, 18, %v6965_v20 }
  0x7c   :  { %vm804_vm14 = vcmp.eq.s32.totalorder %v4138_v10, 4  ;;  %vm657_vm0 = vcmp.lt.s32.totalorder %v600_v63, %v606_v55  ;;  %vm659_vm3 = vcmp.lt.s32.totalorder %v603_v8, %v609_v45  ;;  %v4405_v39 = vadd.f32 %v4202_v15, %v4233_v53 }
  0x7d   :  { %v658_v11 = vsel %vm657_vm0, %v600_v63, %v606_v55  ;;  %v660_v35 = vsel %vm659_vm3, %v603_v8, %v609_v45  ;;  %v1669_v59 = vrot.slane %v4236_v58, 2  ;;  %vm6971_vm6 = vcmp.eq.s32.totalorder %v4138_v10, 3 }
  0x7e   :  { %vm864_vm7 = vmand %vm6971_vm6, %vm4132_vm10  ;;  %vm661_vm1 = vcmp.lt.s32.totalorder %v658_v11, %v612_v14  ;;  %vm663_vm2 = vcmp.lt.s32.totalorder %v660_v35, %v615_v31  ;;  %vm6972_vm8 = vcmask 1045504   ;;  %v1931_v63 = vrot.slane %v1813_v22, 4 }
  0x7f   :  { %v1665_v20 = vsel %vm6972_vm8, %v6729_v19, %v1664_v48  ;;  %v662_v8 = vsel %vm661_vm1, %v658_v11, %v612_v14  ;;  %v664_v55 = vsel %vm663_vm2, %v660_v35, %v615_v31  ;;  %v6728_v45 = vrot.slane %v4405_v39, 2  ;;  %vm6974_vm4 = vmmov %vm6972_vm8  ;;  %v6976_v14 = vld [vmem:[#allocation18_spill] sm:$0xff] }
  0x80   :  { %v4418_v53 = vadd.f32 %v1665_v20, %v4224_v34  ;;  %vm665_vm9 = vcmp.lt.s32.totalorder %v662_v8, %v618_v2  ;;  %vm667_vm13 = vcmp.lt.s32.totalorder %v664_v55, %v621_v1  ;;  %v1816_v30 = vadd.f32 %v1669_v59, %v4236_v58 }
  0x81   :  { %v4423_v51 = vsel %vm864_vm7, 1.0, %v6973_v25  ;;  %v666_v3 = vsel %vm665_vm9, %v662_v8, %v618_v2  ;;  %v668_v49 = vsel %vm667_vm13, %v664_v55, %v621_v1  ;;  %v1670_v22 = vsel %vm6974_vm4, %v6728_v45, %v1669_v59  ;;  %vm867_vm9 = vmand %vm804_vm14, %vm4132_vm10 }
  0x82   :  { %v6724_v12 = vrot.slane %v4418_v53, 4  ;;  %vm669_vm5 = vcmp.lt.s32.totalorder %v666_v3, %v624_v28  ;;  %vm671_vm12 = vcmp.lt.s32.totalorder %v668_v49, %v627_v33  ;;  %v4430_v48 = vadd.f32 %v1670_v22, %v4405_v39 }
  0x83   :  { %v1936_v35 = vrot.slane %v1816_v30, 4  ;;  %vm6975_vm15 = vcmp.lt.s32.totalorder %v3584_v6, 16  ;;  %v670_v58 = vsel %vm669_vm5, %v666_v3, %v624_v28  ;;  %v672_v11 = vsel %vm671_vm12, %v668_v49, %v627_v33 }
  0x84   :  { %vm866_vm0 = vmand %vm803_vm11, %vm6975_vm15  ;;  %vm777_vm3 = vcmp.ge.s32.totalorder %v6976_v14, 0  ;;  %vm6977_vm6 = vcmask 1043456   ;;  %v6730_v59 = vrot.slane %v4227_v46, 1  ;;  %vm673_vm7 = vcmp.lt.s32.totalorder %v670_v58, %v630_v47 }
  0x85   :  { %v1932_v31 = vsel %vm6977_vm6, %v6724_v12, %v1931_v63  ;;  %vm675_vm1 = vcmp.lt.s32.totalorder %v672_v11, %v633_v4  ;;  %v6723_v30 = vrot.slane %v4430_v48, 4  ;;  %v674_v1 = vsel %vm673_vm7, %v670_v58, %v630_v47  ;;  %vm6979_vm8 = vmmov %vm6977_vm6 }
  0x86   :  { %v2059_v2 = vadd.f32 %v1932_v31, %v4418_v53  ;;  %v676_v20 = vsel %vm675_vm1, %v672_v11, %v633_v4  ;;  %v1407_v8 = vrot.slane %v4423_v51, 1  ;;  %v4445_v49 = vsel %vm866_vm0, 1.0, %v6973_v25 }
  0x87   :  { %vm677_vm11 = vcmp.lt.s32.totalorder %v674_v1, %v636_v24  ;;  %vm679_vm2 = vcmp.lt.s32.totalorder %v676_v20, %v639_v27  ;;  %v1937_v33 = vsel %vm6979_vm8, %v6723_v30, %v1936_v35  ;;  %vm6980_vm13 = vcmask 1046528  }
  0x88   :  { %v4448_v28 = vadd.f32 %v4185_v44, %v2059_v2  ;;  %v678_v47 = vsel %vm677_vm11, %v674_v1, %v636_v24  ;;  %v680_v4 = vsel %vm679_vm2, %v676_v20, %v639_v27  ;;  %v2061_v63 = vadd.f32 %v1937_v33, %v4430_v48  ;;  %vm6983_vm7 = vmmov %vm6980_vm13 }
  0x89   :  { %v1408_v55 = vsel %vm6980_vm13, %v6730_v59, %v1407_v8  ;;  %vm681_vm4 = vcmp.lt.s32.totalorder %v678_v47, %v4376_v60  ;;  %vm683_vm5 = vcmp.lt.s32.totalorder %v680_v4, %v4381_v37  ;;  %v1552_v22 = vadd.f32 %v4423_v51, %v1407_v8 }
  0x8a   :  { %6978 = vst [vmem:[#allocation18_spill] sm:$0xff] %v4448_v28  ;;  %2138 = vrot.lane.b32.xlu0 %v4448_v28, %s3529_s1  ;;  %v4466_v3 = vadd.f32 %v4227_v46, %v1408_v55  ;;  %v682_v24 = vsel %vm681_vm4, %v678_v47, %v4376_v60  ;;  %v684_v27 = vsel %vm683_vm5, %v680_v4, %v4381_v37  ;;  %v4475_v58 = vsel %vm867_vm9, 1.0, %v6973_v25 }
  0x8b   :  { %v4472_v35 = vadd.f32 %v4208_v42, %v2061_v63  ;;  %vm685_vm14 = vcmp.lt.s32.totalorder %v682_v24, %v4386_v29  ;;  %vm687_vm12 = vcmp.lt.s32.totalorder %v684_v27, %v4391_v23  ;;  %v1674_v31 = vrot.slane %v1552_v22, 2 }
  0x8c   :  { %v6725_v11 = vrot.slane %v4466_v3, 2  ;;  %v686_v2 = vsel %vm685_vm14, %v682_v24, %v4386_v29  ;;  %v688_v1 = vsel %vm687_vm12, %v684_v27, %v4391_v23  ;;  %v6727_v60 = vrot.slane %v4445_v49, 1 }
  0x8d   :  { %6981 = vst [vmem:[#allocation79_spill] sm:$0xff] %v4472_v35  ;;  %v1412_v37 = vrot.slane %v4475_v58, 1  ;;  %vm689_vm15 = vcmp.lt.s32.totalorder %v686_v2, %v4396_v26  ;;  %vm6982_vm0 = vcmask 1045504   ;;  %v1819_v8 = vadd.f32 %v1674_v31, %v1552_v22 }
  0x8e   :  { %2142 = vrot.lane.b32.xlu0 %v4472_v35, %s3529_s1  ;;  %v1675_v20 = vsel %vm6982_vm0, %v6725_v11, %v1674_v31  ;;  %vm806_vm6 = vcmp.eq.s32.totalorder %v4126_v0, 5  ;;  %v690_v29 = vsel %vm689_vm15, %v686_v2, %v4396_v26  ;;  %vm6984_vm1 = vcmp.lt.s32.totalorder %v3584_v6, 16 }
  0x8f   :  { %v4493_v23 = vadd.f32 %v1675_v20, %v4466_v3  ;;  %v1413_v33 = vsel %vm6983_vm7, %v6727_v60, %v1412_v37  ;;  %v1555_v47 = vadd.f32 %v4475_v58, %v1412_v37  ;;  %vm869_vm11 = vmand %vm806_vm6, %vm6984_vm1  ;;  %vm691_vm2 = vcmp.lt.s32.totalorder %v690_v29, %v688_v1 }
  0x90   :  { %vm6985_vm8 = vmmov %vm6984_vm1  ;;  %v1941_v26 = vrot.slane %v1819_v8, 4  ;;  %v4510_v63 = vadd.f32 %v4445_v49, %v1413_v33  ;;  %vm807_vm13 = vcmp.eq.s32.totalorder %v4138_v10, 5  ;;  %v4513_v55 = vsel %vm691_vm2, %v690_v29, %v688_v1 }
  0x91   :  { %vm4505_vm9 = vmand %vm777_vm3, %vm6985_vm8  ;;  %v6722_v22 = vrot.slane %v4493_v23, 4  ;;  %v1679_v24 = vrot.slane %v1555_v47, 2  ;;  %v4519_v14 = vsel %vm869_vm11, 1.0, %v6973_v25  ;;  %vm790_vm3 = vcmp.eq.s32.totalorder %v4513_v55, 0 }
  0x92   :  { %vm870_vm4 = vmand %vm807_vm13, %vm4132_vm10  ;;  %vm793_vm5 = vcmp.eq.s32.totalorder %v4513_v55, 1  ;;  %vm796_vm14 = vcmp.eq.s32.totalorder %v4513_v55, 2  ;;  %vm799_vm12 = vcmp.eq.s32.totalorder %v4513_v55, 3  ;;  %vm6988_vm0 = vcmask 1043456  }
  0x93   :  { %vm853_vm15 = vmand %vm790_vm3, %vm4505_vm9  ;;  %v1942_v27 = vsel %vm6988_vm0, %v6722_v22, %v1941_v26  ;;  %v6726_v31 = vrot.slane %v4510_v63, 2  ;;  %v1822_v2 = vadd.f32 %v1679_v24, %v1555_v47  ;;  %vm802_vm6 = vcmp.eq.s32.totalorder %v4513_v55, 4 }
  0x94   :  { %v4533_v1 = vsel %vm853_vm15, 1.0, %v6973_v25  ;;  %vm856_vm7 = vmand %vm793_vm5, %vm4505_vm9  ;;  %v2063_v37 = vadd.f32 %v1942_v27, %v4493_v23  ;;  %v4539_v20 = vsel %vm870_vm4, 1.0, %v6973_v25  ;;  %vm6989_vm11 = vcmask 1045504  }
  0x95   :  { %v1389_v29 = vrot.slane %v4533_v1, 1  ;;  %v4544_v33 = vsel %vm856_vm7, 1.0, %v6973_v25  ;;  %vm859_vm1 = vmand %vm796_vm14, %vm4505_vm9  ;;  %v1680_v47 = vsel %vm6989_vm11, %v6726_v31, %v1679_v24  ;;  %v1946_v26 = vrot.slane %v1822_v2, 4 }
  0x96   :  { %v1394_v27 = vrot.slane %v4544_v33, 1  ;;  %v4553_v22 = vsel %vm859_vm1, 1.0, %v6973_v25  ;;  %v4556_v30 = vadd.f32 %v4423_v51, %v2063_v37  ;;  %vm862_vm2 = vmand %vm799_vm12, %vm4505_vm9  ;;  %v4563_v12 = vadd.f32 %v1680_v47, %v4510_v63 }
  0x97   :  { %v6991_v11 = vrot.slane %v4155_v32, 1  ;;  %vm6992_vm8 = vcmask 1046528   ;;  %v1399_v2 = vrot.slane %v4553_v22, 1  ;;  %v4570_v31 = vsel %vm862_vm2, 1.0, %v6973_v25  ;;  %vm865_vm13 = vmand %vm802_vm6, %vm4505_vm9 }
  0x98   :  { %6990 = vst [vmem:[#allocation80_spill] sm:$0xff] %v4556_v30  ;;  %v1417_v37 = vrot.slane %v4539_v20, 1  ;;  %v6993_v47 = vrot.slane %v4179_v43, 1  ;;  %vm6994_vm4 = vmmov %vm6992_vm8  ;;  %2146 = vrot.lane.b32.xlu0 %v4556_v30, %s3529_s1  ;;  %v6995_v59 = vrot.slane %v4202_v15, 1  ;;  %v4590_v35 = vsel %vm865_vm13, 1.0, %v6973_v25 }
  0x99   :  { %v1391_v24 = vsel %vm6992_vm8, %v1389_v29, %v6991_v11  ;;  %v1404_v11 = vrot.slane %v4570_v31, 1  ;;  %vm6996_vm3 = vmmov %vm6994_vm4  ;;  %v6999_v28 = vrot.slane %v4227_v46, 1  ;;  %v1409_v57 = vrot.slane %v4590_v35, 1 }
  0x9a   :  { %v1541_v60 = vadd.f32 %v4533_v1, %v1391_v24  ;;  %v1396_v45 = vsel %vm6994_vm4, %v1394_v27, %v6993_v47  ;;  %v1401_v8 = vsel %vm6996_vm3, %v1399_v2, %v6995_v59  ;;  %v6997_v24 = vrot.slane %v4519_v14, 1  ;;  %vm6998_vm5 = vmmov %vm6996_vm3 }
  0x9b   :  { %v1544_v19 = vadd.f32 %v4544_v33, %v1396_v45  ;;  %v1547_v30 = vadd.f32 %v4553_v22, %v1401_v8  ;;  %vm7000_vm14 = vmmov %vm6996_vm3  ;;  %v7001_v45 = vrot.slane %v4563_v12, 4  ;;  %vm809_vm8 = vcmp.eq.s32.totalorder %v4126_v0, 6 }
  0x9c   :  { %v1418_v27 = vsel %vm6998_vm5, %v6997_v24, %v1417_v37  ;;  %v1656_v47 = vrot.slane %v1541_v60, 2  ;;  %v1406_v29 = vsel %vm7000_vm14, %v1404_v11, %v6999_v28  ;;  %vm7002_vm12 = vmmov %vm6988_vm0  ;;  %v7003_v24 = vrot.slane %v4205_v18, 2 }
  0x9d   :  { %v1947_v5 = vsel %vm7002_vm12, %v7001_v45, %v1946_v26  ;;  %v1661_v61 = vrot.slane %v1544_v19, 2  ;;  %v1550_v59 = vadd.f32 %v4570_v31, %v1406_v29  ;;  %vm7004_vm15 = vmmov %vm6989_vm11  ;;  %v1666_v8 = vrot.slane %v1547_v30, 2 }
  0x9e   :  { %v2065_v2 = vadd.f32 %v1947_v5, %v4563_v12  ;;  %v1658_v54 = vsel %vm7004_vm15, %v1656_v47, %v7003_v24  ;;  %v4609_v52 = vadd.f32 %v4519_v14, %v1418_v27  ;;  %v1558_v28 = vadd.f32 %v4539_v20, %v1417_v37  ;;  %vm7006_vm0 = vmmov %vm6989_vm11 }
  0x9f   :  { %v1808_v11 = vadd.f32 %v1658_v54, %v1541_v60  ;;  %v7005_v26 = vrot.slane %v4224_v34, 2  ;;  %v1671_v29 = vrot.slane %v1550_v59, 2  ;;  %v7008_v18 = vrot.slane %v4405_v39, 2  ;;  %vm7009_vm6 = vmmov %vm7006_vm0 }
  0xa0   :  { %v4616_v5 = vadd.f32 %v4475_v58, %v2065_v2  ;;  %v7010_v24 = vrot.slane %v4445_v49, 1  ;;  %vm7011_vm7 = vmmov %vm6996_vm3  ;;  %v1682_v37 = vrot.slane %v4609_v52, 2  ;;  %v7012_v34 = vrot.slane %v4466_v3, 2 }
  0xa1   :  { %v1663_v45 = vsel %vm7006_vm0, %v1661_v61, %v7005_v26  ;;  %v1668_v47 = vsel %vm7009_vm6, %v1666_v8, %v7008_v18  ;;  %v1923_v54 = vrot.slane %v1808_v11, 4  ;;  %vm7013_vm1 = vmmov %vm7006_vm0  ;;  %v1684_v8 = vrot.slane %v1558_v28, 2 }
  0xa2   :  { %7007 = vst [vmem:[#allocation81_spill] sm:$0xff] %v4616_v5  ;;  %v1811_v17 = vadd.f32 %v1663_v45, %v1544_v19  ;;  %v1411_v27 = vsel %vm7011_vm7, %v1409_v57, %v7010_v24  ;;  %v1814_v60 = vadd.f32 %v1668_v47, %v1547_v30  ;;  %v1673_v61 = vsel %vm7013_vm1, %v1671_v29, %v7012_v34  ;;  %vm7015_vm2 = vmmov %vm7002_vm12 }
  0xa3   :  { %2150 = vrot.lane.b32.xlu0 %v4616_v5, %s3529_s1  ;;  %v1553_v19 = vadd.f32 %v4590_v35, %v1411_v27  ;;  %v1817_v2 = vadd.f32 %v1673_v61, %v1550_v59  ;;  %vm805_vm11 = vcmp.eq.s32.totalorder %v4513_v55, 5  ;;  %v7014_v57 = vrot.slane %v4251_v21, 4  ;;  %vm7017_vm13 = vmmov %vm7015_vm2 }
  0xa4   :  { %v1928_v39 = vrot.slane %v1811_v17, 4  ;;  %v1933_v45 = vrot.slane %v1814_v60, 4  ;;  %v7016_v29 = vrot.slane %v4418_v53, 4  ;;  %vm7018_vm4 = vmmov %vm7006_vm0  ;;  %v7019_v27 = vrot.slane %v4430_v48, 4 }
  0xa5   :  { %v1925_v26 = vsel %vm7015_vm2, %v1923_v54, %v7014_v57  ;;  %v1676_v30 = vrot.slane %v1553_v19, 2  ;;  %v1938_v47 = vrot.slane %v1817_v2, 4  ;;  %v1685_v59 = vsel %vm7018_vm4, %v1682_v37, %v1684_v8  ;;  %vm7020_vm3 = vmmov %vm7015_vm2 }
  0xa6   :  { %v2056_v3 = vadd.f32 %v1925_v26, %v1808_v11  ;;  %v1930_v18 = vsel %vm7017_vm13, %v1928_v39, %v7016_v29  ;;  %v1935_v21 = vsel %vm7020_vm3, %v1933_v45, %v7019_v27  ;;  %v7021_v54 = vrot.slane %v4510_v63, 2  ;;  %vm7022_vm5 = vmmov %vm7006_vm0 }
  0xa7   :  { %v2058_v24 = vadd.f32 %v1930_v18, %v1811_v17  ;;  %v4649_v11 = vadd.f32 %v1685_v59, %v4609_v52  ;;  %vm868_vm14 = vmand %vm805_vm11, %vm4505_vm9  ;;  %v2060_v61 = vadd.f32 %v1935_v21, %v1814_v60  ;;  %v7024_v17 = vrot.slane %v4493_v23, 4 }
  0xa8   :  { %v1678_v34 = vsel %vm7022_vm5, %v1676_v30, %v7021_v54  ;;  %v4654_v53 = vadd.f32 %v4155_v32, %v2056_v3  ;;  %vm7025_vm12 = vmmov %vm7015_vm2  ;;  %vm7026_vm15 = vcmp.lt.s32.totalorder %v3584_v6, 16  ;;  %v1825_v26 = vadd.f32 %v1684_v8, %v1558_v28 }
  0xa9   :  { %v1940_v48 = vsel %vm7025_vm12, %v1938_v47, %v7024_v17  ;;  %v1820_v39 = vadd.f32 %v1678_v34, %v1553_v19  ;;  %vm872_vm0 = vmand %vm809_vm8, %vm7026_vm15  ;;  %v4662_v63 = vadd.f32 %v4179_v43, %v2058_v24  ;;  %v6749_v45 = vrot.slane %v4649_v11, 4 }
  0xaa   :  { %7023 = vst [vmem:[#allocation82_spill] sm:$0xff] %v4654_v53  ;;  %v2062_v57 = vadd.f32 %v1940_v48, %v1817_v2  ;;  %2132 = vrot.lane.b32.xlu1 %v4654_v53, %s3529_s1  ;;  %v4668_v60 = vadd.f32 %v4202_v15, %v2060_v61  ;;  %v4671_v30 = vsel %vm868_vm14, 1.0, %v6973_v25  ;;  %vm810_vm6 = vcmp.eq.s32.totalorder %v4138_v10, 6  ;;  %vm7031_vm1 = vmmov %vm7015_vm2 }
  0xab   :  { %7027 = vst [vmem:[#allocation83_spill] sm:$0xff] %v4662_v63  ;;  %v1943_v23 = vrot.slane %v1820_v39, 4  ;;  %v1951_v3 = vrot.slane %v1825_v26, 4  ;;  %v1414_v28 = vrot.slane %v4671_v30, 1  ;;  %vm873_vm7 = vmand %vm810_vm6, %vm4132_vm10  ;;  %v4681_v2 = vsel %vm872_vm0, 1.0, %v6973_v25 }
  0xac   :  { %7028 = vst [vmem:[#allocation84_spill] sm:$0xff] %v4668_v60  ;;  %v4675_v19 = vadd.f32 %v4227_v46, %v2062_v57  ;;  %v7030_v8 = vrot.slane %v4563_v12, 4  ;;  %v4687_v18 = vsel %vm873_vm7, 1.0, %v6973_v25  ;;  %v1420_v47 = vrot.slane %v4681_v2, 1  ;;  %vm7032_vm2 = vmmov %vm7031_vm1 }
  0xad   :  { %vm808_vm11 = vcmp.eq.s32.totalorder %v4513_v55, 6  ;;  %v1952_v24 = vsel %vm7032_vm2, %v6749_v45, %v1951_v3  ;;  %v7033_v27 = vrot.slane %v4519_v14, 1  ;;  %vm7034_vm8 = vcmask 1046528   ;;  %vm7037_vm5 = vmmov %vm7026_vm15 }
  0xae   :  { %7029 = vst [vmem:[#allocation85_spill] sm:$0xff] %v4675_v19  ;;  %v1945_v29 = vsel %vm7031_vm1, %v1943_v23, %v7030_v8  ;;  %v1422_v12 = vrot.slane %v4687_v18, 1  ;;  %vm871_vm13 = vmand %vm808_vm11, %vm4505_vm9  ;;  %2136 = vrot.lane.b32.xlu1 %v4662_v63, %s3529_s1  ;;  %v2067_v54 = vadd.f32 %v1952_v24, %v4649_v11  ;;  %vm812_vm4 = vcmp.eq.s32.totalorder %v4126_v0, 7 }
  0xaf   :  { %v2064_v59 = vadd.f32 %v1945_v29, %v1820_v39  ;;  %v1416_v21 = vsel %vm7034_vm8, %v1414_v28, %v7033_v27  ;;  %v4705_v61 = vsel %vm871_vm13, 1.0, %v6973_v25  ;;  %vm7036_vm3 = vmmov %vm7034_vm8  ;;  %vm813_vm12 = vcmp.eq.s32.totalorder %v4138_v10, 7 }
  0xb0   :  { %v1556_v34 = vadd.f32 %v4671_v30, %v1416_v21  ;;  %v1423_v48 = vsel %vm7036_vm3, %v1420_v47, %v1422_v12  ;;  %v1561_v39 = vadd.f32 %v4687_v18, %v1422_v12  ;;  %v1419_v57 = vrot.slane %v4705_v61, 1  ;;  %vm875_vm14 = vmand %vm812_vm4, %vm7037_vm5 }
  0xb1   :  { %v4709_v17 = vadd.f32 %v4445_v49, %v2064_v59  ;;  %v4717_v26 = vadd.f32 %v4539_v20, %v2067_v54  ;;  %v1560_v3 = vadd.f32 %v4681_v2, %v1423_v48  ;;  %vm7039_vm15 = vmmov %vm7036_vm3  ;;  %v4725_v29 = vsel %vm875_vm14, 1.0, %v6973_v25 }
  0xb2   :  { %v1681_v23 = vrot.slane %v1556_v34, 2  ;;  %v1689_v28 = vrot.slane %v1561_v39, 2  ;;  %v1421_v8 = vsel %vm7039_vm15, %v1419_v57, %v1420_v47  ;;  %vm876_vm0 = vmand %vm813_vm12, %vm4132_vm10  ;;  %vm811_vm6 = vcmp.eq.s32.totalorder %v4513_v55, 7  ;;  %2140 = vrot.lane.b32.xlu1 %v4668_v60, %s3529_s1 }
  0xb3   :  { %7035 = vst [vmem:[#allocation86_spill] sm:$0xff] %v4709_v17  ;;  %7038 = vst [vmem:[#allocation87_spill] sm:$0xff] %v4717_v26  ;;  %2154 = vrot.lane.b32.xlu0 %v4717_v26, %s3529_s1  ;;  %vm7040_vm7 = vcmask 1045504   ;;  %v1687_v24 = vrot.slane %v1560_v3, 2  ;;  %v1559_v47 = vadd.f32 %v4705_v61, %v1421_v8  ;;  %v4737_v27 = vsel %vm876_vm0, 1.0, %v6973_v25 }
  0xb4   :  { %v1683_v59 = vsel %vm7040_vm7, %v1681_v23, %v1682_v37  ;;  %vm874_vm1 = vmand %vm811_vm6, %vm4505_vm9  ;;  %v1828_v12 = vadd.f32 %v1689_v28, %v1561_v39  ;;  %v1425_v54 = vrot.slane %v4725_v29, 1  ;;  %v1427_v48 = vrot.slane %v4737_v27, 1 }
  0xb5   :  { %v1823_v21 = vadd.f32 %v1683_v59, %v1556_v34  ;;  %vm7041_vm11 = vmmov %vm7040_vm7  ;;  %v1686_v52 = vrot.slane %v1559_v47, 2  ;;  %v4745_v37 = vsel %vm874_vm1, 1.0, %v6973_v25  ;;  %vm815_vm2 = vcmp.eq.s32.totalorder %v4126_v0, 8 }
  0xb6   :  { %v1690_v57 = vsel %vm7041_vm11, %v1687_v24, %v1689_v28  ;;  %v1956_v45 = vrot.slane %v1828_v12, 4  ;;  %vm7042_vm8 = vmmov %vm7036_vm3  ;;  %2144 = vrot.lane.b32.xlu1 %v4675_v19, %s3529_s1  ;;  %v1564_v28 = vadd.f32 %v4737_v27, %v1427_v48  ;;  %v1424_v59 = vrot.slane %v4745_v37, 1 }
  0xb7   :  { %v1948_v23 = vrot.slane %v1823_v21, 4  ;;  %v1827_v8 = vadd.f32 %v1690_v57, %v1560_v3  ;;  %v1428_v26 = vsel %vm7042_vm8, %v1425_v54, %v1427_v48  ;;  %vm7043_vm13 = vmmov %vm7040_vm7  ;;  %v7045_v5 = vrot.slane %v4649_v11, 4 }
  0xb8   :  { %v1688_v34 = vsel %vm7043_vm13, %v1686_v52, %v1687_v24  ;;  %v1563_v39 = vadd.f32 %v4725_v29, %v1428_v26  ;;  %vm7044_vm4 = vmmov %vm7037_vm5  ;;  %vm7046_vm5 = vcmask 1043456   ;;  %vm816_vm14 = vcmp.eq.s32.totalorder %v4138_v10, 8 }
  0xb9   :  { %vm878_vm3 = vmand %vm815_vm2, %vm7044_vm4  ;;  %v1950_v3 = vsel %vm7046_vm5, %v1948_v23, %v7045_v5  ;;  %v1954_v12 = vrot.slane %v1827_v8, 4  ;;  %v1826_v57 = vadd.f32 %v1688_v34, %v1559_v47  ;;  %v1694_v24 = vrot.slane %v1564_v28, 2 }
  0xba   :  { %v2066_v19 = vadd.f32 %v1950_v3, %v1823_v21  ;;  %v1692_v60 = vrot.slane %v1563_v39, 2  ;;  %vm7047_vm12 = vmmov %vm7042_vm8  ;;  %v4767_v11 = vsel %vm878_vm3, 1.0, %v6973_v25  ;;  %2148 = vrot.lane.b32.xlu1 %v4709_v17, %s3529_s1  ;;  %vm814_vm11 = vcmp.eq.s32.totalorder %v4513_v55, 8 }
  0xbb   :  { %v1426_v26 = vsel %vm7047_vm12, %v1424_v59, %v1425_v54  ;;  %vm879_vm15 = vmand %vm816_vm14, %vm4132_vm10  ;;  %v1953_v52 = vrot.slane %v1826_v57, 4  ;;  %v1831_v54 = vadd.f32 %v1694_v24, %v1564_v28  ;;  %v1430_v17 = vrot.slane %v4767_v11, 1 }
  0xbc   :  { %vm7048_vm0 = vmmov %vm7046_vm5  ;;  %v1562_v63 = vadd.f32 %v4745_v37, %v1426_v26  ;;  %v4772_v5 = vadd.f32 %v4519_v14, %v2066_v19  ;;  %v4777_v59 = vsel %vm879_vm15, 1.0, %v6973_v25  ;;  %vm818_vm8 = vcmp.eq.s32.totalorder %v4126_v0, 9 }
  0xbd   :  { %v1957_v48 = vsel %vm7048_vm0, %v1954_v12, %v1956_v45  ;;  %vm7050_vm6 = vmmov %vm7040_vm7  ;;  %v1961_v36 = vrot.slane %v1831_v54, 4  ;;  %vm819_vm13 = vcmp.eq.s32.totalorder %v4138_v10, 9  ;;  %vm7057_vm5 = vcmp.lt.s32.totalorder %v3584_v6, 16 }
  0xbe   :  { %7049 = vst [vmem:[#allocation88_spill] sm:$0xff] %v4772_v5  ;;  %v2069_v47 = vadd.f32 %v1957_v48, %v1827_v8  ;;  %v1695_v21 = vsel %vm7050_vm6, %v1692_v60, %v1694_v24  ;;  %vm7051_vm7 = vmmov %vm7048_vm0  ;;  %v1691_v45 = vrot.slane %v1562_v63, 2  ;;  %v1432_v48 = vrot.slane %v4777_v59, 1  ;;  %2152 = vrot.lane.b32.xlu1 %v4772_v5, %s3529_s1 }
  0xbf   :  { %v1955_v23 = vsel %vm7051_vm7, %v1953_v52, %v1954_v12  ;;  %v1830_v34 = vadd.f32 %v1695_v21, %v1563_v39  ;;  %vm7053_vm1 = vmmov %vm7050_vm6  ;;  %vm817_vm15 = vcmp.eq.s32.totalorder %v4513_v55, 9 }
  0xc0   :  { %v4780_v3 = vadd.f32 %v4687_v18, %v2069_v47  ;;  %v2068_v26 = vadd.f32 %v1955_v23, %v1826_v57  ;;  %v1693_v8 = vsel %vm7053_vm1, %v1691_v45, %v1692_v60  ;;  %vm877_vm2 = vmand %vm814_vm11, %vm4505_vm9  ;;  %v1567_v57 = vadd.f32 %v4777_v59, %v1432_v48 }
  0xc1   :  { %v1959_v19 = vrot.slane %v1830_v34, 4  ;;  %v1829_v28 = vadd.f32 %v1693_v8, %v1562_v63  ;;  %vm7055_vm4 = vmmov %vm7048_vm0  ;;  %v4801_v24 = vsel %vm877_vm2, 1.0, %v6973_v25  ;;  %vm821_vm11 = vcmp.eq.s32.totalorder %v4126_v0, 10 }
  0xc2   :  { %7052 = vst [vmem:[#allocation89_spill] sm:$0xff] %v4780_v3  ;;  %2158 = vrot.lane.b32.xlu0 %v4780_v3, %s3529_s1  ;;  %v4791_v39 = vadd.f32 %v4681_v2, %v2068_v26  ;;  %vm7056_vm3 = vmmov %vm7047_vm12  ;;  %v1429_v21 = vrot.slane %v4801_v24, 1 }
  0xc3   :  { %v1962_v60 = vsel %vm7055_vm4, %v1959_v19, %v1961_v36  ;;  %v1433_v12 = vsel %vm7056_vm3, %v1430_v17, %v1432_v48  ;;  %vm881_vm14 = vmand %vm818_vm8, %vm7057_vm5  ;;  %v1958_v52 = vrot.slane %v1829_v28, 4  ;;  %v1699_v36 = vrot.slane %v1567_v57, 2 }
  0xc4   :  { %7054 = vst [vmem:[#allocation90_spill] sm:$0xff] %v4791_v39  ;;  %v2071_v63 = vadd.f32 %v1962_v60, %v1830_v34  ;;  %v1566_v47 = vadd.f32 %v4767_v11, %v1433_v12  ;;  %vm882_vm12 = vmand %vm819_vm13, %vm4132_vm10  ;;  %v4810_v54 = vsel %vm881_vm14, 1.0, %v6973_v25  ;;  %2156 = vrot.lane.b32.xlu1 %v4791_v39, %s3529_s1  ;;  %vm822_vm4 = vcmp.eq.s32.totalorder %v4138_v10, 10 }
  0xc5   :  { %v4813_v23 = vsel %vm882_vm12, 1.0, %v6973_v25  ;;  %v1960_v45 = vsel %vm7048_vm0, %v1958_v52, %v1959_v19  ;;  %vm7060_vm6 = vmmov %vm7056_vm3  ;;  %v1834_v60 = vadd.f32 %v1699_v36, %v1567_v57  ;;  %v1435_v3 = vrot.slane %v4810_v54, 1 }
  0xc6   :  { %7058 = vst [vmem:[#allocation91_spill] sm:$0xff] %v4813_v23  ;;  %v4819_v34 = vadd.f32 %v4737_v27, %v2071_v63  ;;  %v1697_v26 = vrot.slane %v1566_v47, 2  ;;  %v1431_v8 = vsel %vm7060_vm6, %v1429_v21, %v1430_v17  ;;  %vm880_vm7 = vmand %vm817_vm15, %vm4505_vm9  ;;  %v2070_v48 = vadd.f32 %v1960_v45, %v1829_v28 }
  0xc7   :  { %v1565_v12 = vadd.f32 %v4801_v24, %v1431_v8  ;;  %v1437_v39 = vrot.slane %v4813_v23, 1  ;;  %v4832_v19 = vsel %vm880_vm7, 1.0, %v6973_v25  ;;  %v1966_v57 = vrot.slane %v1834_v60, 4  ;;  %vm7062_vm2 = vmmov %vm7057_vm5 }
  0xc8   :  { %7059 = vst [vmem:[#allocation92_spill] sm:$0xff] %v4819_v34  ;;  %2162 = vrot.lane.b32.xlu0 %v4819_v34, %s3529_s1  ;;  %v1700_v63 = vsel %vm7053_vm1, %v1697_v26, %v1699_v36  ;;  %v4836_v17 = vadd.f32 %v4725_v29, %v2070_v48  ;;  %vm884_vm8 = vmand %vm821_vm11, %vm7062_vm2  ;;  %v1434_v45 = vrot.slane %v4832_v19, 1 }
  0xc9   :  { %v1833_v28 = vadd.f32 %v1700_v63, %v1566_v47  ;;  %v1696_v52 = vrot.slane %v1565_v12, 2  ;;  %vm7063_vm13 = vmmov %vm7056_vm3  ;;  %v1570_v36 = vadd.f32 %v4813_v23, %v1437_v39  ;;  %v4851_v60 = vsel %vm884_vm8, 1.0, %v6973_v25 }
  0xca   :  { %7061 = vst [vmem:[#allocation93_spill] sm:$0xff] %v4836_v17  ;;  %v1438_v21 = vsel %vm7063_vm13, %v1435_v3, %v1437_v39  ;;  %2160 = vrot.lane.b32.xlu1 %v4836_v17, %s3529_s1  ;;  %vm7064_vm3 = vmmov %vm7053_vm1  ;;  %vm7074_vm8 = vcmp.lt.s32.totalorder %v3584_v6, 16 }
  0xcb   :  { %v1964_v8 = vrot.slane %v1833_v28, 4  ;;  %v1698_v48 = vsel %vm7064_vm3, %v1696_v52, %v1697_v26  ;;  %v1569_v47 = vadd.f32 %v4810_v54, %v1438_v21  ;;  %vm885_vm5 = vmand %vm822_vm4, %vm4132_vm10  ;;  %7065 = vst [vmem:[#allocation94_spill] sm:$0xff] %v4851_v60  ;;  %v1704_v39 = vrot.slane %v1570_v36, 2 }
  0xcc   :  { %v1832_v63 = vadd.f32 %v1698_v48, %v1565_v12  ;;  %vm7066_vm14 = vmmov %vm7060_vm6  ;;  %v4855_v5 = vsel %vm885_vm5, 1.0, %v6973_v25  ;;  %v1440_v52 = vrot.slane %v4851_v60, 1  ;;  %vm824_vm6 = vcmp.eq.s32.totalorder %v4126_v0, 11 }
  0xcd   :  { %v1436_v34 = vsel %vm7066_vm14, %v1434_v45, %v1435_v3  ;;  %7067 = vst [vmem:[#allocation95_spill] sm:$0xff] %v4855_v5  ;;  %vm7068_vm12 = vmmov %vm7048_vm0  ;;  %v1702_v50 = vrot.slane %v1569_v47, 2  ;;  %v1837_v38 = vadd.f32 %v1704_v39, %v1570_v36  ;;  %v1442_v40 = vrot.slane %v4855_v5, 1 }
  0xce   :  { %v1967_v17 = vsel %vm7068_vm12, %v1964_v8, %v1966_v57  ;;  %v1568_v26 = vadd.f32 %v4832_v19, %v1436_v34  ;;  %v1963_v41 = vrot.slane %v1832_v63, 4  ;;  %vm7069_vm15 = vmmov %vm7053_vm1  ;;  %vm820_vm0 = vcmp.eq.s32.totalorder %v4513_v55, 10 }
  0xcf   :  { %v2073_v21 = vadd.f32 %v1967_v17, %v1833_v28  ;;  %v1705_v12 = vsel %vm7069_vm15, %v1702_v50, %v1704_v39  ;;  %vm7071_vm7 = vmmov %vm7068_vm12  ;;  %v1971_v45 = vrot.slane %v1837_v38, 4  ;;  %v1573_v39 = vadd.f32 %v4855_v5, %v1442_v40 }
  0xd0   :  { %v1701_v48 = vrot.slane %v1568_v26, 2  ;;  %v1965_v57 = vsel %vm7071_vm7, %v1963_v41, %v1964_v8  ;;  %v1836_v34 = vadd.f32 %v1705_v12, %v1569_v47  ;;  %vm883_vm1 = vmand %vm820_vm0, %vm4505_vm9  ;;  %vm825_vm4 = vcmp.eq.s32.totalorder %v4138_v10, 11 }
  0xd1   :  { %v4865_v3 = vadd.f32 %v4777_v59, %v2073_v21  ;;  %v2072_v17 = vadd.f32 %v1965_v57, %v1832_v63  ;;  %vm7072_vm11 = vmmov %vm7064_vm3  ;;  %v4879_v8 = vsel %vm883_vm1, 1.0, %v6973_v25  ;;  %vm823_vm0 = vcmp.eq.s32.totalorder %v4513_v55, 11 }
  0xd2   :  { %v1703_v28 = vsel %vm7072_vm11, %v1701_v48, %v1702_v50  ;;  %vm7073_vm2 = vmmov %vm7063_vm13  ;;  %v1969_v21 = vrot.slane %v1836_v34, 4  ;;  %7075 = vst [vmem:[#allocation97_spill] sm:$0xff] %v4879_v8  ;;  %v1709_v50 = vrot.slane %v1573_v39, 2  ;;  %v1439_v63 = vrot.slane %v4879_v8, 1 }
  0xd3   :  { %7070 = vst [vmem:[#allocation96_spill] sm:$0xff] %v4865_v3  ;;  %v1443_v36 = vsel %vm7073_vm2, %v1440_v52, %v1442_v40  ;;  %vm887_vm13 = vmand %vm824_vm6, %vm7074_vm8  ;;  %2166 = vrot.lane.b32.xlu0 %v4865_v3, %s3529_s1  ;;  %v1835_v41 = vadd.f32 %v1703_v28, %v1568_v26  ;;  %v4882_v47 = vadd.f32 %v4767_v11, %v2072_v17  ;;  %vm827_vm6 = vcmp.eq.s32.totalorder %v4126_v0, 12 }
  0xd4   :  { %v1572_v38 = vadd.f32 %v4851_v60, %v1443_v36  ;;  %vm7077_vm3 = vmmov %vm7071_vm7  ;;  %v4890_v26 = vsel %vm887_vm13, 1.0, %v6973_v25  ;;  %v1840_v17 = vadd.f32 %v1709_v50, %v1573_v39  ;;  %vm828_vm1 = vcmp.eq.s32.totalorder %v4138_v10, 12 }
  0xd5   :  { %7076 = vst [vmem:[#allocation98_spill] sm:$0xff] %v4882_v47  ;;  %v1972_v40 = vsel %vm7077_vm3, %v1969_v21, %v1971_v45  ;;  %v1968_v12 = vrot.slane %v1835_v41, 4  ;;  %vm888_vm5 = vmand %vm825_vm4, %vm4132_vm10  ;;  %2164 = vrot.lane.b32.xlu1 %v4882_v47, %s3529_s1  ;;  %v1445_v9 = vrot.slane %v4890_v26, 1  ;;  %vm7088_vm13 = vcmp.lt.s32.totalorder %v3584_v6, 16 }
  0xd6   :  { %v1707_v48 = vrot.slane %v1572_v38, 2  ;;  %7078 = vst [vmem:[#allocation99_spill] sm:$0xff] %v4890_v26  ;;  %v2075_v57 = vadd.f32 %v1972_v40, %v1836_v34  ;;  %vm7079_vm14 = vmmov %vm7073_vm2  ;;  %v4896_v36 = vsel %vm888_vm5, 1.0, %v6973_v25  ;;  %v1976_v34 = vrot.slane %v1840_v17, 4 }
  0xd7   :  { %v1441_v28 = vsel %vm7079_vm14, %v1439_v63, %v1440_v52  ;;  %7080 = vst [vmem:[#allocation100_spill] sm:$0xff] %v4896_v36  ;;  %vm7081_vm12 = vmmov %vm7077_vm3  ;;  %v1447_v52 = vrot.slane %v4896_v36, 1 }
  0xd8   :  { %v1970_v45 = vsel %vm7081_vm12, %v1968_v12, %v1969_v21  ;;  %vm7082_vm15 = vmmov %vm7072_vm11  ;;  %v1571_v7 = vadd.f32 %v4879_v8, %v1441_v28  ;;  %v4903_v13 = vadd.f32 %v4813_v23, %v2075_v57  ;;  %vm826_vm11 = vcmp.eq.s32.totalorder %v4513_v55, 12 }
  0xd9   :  { %v1710_v3 = vsel %vm7082_vm15, %v1707_v48, %v1709_v50  ;;  %v2074_v53 = vadd.f32 %v1970_v45, %v1835_v41  ;;  %vm886_vm7 = vmand %vm823_vm0, %vm4505_vm9 }
  0xda   :  { %7083 = vst [vmem:[#allocation101_spill] sm:$0xff] %v4903_v13  ;;  %v1839_v47 = vadd.f32 %v1710_v3, %v1572_v38  ;;  %v1706_v39 = vrot.slane %v1571_v7, 2  ;;  %2170 = vrot.lane.b32.xlu0 %v4903_v13, %s3529_s1  ;;  %vm7085_vm2 = vmmov %vm7082_vm15  ;;  %v1576_v38 = vadd.f32 %v4896_v36, %v1447_v52  ;;  %v4921_v63 = vsel %vm886_vm7, 1.0, %v6973_v25 }
  0xdb   :  { %v4911_v21 = vadd.f32 %v4810_v54, %v2074_v53  ;;  %vm7086_vm8 = vmmov %vm7079_vm14  ;;  %7087 = vst [vmem:[#allocation103_spill] sm:$0xff] %v4921_v63 }
  0xdc   :  { %v1974_v50 = vrot.slane %v1839_v47, 4  ;;  %v1708_v3 = vsel %vm7085_vm2, %v1706_v39, %v1707_v48  ;;  %v1448_v41 = vsel %vm7086_vm8, %v1445_v9, %v1447_v52  ;;  %vm890_vm4 = vmand %vm827_vm6, %vm7088_vm13  ;;  %v1444_v48 = vrot.slane %v4921_v63, 1 }
  0xdd   :  { %7084 = vst [vmem:[#allocation102_spill] sm:$0xff] %v4911_v21  ;;  %2168 = vrot.lane.b32.xlu1 %v4911_v21, %s3529_s1  ;;  %v1838_v40 = vadd.f32 %v1708_v3, %v1571_v7  ;;  %v1575_v12 = vadd.f32 %v4890_v26, %v1448_v41  ;;  %vm891_vm5 = vmand %vm828_vm1, %vm4132_vm10  ;;  %v1714_v17 = vrot.slane %v1576_v38, 2  ;;  %v4933_v28 = vsel %vm890_vm4, 1.0, %v6973_v25 }
  0xde   :  { %v1977_v53 = vsel %vm7077_vm3, %v1974_v50, %v1976_v34  ;;  %7089 = vst [vmem:[#allocation104_spill] sm:$0xff] %v4933_v28  ;;  %v4936_v45 = vsel %vm891_vm5, 1.0, %v6973_v25  ;;  %vm889_vm14 = vmand %vm826_vm11, %vm4505_vm9  ;;  %v1450_v52 = vrot.slane %v4933_v28, 1  ;;  %vm830_vm6 = vcmp.eq.s32.totalorder %v4126_v0, 13 }
  0xdf   :  { %v2077_v57 = vadd.f32 %v1977_v53, %v1839_v47  ;;  %7090 = vst [vmem:[#allocation105_spill] sm:$0xff] %v4936_v45  ;;  %v1973_v7 = vrot.slane %v1838_v40, 4  ;;  %v1712_v34 = vrot.slane %v1575_v12, 2  ;;  %vm7091_vm12 = vmmov %vm7086_vm8  ;;  %v1843_v3 = vadd.f32 %v1714_v17, %v1576_v38 }
  0xe0   :  { %v1446_v39 = vsel %vm7091_vm12, %v1444_v48, %v1445_v9  ;;  %v1452_v53 = vrot.slane %v4936_v45, 1  ;;  %vm7093_vm15 = vmmov %vm7077_vm3  ;;  %v4952_v62 = vsel %vm889_vm14, 1.0, %v6973_v25  ;;  %vm829_vm14 = vcmp.eq.s32.totalorder %v4513_v55, 13 }
  0xe1   :  { %v4945_v47 = vadd.f32 %v4855_v5, %v2077_v57  ;;  %v1574_v41 = vadd.f32 %v4921_v63, %v1446_v39  ;;  %v1975_v21 = vsel %vm7093_vm15, %v1973_v7, %v1974_v50  ;;  %vm7094_vm0 = vmmov %vm7085_vm2  ;;  %7095 = vst [vmem:[#allocation107_spill] sm:$0xff] %v4952_v62  ;;  %v1981_v57 = vrot.slane %v1843_v3, 4 }
  0xe2   :  { %v1715_v13 = vsel %vm7094_vm0, %v1712_v34, %v1714_v17  ;;  %v2076_v9 = vadd.f32 %v1975_v21, %v1838_v40  ;;  %vm7096_vm7 = vmmov %vm7088_vm13  ;;  %v1579_v50 = vadd.f32 %v4936_v45, %v1452_v53  ;;  %v1449_v17 = vrot.slane %v4952_v62, 1 }
  0xe3   :  { %7092 = vst [vmem:[#allocation106_spill] sm:$0xff] %v4945_v47  ;;  %2174 = vrot.lane.b32.xlu0 %v4945_v47, %s3529_s1  ;;  %v1842_v48 = vadd.f32 %v1715_v13, %v1575_v12  ;;  %v1711_v38 = vrot.slane %v1574_v41, 2  ;;  %vm893_vm1 = vmand %vm830_vm6, %vm7096_vm7  ;;  %vm831_vm2 = vcmp.eq.s32.totalorder %v4138_v10, 13  ;;  %vm833_vm7 = vcmp.eq.s32.totalorder %v4126_v0, 14 }
  0xe4   :  { %vm7097_vm11 = vmmov %vm7086_vm8  ;;  %v4964_v7 = vadd.f32 %v4851_v60, %v2076_v9  ;;  %v1719_v12 = vrot.slane %v1579_v50, 2 }
  0xe5   :  { %v1453_v39 = vsel %vm7097_vm11, %v1450_v52, %v1452_v53  ;;  %v1979_v5 = vrot.slane %v1842_v48, 4  ;;  %vm7099_vm8 = vmmov %vm7094_vm0  ;;  %v4972_v53 = vsel %vm893_vm1, 1.0, %v6973_v25 }
  0xe6   :  { %7098 = vst [vmem:[#allocation108_spill] sm:$0xff] %v4964_v7  ;;  %v1713_v21 = vsel %vm7099_vm8, %v1711_v38, %v1712_v34  ;;  %v1578_v13 = vadd.f32 %v4933_v28, %v1453_v39  ;;  %vm894_vm13 = vmand %vm831_vm2, %vm4132_vm10  ;;  %2172 = vrot.lane.b32.xlu1 %v4964_v7, %s3529_s1  ;;  %vm7110_vm2 = vcmp.lt.s32.totalorder %v3584_v6, 16 }
  0xe7   :  { %v1841_v40 = vadd.f32 %v1713_v21, %v1574_v41  ;;  %vm7100_vm4 = vmmov %vm7097_vm11  ;;  %7101 = vst [vmem:[#allocation109_spill] sm:$0xff] %v4972_v53  ;;  %v1982_v9 = vsel %vm7077_vm3, %v1979_v5, %v1981_v57  ;;  %v4979_v38 = vsel %vm894_vm13, 1.0, %v6973_v25  ;;  %v1846_v41 = vadd.f32 %v1719_v12, %v1579_v50 }
  0xe8   :  { %v1451_v3 = vsel %vm7100_vm4, %v1449_v17, %v1450_v52  ;;  %v1717_v47 = vrot.slane %v1578_v13, 2  ;;  %7102 = vst [vmem:[#allocation110_spill] sm:$0xff] %v4979_v38  ;;  %v2079_v39 = vadd.f32 %v1982_v9, %v1842_v48  ;;  %v1455_v21 = vrot.slane %v4972_v53, 1  ;;  %vm7103_vm5 = vmmov %vm7094_vm0 }
  0xe9   :  { %v1577_v34 = vadd.f32 %v4952_v62, %v1451_v3  ;;  %v1978_v60 = vrot.slane %v1841_v40, 4  ;;  %v1457_v8 = vrot.slane %v4979_v38, 1  ;;  %vm7105_vm12 = vmmov %vm7077_vm3  ;;  %v1986_v62 = vrot.slane %v1846_v41, 4 }
  0xea   :  { %v1720_v52 = vsel %vm7103_vm5, %v1717_v47, %v1719_v12  ;;  %v4986_v57 = vadd.f32 %v4896_v36, %v2079_v39  ;;  %vm892_vm15 = vmand %vm829_vm14, %vm4505_vm9  ;;  %vm834_vm11 = vcmp.eq.s32.totalorder %v4138_v10, 14  ;;  %vm832_vm14 = vcmp.eq.s32.totalorder %v4513_v55, 14 }
  0xeb   :  { %v1716_v17 = vrot.slane %v1577_v34, 2  ;;  %v1980_v3 = vsel %vm7105_vm12, %v1978_v60, %v1979_v5  ;;  %v1845_v7 = vadd.f32 %v1720_v52, %v1578_v13  ;;  %vm7106_vm6 = vmmov %vm7100_vm4  ;;  %v1582_v9 = vadd.f32 %v4979_v38, %v1457_v8 }
  0xec   :  { %7104 = vst [vmem:[#allocation111_spill] sm:$0xff] %v4986_v57  ;;  %v2078_v48 = vadd.f32 %v1980_v3, %v1841_v40  ;;  %v1458_v12 = vsel %vm7106_vm6, %v1455_v21, %v1457_v8  ;;  %2178 = vrot.lane.b32.xlu0 %v4986_v57, %s3529_s1  ;;  %v4998_v5 = vsel %vm892_vm15, 1.0, %v6973_v25  ;;  %vm7109_vm1 = vmmov %vm7077_vm3  ;;  %vm836_vm15 = vcmp.eq.s32.totalorder %v4126_v0, 15 }
  0xed   :  { %v1718_v50 = vsel %vm7094_vm0, %v1716_v17, %v1717_v47  ;;  %v1984_v63 = vrot.slane %v1845_v7, 4  ;;  %v1581_v36 = vadd.f32 %v4972_v53, %v1458_v12  ;;  %7107 = vst [vmem:[#allocation112_spill] sm:$0xff] %v4998_v5  ;;  %v1724_v13 = vrot.slane %v1582_v9, 2  ;;  %vm896_vm8 = vmand %vm833_vm7, %vm7110_vm2 }
  0xee   :  { %v1844_v39 = vadd.f32 %v1718_v50, %v1577_v34  ;;  %v5001_v60 = vadd.f32 %v4890_v26, %v2078_v48  ;;  %v1454_v47 = vrot.slane %v4998_v5, 1  ;;  %vm7111_vm13 = vmmov %vm7100_vm4  ;;  %v5015_v3 = vsel %vm896_vm8, 1.0, %v6973_v25 }
  0xef   :  { %v1987_v8 = vsel %vm7109_vm1, %v1984_v63, %v1986_v62  ;;  %v1722_v41 = vrot.slane %v1581_v36, 2  ;;  %v1849_v52 = vadd.f32 %v1724_v13, %v1582_v9  ;;  %vm897_vm4 = vmand %vm834_vm11, %vm4132_vm10  ;;  %7112 = vst [vmem:[#allocation114_spill] sm:$0xff] %v5015_v3 }
  0xf0   :  { %7108 = vst [vmem:[#allocation113_spill] sm:$0xff] %v5001_v60  ;;  %v1983_v40 = vrot.slane %v1844_v39, 4  ;;  %2176 = vrot.lane.b32.xlu1 %v5001_v60, %s3529_s1  ;;  %v2081_v34 = vadd.f32 %v1987_v8, %v1845_v7  ;;  %v1456_v17 = vsel %vm7111_vm13, %v1454_v47, %v1455_v21  ;;  %vm7113_vm3 = vmmov %vm7109_vm1  ;;  %v5021_v12 = vsel %vm897_vm4, 1.0, %v6973_v25 }
  0xf1   :  { %vm7114_vm5 = vmmov %vm7094_vm0  ;;  %v1580_v50 = vadd.f32 %v4998_v5, %v1456_v17  ;;  %7115 = vst [vmem:[#allocation115_spill] sm:$0xff] %v5021_v12  ;;  %v1991_v47 = vrot.slane %v1849_v52, 4  ;;  %v1460_v60 = vrot.slane %v5015_v3, 1  ;;  %v1462_v57 = vrot.slane %v5021_v12, 1 }
  0xf2   :  { %v1985_v62 = vsel %vm7113_vm3, %v1983_v40, %v1984_v63  ;;  %v1725_v48 = vsel %vm7114_vm5, %v1722_v41, %v1724_v13  ;;  %v5024_v7 = vadd.f32 %v4936_v45, %v2081_v34  ;;  %vm895_vm12 = vmand %vm832_vm14, %vm4505_vm9  ;;  %vm837_vm0 = vcmp.eq.s32.totalorder %v4138_v10, 15 }
  0xf3   :  { %v2080_v9 = vadd.f32 %v1985_v62, %v1844_v39  ;;  %v1848_v21 = vadd.f32 %v1725_v48, %v1581_v36  ;;  %v1721_v8 = vrot.slane %v1580_v50, 2  ;;  %vm7118_vm6 = vmmov %vm7114_vm5  ;;  %v1585_v40 = vadd.f32 %v5021_v12, %v1462_v57 }
  0xf4   :  { %7116 = vst [vmem:[#allocation116_spill] sm:$0xff] %v5024_v7  ;;  %2182 = vrot.lane.b32.xlu0 %v5024_v7, %s3529_s1  ;;  %vm7119_vm7 = vmmov %vm7111_vm13  ;;  %v5042_v34 = vsel %vm895_vm12, 1.0, %v6973_v25 }
  0xf5   :  { %v5032_v63 = vadd.f32 %v4933_v28, %v2080_v9  ;;  %v1989_v13 = vrot.slane %v1848_v21, 4  ;;  %v1723_v36 = vsel %vm7118_vm6, %v1721_v8, %v1722_v41  ;;  %v1463_v39 = vsel %vm7119_vm7, %v1460_v60, %v1462_v57  ;;  %7120 = vst [vmem:[#allocation118_spill] sm:$0xff] %v5042_v34  ;;  %vm7121_vm1 = vmmov %vm7110_vm2 }
  0xf6   :  { %vm899_vm11 = vmand %vm836_vm15, %vm7121_vm1  ;;  %v1847_v17 = vadd.f32 %v1723_v36, %v1580_v50  ;;  %v1584_v62 = vadd.f32 %v5015_v3, %v1463_v39  ;;  %v1459_v41 = vrot.slane %v5042_v34, 1  ;;  %v1729_v48 = vrot.slane %v1585_v40, 2 }
  0xf7   :  { %7117 = vst [vmem:[#allocation117_spill] sm:$0xff] %v5032_v63  ;;  %2180 = vrot.lane.b32.xlu1 %v5032_v63, %s3529_s1  ;;  %vm7122_vm2 = vmmov %vm7113_vm3  ;;  %v5054_v9 = vsel %vm899_vm11, 1.0, %v6973_v25  ;;  %vm839_vm1 = vcmp.eq.s32.totalorder %v4126_v0, 16 }
  0xf8   :  { %v1992_v52 = vsel %vm7122_vm2, %v1989_v13, %v1991_v47  ;;  %vm900_vm8 = vmand %vm837_vm0, %vm4132_vm10  ;;  %v1988_v7 = vrot.slane %v1847_v17, 4  ;;  %v1727_v63 = vrot.slane %v1584_v62, 2  ;;  %v1465_v50 = vrot.slane %v5054_v9, 1 }
  0xf9   :  { %v2083_v57 = vadd.f32 %v1992_v52, %v1848_v21  ;;  %v5057_v8 = vsel %vm900_vm8, 1.0, %v6973_v25  ;;  %vm7124_vm13 = vmmov %vm7119_vm7  ;;  %v1852_v39 = vadd.f32 %v1729_v48, %v1585_v40  ;;  %v1148_v40 = vpop.permute.xlu1 %1147 }
  0xfa   :  { %7123 = vst [vmem:[#allocation119_spill] sm:$0xff] %v5057_v8  ;;  %v1461_v47 = vsel %vm7124_vm13, %v1459_v41, %v1460_v60  ;;  %v1467_v21 = vrot.slane %v5057_v8, 1  ;;  %vm7126_vm4 = vmmov %vm7122_vm2  ;;  %vm840_vm13 = vcmp.eq.s32.totalorder %v4138_v10, 16 }
  0xfb   :  { %v5062_v36 = vadd.f32 %v4979_v38, %v2083_v57  ;;  %v1583_v45 = vadd.f32 %v5042_v34, %v1461_v47  ;;  %v1990_v52 = vsel %vm7126_vm4, %v1988_v7, %v1989_v13  ;;  %vm7127_vm3 = vmmov %vm7114_vm5  ;;  %vm835_vm5 = vcmp.eq.s32.totalorder %v4513_v55, 15  ;;  %v1140_v34 = vpop.permute.xlu0 %1139 }
  0xfc   :  { %v1730_v28 = vsel %vm7127_vm3, %v1727_v63, %v1729_v48  ;;  %v2082_v60 = vadd.f32 %v1990_v52, %v1847_v17  ;;  %v1996_v5 = vrot.slane %v1852_v39, 4  ;;  %vm898_vm14 = vmand %vm835_vm5, %vm4505_vm9  ;;  %v1588_v47 = vadd.f32 %v5057_v8, %v1467_v21 }
  0xfd   :  { %7125 = vst [vmem:[#allocation120_spill] sm:$0xff] %v5062_v36  ;;  %2186 = vrot.lane.b32.xlu0 %v5062_v36, %s3529_s1  ;;  %v1851_v41 = vadd.f32 %v1730_v28, %v1584_v62  ;;  %v1726_v26 = vrot.slane %v1583_v45, 2  ;;  %vm7128_vm12 = vmmov %vm7119_vm7  ;;  %v5076_v7 = vsel %vm898_vm14, 1.0, %v6973_v25  ;;  %v5079_v13 = vmul.f32 %v4553_v22, %v1148_v40 }
  0xfe   :  { %v1468_v57 = vsel %vm7128_vm12, %v1465_v50, %v1467_v21  ;;  %7129 = vst [vmem:[#allocation121_spill] sm:$0xff] %v5076_v7  ;;  %v5082_v48 = vadd.f32 %v4972_v53, %v2082_v60  ;;  %vm7131_vm15 = vmmov %vm7127_vm3  ;;  %v1734_v52 = vrot.slane %v1588_v47, 2  ;;  %v1464_v36 = vrot.slane %v5076_v7, 1 }
  0xff   :  { %v1994_v28 = vrot.slane %v1851_v41, 4  ;;  %v1728_v17 = vsel %vm7131_vm15, %v1726_v26, %v1727_v63  ;;  %v1587_v62 = vadd.f32 %v5054_v9, %v1468_v57  ;;  %v5088_v21 = vmul.f32 %v4202_v15, %v1148_v40  ;;  %vm7132_vm0 = vmmov %vm7122_vm2 }
 0x100   :  { %7130 = vst [vmem:[#allocation122_spill] sm:$0xff] %v5082_v48  ;;  %v1850_v39 = vadd.f32 %v1728_v17, %v1583_v45  ;;  %2184 = vrot.lane.b32.xlu1 %v5082_v48, %s3529_s1  ;;  %v5094_v38 = vmul.f32 %v4208_v42, %v1148_v40  ;;  %v1214_v26 = vmul.f32 %v4533_v1, %v1140_v34  ;;  %vm7133_vm6 = vmmov %vm7119_vm7  ;;  %vm7137_vm2 = vcmp.lt.s32.totalorder %v3584_v6, 16 }
 0x101   :  { %v1997_v22 = vsel %vm7132_vm0, %v1994_v28, %v1996_v5  ;;  %v1732_v60 = vrot.slane %v1587_v62, 2  ;;  %v1855_v57 = vadd.f32 %v1734_v52, %v1588_v47  ;;  %v1466_v17 = vsel %vm7133_vm6, %v1464_v36, %v1465_v50  ;;  %vm7134_vm7 = vmmov %vm7127_vm3 }
 0x102   :  { %v2085_v63 = vadd.f32 %v1997_v22, %v1851_v41  ;;  %v1993_v45 = vrot.slane %v1850_v39, 4  ;;  %v1586_v53 = vadd.f32 %v5076_v7, %v1466_v17  ;;  %v1215_v23 = vmul.f32 %v4155_v32, %v1140_v34  ;;  %vm7136_vm11 = vmmov %vm7132_vm0 }
 0x103   :  { %v1735_v15 = vsel %vm7134_vm7, %v1732_v60, %v1734_v52  ;;  %v2001_v1 = vrot.slane %v1855_v57, 4  ;;  %vm902_vm8 = vmand %vm839_vm1, %vm7137_vm2  ;;  %v1216_v47 = vmul.f32 %v4164_v16, %v1140_v34  ;;  %vm838_vm3 = vcmp.eq.s32.totalorder %v4513_v55, 16 }
 0x104   :  { %v5103_v5 = vadd.f32 %v5021_v12, %v2085_v63  ;;  %v1995_v42 = vsel %vm7136_vm11, %v1993_v45, %v1994_v28  ;;  %v1854_v40 = vadd.f32 %v1735_v15, %v1587_v62  ;;  %v1731_v50 = vrot.slane %v1586_v53, 2  ;;  %vm903_vm4 = vmand %vm840_vm13, %vm4132_vm10  ;;  %v1152_v62 = vpop.permute.xlu1 %1151 }
 0x105   :  { %v2084_v41 = vadd.f32 %v1995_v42, %v1850_v39  ;;  %v5110_v36 = vsel %vm902_vm8, 1.0, %v6973_v25  ;;  %v1144_v39 = vpop.permute.xlu0 %1143  ;;  %vm7139_vm5 = vmmov %vm7134_vm7  ;;  %v5124_v63 = vsel %vm903_vm4, 1.0, %v6973_v25  ;;  %v5129_v16 = vmul.f32 %v4570_v31, %v1152_v62 }
 0x106   :  { %7135 = vst [vmem:[#allocation123_spill] sm:$0xff] %v5103_v5  ;;  %2190 = vrot.lane.b32.xlu0 %v5103_v5, %s3529_s1  ;;  %v1999_v32 = vrot.slane %v1854_v40, 4  ;;  %v1470_v28 = vrot.slane %v5110_v36, 1  ;;  %v1733_v22 = vsel %vm7139_vm5, %v1731_v50, %v1732_v60  ;;  %vm901_vm14 = vmand %vm838_vm3, %vm4505_vm9  ;;  %v1472_v57 = vrot.slane %v5124_v63, 1 }
 0x107   :  { %v5120_v52 = vadd.f32 %v5015_v3, %v2084_v41  ;;  %vm7140_vm12 = vmmov %vm7132_vm0  ;;  %v1853_v45 = vadd.f32 %v1733_v22, %v1586_v53  ;;  %v5134_v17 = vsel %vm901_vm14, 1.0, %v6973_v25  ;;  %v5140_v42 = vmul.f32 %v4227_v46, %v1152_v62 }
 0x108   :  { %v2002_v34 = vsel %vm7140_vm12, %v1999_v32, %v2001_v1  ;;  %v1469_v15 = vrot.slane %v5134_v17, 1  ;;  %v1217_v31 = vmul.f32 %v4544_v33, %v1144_v39  ;;  %vm7141_vm15 = vmmov %vm7133_vm6  ;;  %v1591_v53 = vadd.f32 %v5124_v63, %v1472_v57  ;;  %v1160_v12 = vpop.permute.xlu1 %1159 }
 0x109   :  { %7138 = vst [vmem:[#allocation124_spill] sm:$0xff] %v5120_v52  ;;  %2188 = vrot.lane.b32.xlu1 %v5120_v52, %s3529_s1  ;;  %v2087_v60 = vadd.f32 %v2002_v34, %v1854_v40  ;;  %v1998_v41 = vrot.slane %v1853_v45, 4  ;;  %v1473_v1 = vsel %vm7141_vm15, %v1470_v28, %v1472_v57  ;;  %v1218_v50 = vmul.f32 %v4179_v43, %v1144_v39  ;;  %vm7143_vm0 = vmmov %vm7133_vm6  ;;  %v1156_v3 = vpop.permute.xlu0 %1155 }
 0x10a   :  { %v1590_v52 = vadd.f32 %v5110_v36, %v1473_v1  ;;  %v1471_v40 = vsel %vm7143_vm0, %v1469_v15, %v1470_v28  ;;  %v1219_v34 = vmul.f32 %v4185_v44, %v1144_v39  ;;  %vm7144_vm6 = vmmov %vm7136_vm11  ;;  %v1739_v5 = vrot.slane %v1591_v53, 2 }
 0x10b   :  { %v5147_v22 = vadd.f32 %v5057_v8, %v2087_v60  ;;  %v2000_v46 = vsel %vm7144_vm6, %v1998_v41, %v1999_v32  ;;  %v1589_v33 = vadd.f32 %v5134_v17, %v1471_v40  ;;  %v1271_v48 = vadd.f32 %v1217_v31, %v1214_v26  ;;  %vm7146_vm1 = vmmov %vm7139_vm5 }
 0x10c   :  { %v2086_v43 = vadd.f32 %v2000_v46, %v1853_v45  ;;  %v1737_v57 = vrot.slane %v1590_v52, 2  ;;  %v1289_v60 = vadd.f32 %v1218_v50, %v1215_v23  ;;  %v1307_v8 = vadd.f32 %v1219_v34, %v1216_v47  ;;  %vm7147_vm11 = vmmov %vm7137_vm2 }
 0x10d   :  { %7142 = vst [vmem:[#allocation125_spill] sm:$0xff] %v5147_v22  ;;  %2194 = vrot.lane.b32.xlu0 %v5147_v22, %s3529_s1  ;;  %v1858_v1 = vadd.f32 %v1739_v5, %v1591_v53  ;;  %v1736_v7 = vrot.slane %v1589_v33, 2  ;;  %v1225_v28 = vmul.f32 %v4423_v51, %v1152_v62  ;;  %vm842_vm7 = vcmp.eq.s32.totalorder %v4126_v0, 17  ;;  %vm7148_vm8 = vmmov %vm7146_vm1  ;;  %v7229_v22 = vld [vmem:[#allocation49_spill] sm:$0xff] }
 0x10e   :  { %v5159_v44 = vadd.f32 %v5054_v9, %v2086_v43  ;;  %v1740_v26 = vsel %vm7146_vm1, %v1737_v57, %v1739_v5  ;;  %v1272_v32 = vadd.f32 %v1271_v48, %v5079_v13  ;;  %v1290_v39 = vadd.f32 %v1289_v60, %v5088_v21  ;;  %vm905_vm2 = vmand %vm842_vm7, %vm7147_vm11 }
 0x10f   :  { %v1857_v23 = vadd.f32 %v1740_v26, %v1590_v52  ;;  %v2006_v47 = vrot.slane %v1858_v1, 4  ;;  %v1738_v45 = vsel %vm7148_vm8, %v1736_v7, %v1737_v57  ;;  %vm843_vm13 = vcmp.eq.s32.totalorder %v4138_v10, 17  ;;  %vm7151_vm14 = vmmov %vm7144_vm6 }
 0x110   :  { %7145 = vst [vmem:[#allocation126_spill] sm:$0xff] %v5159_v44  ;;  %2192 = vrot.lane.b32.xlu1 %v5159_v44, %s3529_s1  ;;  %v1856_v51 = vadd.f32 %v1738_v45, %v1589_v33  ;;  %v1308_v62 = vadd.f32 %v1307_v8, %v5094_v38  ;;  %vm906_vm4 = vmand %vm843_vm13, %vm4132_vm10  ;;  %v5174_v13 = vsel %vm905_vm2, 1.0, %v6973_v25  ;;  %vm841_vm3 = vcmp.eq.s32.totalorder %v4513_v55, 17  ;;  %v5186_v38 = vpop.permute.xlu1 %1167  ;;  %v5188_v8 = vpop.permute.xlu0 %1163 }
 0x111   :  { %7149 = vst [vmem:[#allocation127_spill] sm:$0xff] %v5174_v13  ;;  %v2004_v48 = vrot.slane %v1857_v23, 4  ;;  %v5178_v21 = vsel %vm906_vm4, 1.0, %v6973_v25  ;;  %v1475_v7 = vrot.slane %v5174_v13, 1  ;;  %vm904_vm5 = vmand %vm841_vm3, %vm4505_vm9  ;;  %v5184_v5 = vmul.f32 %v4671_v30, %v1160_v12 }
 0x112   :  { %7150 = vst [vmem:[#allocation128_spill] sm:$0xff] %v5178_v21  ;;  %v2003_v52 = vrot.slane %v1856_v51, 4  ;;  %v1477_v15 = vrot.slane %v5178_v21, 1  ;;  %v5192_v31 = vsel %vm904_vm5, 1.0, %v6973_v25  ;;  %v5195_v41 = vmul.f32 %v4519_v14, %v1160_v12  ;;  %vm7152_vm12 = vmmov %vm7144_vm6 }
 0x113   :  { %v2007_v53 = vsel %vm7151_vm14, %v2004_v48, %v2006_v47  ;;  %v1474_v50 = vrot.slane %v5192_v31, 1  ;;  %v5200_v30 = vmul.f32 %v4539_v20, %v1160_v12  ;;  %v1226_v40 = vmul.f32 %v4590_v35, %v1156_v3  ;;  %vm7153_vm15 = vmmov %vm7143_vm0 }
 0x114   :  { %v2089_v34 = vadd.f32 %v2007_v53, %v1857_v23  ;;  %v2005_v46 = vsel %vm7152_vm12, %v2003_v52, %v2004_v48  ;;  %v1478_v33 = vsel %vm7153_vm15, %v1475_v7, %v1477_v15  ;;  %v1594_v43 = vadd.f32 %v5178_v21, %v1477_v15  ;;  %v5219_v48 = vpop.permute.xlu1 %1175  ;;  %vm7156_vm7 = vmmov %vm7146_vm1 }
 0x115   :  { %v2088_v57 = vadd.f32 %v2005_v46, %v1856_v51  ;;  %v1593_v14 = vadd.f32 %v5174_v13, %v1478_v33  ;;  %v1476_v60 = vsel %vm7143_vm0, %v1474_v50, %v1475_v7  ;;  %v1227_v1 = vmul.f32 %v4445_v49, %v1156_v3  ;;  %v5221_v7 = vpop.permute.xlu0 %1171  ;;  %vm7157_vm8 = vmmov %vm7156_vm7 }
 0x116   :  { %v5210_v26 = vadd.f32 %v5124_v63, %v2089_v34  ;;  %v1744_v20 = vrot.slane %v1594_v43, 2  ;;  %v1592_v35 = vadd.f32 %v5192_v31, %v1476_v60  ;;  %v1273_v12 = vadd.f32 %v1272_v32, %v5129_v16  ;;  %vm7164_vm14 = vmmov %vm7143_vm0 }
 0x117   :  { %v5215_v23 = vadd.f32 %v5110_v36, %v2088_v57  ;;  %v1742_v47 = vrot.slane %v1593_v14, 2  ;;  %v1228_v45 = vmul.f32 %v4475_v58, %v1156_v3  ;;  %v1291_v51 = vadd.f32 %v1290_v39, %v5140_v42  ;;  %vm7168_vm15 = vmmov %vm7156_vm7 }
 0x118   :  { %7154 = vst [vmem:[#allocation129_spill] sm:$0xff] %v5210_v26  ;;  %2198 = vrot.lane.b32.xlu0 %v5210_v26, %s3529_s1  ;;  %v1861_v49 = vadd.f32 %v1744_v20, %v1594_v43  ;;  %v1741_v52 = vrot.slane %v1592_v35, 2  ;;  %v1309_v15 = vadd.f32 %v1308_v62, %v1225_v28  ;;  %vm845_vm6 = vcmp.eq.s32.totalorder %v4126_v0, 18  ;;  %v5255_v33 = vpop.permute.xlu1 %1183  ;;  %v7228_v26 = vld [vmem:[#allocation73_spill] sm:$0xff] }
 0x119   :  { %7155 = vst [vmem:[#allocation130_spill] sm:$0xff] %v5215_v23  ;;  %2196 = vrot.lane.b32.xlu1 %v5215_v23, %s3529_s1  ;;  %v1745_v16 = vsel %vm7156_vm7, %v1742_v47, %v1744_v20  ;;  %v1274_v58 = vadd.f32 %v1273_v12, %v1226_v40  ;;  %v1292_v3 = vadd.f32 %v1291_v51, %v1227_v1  ;;  %vm846_vm1 = vcmp.eq.s32.totalorder %v4138_v10, 18  ;;  %vm908_vm2 = vmand %vm845_vm6, %vm7147_vm11  ;;  %v5257_v43 = vpop.permute.xlu0 %1179 }
 0x11a   :  { %v1860_v42 = vadd.f32 %v1745_v16, %v1593_v14  ;;  %v2011_v32 = vrot.slane %v1861_v49, 4  ;;  %v1743_v39 = vsel %vm7157_vm8, %v1741_v52, %v1742_v47  ;;  %vm909_vm13 = vmand %vm846_vm1, %vm4132_vm10  ;;  %v5236_v0 = vsel %vm908_vm2, 1.0, %v6973_v25 }
 0x11b   :  { %7158 = vst [vmem:[#allocation131_spill] sm:$0xff] %v5236_v0  ;;  %v1859_v28 = vadd.f32 %v1743_v39, %v1592_v35  ;;  %v5239_v62 = vsel %vm909_vm13, 1.0, %v6973_v25  ;;  %v1480_v53 = vrot.slane %v5236_v0, 1  ;;  %vm844_vm4 = vcmp.eq.s32.totalorder %v4513_v55, 18  ;;  %vm7161_vm10 = vmmov %vm7152_vm12 }
 0x11c   :  { %7159 = vst [vmem:[#allocation132_spill] sm:$0xff] %v5239_v62  ;;  %v2009_v6 = vrot.slane %v1860_v42, 4  ;;  %v1310_v10 = vadd.f32 %v1309_v15, %v1228_v45  ;;  %v1482_v50 = vrot.slane %v5239_v62, 1  ;;  %vm907_vm3 = vmand %vm844_vm4, %vm4505_vm9  ;;  %v1235_v56 = vmul.f32 %v4745_v37, %v5186_v38  ;;  %v1192_v39 = vpop.permute.xlu1 %1191 }
 0x11d   :  { %v2008_v40 = vrot.slane %v1859_v28, 4  ;;  %v5249_v34 = vsel %vm907_vm3, 1.0, %v6973_v25  ;;  %v1236_v46 = vmul.f32 %v4725_v29, %v5186_v38  ;;  %v1232_v55 = vmul.f32 %v4705_v61, %v5188_v8  ;;  %vm7162_vm9 = vmmov %vm7143_vm0 }
 0x11e   :  { %7160 = vst [vmem:[#allocation133_spill] sm:$0xff] %v5249_v34  ;;  %v2012_v4 = vsel %vm7161_vm10, %v2009_v6, %v2011_v32  ;;  %v1483_v57 = vsel %vm7162_vm9, %v1480_v53, %v1482_v50  ;;  %v1597_v37 = vadd.f32 %v5239_v62, %v1482_v50  ;;  %v1479_v14 = vrot.slane %v5249_v34, 1  ;;  %vm7163_vm5 = vmmov %vm7161_vm10 }
 0x11f   :  { %v2091_v25 = vadd.f32 %v2012_v4, %v1860_v42  ;;  %v2010_v60 = vsel %vm7163_vm5, %v2008_v40, %v2009_v6  ;;  %v1596_v29 = vadd.f32 %v5236_v0, %v1483_v57  ;;  %v1233_v61 = vmul.f32 %v4681_v2, %v5188_v8  ;;  %vm7167_vm12 = vmmov %vm7156_vm7 }
 0x120   :  { %v2090_v1 = vadd.f32 %v2010_v60, %v1859_v28  ;;  %v1749_v20 = vrot.slane %v1597_v37, 2  ;;  %v1481_v35 = vsel %vm7164_vm14, %v1479_v14, %v1480_v53  ;;  %v1234_v12 = vmul.f32 %v4687_v18, %v5188_v8  ;;  %vm7169_vm0 = vmmov %vm7163_vm5  ;;  %v7170_v14 = vld [vmem:[#allocation91_spill] sm:$0xff] }
 0x121   :  { %v5271_v47 = vadd.f32 %v5178_v21, %v2091_v25  ;;  %v1747_v45 = vrot.slane %v1596_v29, 2  ;;  %v1595_v51 = vadd.f32 %v5249_v34, %v1481_v35  ;;  %v1275_v49 = vadd.f32 %v1274_v58, %v5184_v5  ;;  %v1188_v5 = vpop.permute.xlu0 %1187  ;;  %vm7171_vm6 = vmmov %vm7169_vm0  ;;  %v7174_v35 = vld [vmem:[#allocation94_spill] sm:$0xff]  ;;  %v7234_v34 = vld [vmem:[#allocation53_spill] sm:$0xff] }
 0x122   :  { %v5276_v52 = vadd.f32 %v5174_v13, %v2090_v1  ;;  %v1864_v15 = vadd.f32 %v1749_v20, %v1597_v37  ;;  %v1293_v2 = vadd.f32 %v1292_v3, %v5195_v41  ;;  %v1311_v16 = vadd.f32 %v1310_v10, %v5200_v30  ;;  %vm7309_vm7 = vmmov %vm7162_vm9 }
 0x123   :  { %7165 = vst [vmem:[#allocation134_spill] sm:$0xff] %v5271_v47  ;;  %2202 = vrot.lane.b32.xlu0 %v5271_v47, %s3529_s1  ;;  %v1750_v18 = vsel %vm7167_vm12, %v1747_v45, %v1749_v20  ;;  %v1746_v8 = vrot.slane %v1595_v51, 2  ;;  %v1237_v42 = vmul.f32 %v4737_v27, %v5186_v38  ;;  %v1276_v32 = vadd.f32 %v1275_v49, %v1232_v55  ;;  %v7176_v49 = vld [vmem:[#allocation99_spill] sm:$0xff]  ;;  %vm7344_vm1 = vmmov %vm7309_vm7 }
 0x124   :  { %7166 = vst [vmem:[#allocation135_spill] sm:$0xff] %v5276_v52  ;;  %2200 = vrot.lane.b32.xlu1 %v5276_v52, %s3529_s1  ;;  %v1863_v58 = vadd.f32 %v1750_v18, %v1596_v29  ;;  %v2016_v28 = vrot.slane %v1864_v15, 4  ;;  %v1294_v41 = vadd.f32 %v1293_v2, %v1233_v61  ;;  %v1312_v3 = vadd.f32 %v1311_v16, %v1234_v12  ;;  %v7177_v2 = vld [vmem:[#allocation100_spill] sm:$0xff]  ;;  %v7178_v18 = vld [vmem:[#allocation95_spill] sm:$0xff]  ;;  %vm7345_vm11 = vmmov %vm7157_vm8 }
 0x125   :  { %v1748_v30 = vsel %vm7168_vm15, %v1746_v8, %v1747_v45  ;;  %v1241_v53 = vmul.f32 %v4832_v19, %v5219_v48  ;;  %v1238_v27 = vmul.f32 %v4801_v24, %v5221_v7  ;;  %v1239_v38 = vmul.f32 %v4767_v11, %v5221_v7  ;;  %v1200_v11 = vpop.permute.xlu1 %1199  ;;  %v1196_v1 = vpop.permute.xlu0 %1195  ;;  %v7227_v47 = vld [vmem:[#allocation47_spill] sm:$0xff]  ;;  %vm7346_vm2 = vmmov %vm7157_vm8 }
 0x126   :  { %v2014_v6 = vrot.slane %v1863_v58, 4  ;;  %v1862_v10 = vadd.f32 %v1748_v30, %v1595_v51  ;;  %v1240_v50 = vmul.f32 %v4777_v59, %v5221_v7  ;;  %v1277_v40 = vadd.f32 %v1276_v32, %v1235_v56  ;;  %v7172_v7 = vld [vmem:[#allocation103_spill] sm:$0xff]  ;;  %vm7347_vm8 = vmmov %vm7169_vm0 }
 0x127   :  { %v1295_v55 = vadd.f32 %v1294_v41, %v1236_v46  ;;  %v1313_v4 = vadd.f32 %v1312_v3, %v1237_v42  ;;  %v1242_v19 = vmul.f32 %v4810_v54, %v5219_v48  ;;  %v1243_v25 = vmul.f32 %v7170_v14, %v5219_v48  ;;  %v7173_v46 = vld [vmem:[#allocation97_spill] sm:$0xff]  ;;  %v7180_v41 = vld [vmem:[#allocation112_spill] sm:$0xff]  ;;  %vm7348_vm13 = vmmov %vm7169_vm0 }
 0x128   :  { %v2017_v57 = vsel %vm7169_vm0, %v2014_v6, %v2016_v28  ;;  %v2013_v37 = vrot.slane %v1862_v10, 4  ;;  %v1278_v24 = vadd.f32 %v1277_v40, %v1238_v27  ;;  %v1247_v56 = vmul.f32 %v7172_v7, %v5255_v33  ;;  %v7185_v40 = vld [vmem:[#allocation105_spill] sm:$0xff]  ;;  %v7189_v7 = vld [vmem:[#allocation118_spill] sm:$0xff] }
 0x129   :  { %v2093_v60 = vadd.f32 %v2017_v57, %v1863_v58  ;;  %v1296_v29 = vadd.f32 %v1295_v55, %v1239_v38  ;;  %v1314_v61 = vadd.f32 %v1313_v4, %v1240_v50  ;;  %v1244_v20 = vmul.f32 %v7173_v46, %v5257_v43 }
 0x12a   :  { %v2015_v59 = vsel %vm7171_vm6, %v2013_v37, %v2014_v6  ;;  %v1245_v54 = vmul.f32 %v7174_v35, %v5257_v43  ;;  %v1279_v45 = vadd.f32 %v1278_v24, %v1241_v53  ;;  %v1248_v15 = vmul.f32 %v7176_v49, %v5255_v33  ;;  %v7181_v53 = vld [vmem:[#allocation109_spill] sm:$0xff]  ;;  %v5330_v37 = vpop.permute.xlu1 %1207 }
 0x12b   :  { %v5309_v12 = vadd.f32 %v5239_v62, %v2093_v60  ;;  %v2092_v48 = vadd.f32 %v2015_v59, %v1862_v10  ;;  %v1297_v51 = vadd.f32 %v1296_v29, %v1242_v19  ;;  %v1249_v16 = vmul.f32 %v7177_v2, %v5255_v33  ;;  %v7182_v10 = vld [vmem:[#allocation110_spill] sm:$0xff]  ;;  %v7183_v33 = vld [vmem:[#allocation107_spill] sm:$0xff]  ;;  %7186 = vst [vmem:[#allocation97_spill] sm:$0xff] %v5330_v37  ;;  %v1204_v19 = vpop.permute.xlu0 %1203 }
 0x12c   :  { %v1246_v8 = vmul.f32 %v7178_v18, %v5257_v43  ;;  %v1315_v42 = vadd.f32 %v1314_v61, %v1243_v25  ;;  %v1280_v58 = vadd.f32 %v1279_v45, %v1244_v20  ;;  %v1253_v3 = vmul.f32 %v7180_v41, %v1192_v39  ;;  %v7184_v43 = vld [vmem:[#allocation104_spill] sm:$0xff]  ;;  %v7187_v25 = vld [vmem:[#allocation121_spill] sm:$0xff]  ;;  %v7190_v20 = vld [vmem:[#allocation114_spill] sm:$0xff] }
 0x12d   :  { %7175 = vst [vmem:[#allocation91_spill] sm:$0xff] %v5309_v12  ;;  %2206 = vrot.lane.b32.xlu0 %v5309_v12, %s3529_s1  ;;  %v5320_v32 = vadd.f32 %v5236_v0, %v2092_v48  ;;  %v1298_v28 = vadd.f32 %v1297_v51, %v1245_v54  ;;  %v1254_v6 = vmul.f32 %v7181_v53, %v1192_v39  ;;  %v7194_v2 = vld [vmem:[#allocation82_spill] sm:$0xff]  ;;  %v7195_v18 = vld [vmem:[#allocation21_spill] sm:$0xff]  ;;  %v7226_v12 = vld [vmem:[#allocation72_spill] sm:$0xff]  ;;  %v5397_v23 = vmul.f32 1.442695, %v7227_v47 }
 0x12e   :  { %v1316_v30 = vadd.f32 %v1315_v42, %v1246_v8  ;;  %v1255_v27 = vmul.f32 %v7182_v10, %v1192_v39  ;;  %v1250_v38 = vmul.f32 %v7183_v33, %v1188_v5  ;;  %v1251_v50 = vmul.f32 %v7184_v43, %v1188_v5  ;;  %v7188_v39 = vld [vmem:[#allocation119_spill] sm:$0xff] }
 0x12f   :  { %7179 = vst [vmem:[#allocation103_spill] sm:$0xff] %v5320_v32  ;;  %2204 = vrot.lane.b32.xlu1 %v5320_v32, %s3529_s1  ;;  %v1252_v55 = vmul.f32 %v7185_v40, %v1188_v5  ;;  %v1281_v4 = vadd.f32 %v1280_v58, %v1247_v56  ;;  %v1299_v57 = vadd.f32 %v1298_v28, %v1248_v15  ;;  %v7191_v5 = vld [vmem:[#allocation115_spill] sm:$0xff]  ;;  %v251_v8 = vmul.f32 1.442695, %v7195_v18  ;;  %v7197_v58 = vld [vmem:[#allocation22_spill] sm:$0xff]  ;;  %v5352_v53 = vpop.permute.xlu0 %1211  ;;  %v7202_v40 = vld [vmem:[#allocation24_spill] sm:$0xff] }
 0x130   :  { %v1317_v14 = vadd.f32 %v1316_v30, %v1249_v16  ;;  %v1259_v60 = vmul.f32 %v7187_v25, %v1200_v11  ;;  %v1260_v24 = vmul.f32 %v5054_v9, %v1200_v11  ;;  %v1261_v29 = vmul.f32 %v7188_v39, %v1200_v11  ;;  %v7193_v11 = vld [vmem:[#allocation59_spill] sm:$0xff]  ;;  %7199 = vst [vmem:[#allocation99_spill] sm:$0xff] %v5352_v53 }
 0x131   :  { %v1282_v61 = vadd.f32 %v1281_v4, %v1250_v38  ;;  %v1300_v59 = vadd.f32 %v1299_v57, %v1251_v50  ;;  %v1256_v46 = vmul.f32 %v7189_v7, %v1196_v1  ;;  %v1257_v35 = vmul.f32 %v7190_v20, %v1196_v1  ;;  %v7201_v38 = vld [vmem:[#allocation62_spill] sm:$0xff]  ;;  %v7203_v4 = vld [vmem:[#allocation63_spill] sm:$0xff]  ;;  %v7211_v7 = vld [vmem:[#allocation65_spill] sm:$0xff] }
 0x132   :  { %v1318_v54 = vadd.f32 %v1317_v14, %v1252_v55  ;;  %v1258_v56 = vmul.f32 %v7191_v5, %v1196_v1  ;;  %v5340_v48 = vmul.f32 %v5192_v31, %v5330_v37  ;;  %v1262_v45 = vmul.f32 %v5134_v17, %v1204_v19  ;;  %v7196_v1 = vld [vmem:[#allocation60_spill] sm:$0xff]  ;;  %v7198_v17 = vld [vmem:[#allocation61_spill] sm:$0xff] }
 0x133   :  { %v1283_v51 = vadd.f32 %v1282_v61, %v1253_v3  ;;  %v1301_v49 = vadd.f32 %v1300_v59, %v1254_v6  ;;  %v1263_v9 = vmul.f32 %v5110_v36, %v1204_v19  ;;  %v249_v15 = vmul.f32 1.442695, %v7193_v11  ;;  %2550 = vrot.lane.b32.xlu1 %v7194_v2, %s3530_s12  ;;  %v7200_v6 = vld [vmem:[#allocation23_spill] sm:$0xff]  ;;  %v7212_v20 = vld [vmem:[#allocation33_spill] sm:$0xff]  ;;  %v7231_v2 = vld [vmem:[#allocation74_spill] sm:$0xff] }
 0x134   :  { %7192 = vst [vmem:[#allocation94_spill] sm:$0xff] %v5340_v48  ;;  %v1319_v16 = vadd.f32 %v1318_v54, %v1255_v27  ;;  %v255_v42 = vmul.f32 1.442695, %v7196_v1  ;;  %v257_v31 = vmul.f32 1.442695, %v7197_v58  ;;  %v1264_v36 = vmul.f32 %v5124_v63, %v1204_v19  ;;  %v7206_v63 = vld [vmem:[#allocation29_spill] sm:$0xff] }
 0x135   :  { %v1284_v28 = vadd.f32 %v1283_v51, %v1256_v46  ;;  %v1302_v41 = vadd.f32 %v1301_v49, %v1257_v35  ;;  %3225 = vpow2.f32 %v249_v15  ;;  %v261_v3 = vmul.f32 1.442695, %v7198_v17  ;;  %v7209_v61 = vld [vmem:[#allocation31_spill] sm:$0xff]  ;;  %v7213_v54 = vld [vmem:[#allocation66_spill] sm:$0xff] }
 0x136   :  { %v1320_v30 = vadd.f32 %v1319_v16, %v1258_v56  ;;  %3227 = vpow2.f32 %v251_v8  ;;  %v263_v10 = vmul.f32 1.442695, %v7200_v6  ;;  %v267_v43 = vmul.f32 1.442695, %v7201_v38  ;;  %v7214_v56 = vld [vmem:[#allocation35_spill] sm:$0xff]  ;;  %v5375_v16 = vpop.permute.xlu1 %2132  ;;  %v7218_v8 = vld [vmem:[#allocation68_spill] sm:$0xff] }
 0x137   :  { %v1285_v27 = vadd.f32 %v1284_v28, %v1259_v60  ;;  %v1303_v33 = vadd.f32 %v1302_v41, %v1260_v24  ;;  %3229 = vpow2.f32 %v255_v42  ;;  %v269_v55 = vmul.f32 1.442695, %v7202_v40  ;;  %v7208_v60 = vld [vmem:[#allocation64_spill] sm:$0xff]  ;;  %v7215_v51 = vld [vmem:[#allocation67_spill] sm:$0xff]  ;;  %7217 = vst [vmem:[#allocation110_spill] sm:$0xff] %v5375_v16  ;;  %v7220_v41 = vld [vmem:[#allocation69_spill] sm:$0xff] }
 0x138   :  { %v1321_v50 = vadd.f32 %v1320_v30, %v1261_v29  ;;  %3231 = vpow2.f32 %v257_v31  ;;  %v273_v57 = vmul.f32 1.442695, %v7203_v4  ;;  %v275_v19 = vmul.f32 1.442695, %v7206_v63  ;;  %v5367_v29 = vpop.permute.xlu0 %2134  ;;  %v7219_v31 = vld [vmem:[#allocation39_spill] sm:$0xff]  ;;  %v7221_v30 = vld [vmem:[#allocation41_spill] sm:$0xff] }
 0x139   :  { %v5358_v14 = vadd.f32 %v1285_v27, %v1262_v45  ;;  %v5360_v25 = vadd.f32 %v1303_v33, %v1263_v9  ;;  %3233 = vpow2.f32 %v261_v3  ;;  %v279_v24 = vmul.f32 1.442695, %v7208_v60  ;;  %7210 = vst [vmem:[#allocation109_spill] sm:$0xff] %v5367_v29  ;;  %v7216_v9 = vld [vmem:[#allocation37_spill] sm:$0xff]  ;;  %v7223_v33 = vld [vmem:[#allocation43_spill] sm:$0xff] }
 0x13a   :  { %v5363_v39 = vadd.f32 %v1321_v50, %v1264_v36  ;;  %3235 = vpow2.f32 %v263_v10  ;;  %v281_v59 = vmul.f32 1.442695, %v7209_v61  ;;  %v285_v46 = vmul.f32 1.442695, %v7211_v7  ;;  %v7222_v10 = vld [vmem:[#allocation70_spill] sm:$0xff] }
 0x13b   :  { %7204 = vst [vmem:[#allocation100_spill] sm:$0xff] %v5358_v14  ;;  %7205 = vst [vmem:[#allocation95_spill] sm:$0xff] %v5360_v25  ;;  %3237 = vpow2.f32 %v267_v43  ;;  %v287_v35 = vmul.f32 1.442695, %v7212_v20  ;;  %v291_v5 = vmul.f32 1.442695, %v7213_v54 }
 0x13c   :  { %7207 = vst [vmem:[#allocation112_spill] sm:$0xff] %v5363_v39  ;;  %3239 = vpow2.f32 %v269_v55  ;;  %v293_v45 = vmul.f32 1.442695, %v7214_v56  ;;  %v297_v49 = vmul.f32 1.442695, %v7215_v51  ;;  %v7224_v55 = vld [vmem:[#allocation71_spill] sm:$0xff] }
 0x13d   :  { %v299_v15 = vmul.f32 1.442695, %v7216_v9  ;;  %3241 = vpow2.f32 %v273_v57  ;;  %v303_v42 = vmul.f32 1.442695, %v7218_v8  ;;  %v305_v28 = vmul.f32 1.442695, %v7219_v31 }
 0x13e   :  { %v309_v3 = vmul.f32 1.442695, %v7220_v41  ;;  %3243 = vpow2.f32 %v275_v19  ;;  %v311_v36 = vmul.f32 1.442695, %v7221_v30  ;;  %v5382_v27 = vmul.f32 1.442695, %v7222_v10 }
 0x13f   :  { %v5385_v43 = vmul.f32 1.442695, %v7223_v33  ;;  %v3226_v50 = vpop.eup %3225  ;;  %3245 = vpow2.f32 %v279_v24  ;;  %v5388_v32 = vmul.f32 1.442695, %v7224_v55  ;;  %v7225_v57 = vld [vmem:[#allocation45_spill] sm:$0xff]  ;;  %v5405_v24 = vpop.permute.xlu0 %2138  ;;  %v7232_v39 = vld [vmem:[#allocation51_spill] sm:$0xff] }
 0x140   :  { %v5391_v62 = vmul.f32 1.442695, %v7225_v57  ;;  %v5394_v52 = vmul.f32 1.442695, %v7226_v12  ;;  %v3228_v19 = vpop.eup %3227  ;;  %3247 = vpow2.f32 %v281_v59  ;;  %v5400_v44 = vmul.f32 1.442695, %v7228_v26 }
 0x141   :  { %v5403_v0 = vmul.f32 1.442695, %v7229_v22  ;;  %7230 = vst [vmem:[#allocation107_spill] sm:$0xff] %v5405_v24  ;;  %v3230_v16 = vpop.eup %3229  ;;  %3249 = vpow2.f32 %v285_v46  ;;  %v5408_v29 = vmul.f32 1.442695, %v7231_v2  ;;  %v7233_v59 = vld [vmem:[#allocation75_spill] sm:$0xff]  ;;  %v5425_v46 = vpop.permute.xlu1 %2136 }
 0x142   :  { %v5411_v25 = vmul.f32 1.442695, %v7232_v39  ;;  %v5414_v14 = vmul.f32 1.442695, %v7233_v59  ;;  %v3232_v48 = vpop.eup %3231  ;;  %3251 = vpow2.f32 %v287_v35  ;;  %v5417_v53 = vmul.f32 1.442695, %v7234_v34 }
 0x143   :  { %v7235_v22 = vld [vmem:[#allocation76_spill] sm:$0xff]  ;;  %v7236_v24 = vld [vmem:[#allocation55_spill] sm:$0xff]  ;;  %7237 = vst [vmem:[#allocation104_spill] sm:$0xff] %v5425_v46  ;;  %v3234_v2 = vpop.eup %3233  ;;  %3253 = vpow2.f32 %v291_v5  ;;  %v7238_v39 = vld [vmem:[#allocation77_spill] sm:$0xff]  ;;  %v363_v59 = vadd.f32 %v3230_v16, %v3226_v50  ;;  %v381_v21 = vadd.f32 %v3232_v48, %v3228_v19  ;;  %v426_v35 = vmul.f32 %v3226_v50, %v7193_v11  ;;  %v5439_v11 = vpop.permute.xlu0 %2142 }
 0x144   :  { %v5420_v26 = vmul.f32 1.442695, %v7235_v22  ;;  %v5423_v47 = vmul.f32 1.442695, %v7236_v24  ;;  %v5428_v12 = vmul.f32 1.442695, %v7238_v39  ;;  %v3236_v13 = vpop.eup %3235  ;;  %3255 = vpow2.f32 %v293_v45 }
 0x145   :  { %v427_v34 = vmul.f32 %v3228_v19, %v7195_v18  ;;  %v429_v22 = vmul.f32 %v3230_v16, %v7196_v1  ;;  %v3238_v37 = vpop.eup %3237  ;;  %3257 = vpow2.f32 %v297_v49  ;;  %v364_v24 = vadd.f32 %v3234_v2, %v363_v59  ;;  %v7240_v39 = vld [vmem:[#allocation57_spill] sm:$0xff]  ;;  %v5443_v50 = vpop.permute.xlu1 %2140 }
 0x146   :  { %7239 = vst [vmem:[#allocation105_spill] sm:$0xff] %v5428_v12  ;;  %v382_v57 = vadd.f32 %v3236_v13, %v381_v21  ;;  %v430_v46 = vmul.f32 %v3232_v48, %v7197_v58  ;;  %v3240_v5 = vpop.eup %3239  ;;  %3259 = vpow2.f32 %v299_v15  ;;  %v5435_v55 = vmul.f32 1.442695, %v7240_v39 }
 0x147   :  { %v432_v12 = vmul.f32 %v3234_v2, %v7198_v17  ;;  %v433_v45 = vmul.f32 %v3236_v13, %v7200_v6  ;;  %v3242_v18 = vpop.eup %3241  ;;  %3261 = vpow2.f32 %v303_v42  ;;  %v365_v1 = vadd.f32 %v3238_v37, %v364_v24  ;;  %v5451_v59 = vpop.permute.xlu0 %2146 }
 0x148   :  { %v383_v16 = vadd.f32 %v3240_v5, %v382_v57  ;;  %v435_v49 = vmul.f32 %v3238_v37, %v7201_v38  ;;  %v3244_v21 = vpop.eup %3243  ;;  %3263 = vpow2.f32 %v305_v28  ;;  %v436_v48 = vmul.f32 %v3240_v5, %v7202_v40 }
 0x149   :  { %v483_v58 = vadd.f32 %v429_v22, %v426_v35  ;;  %v501_v15 = vadd.f32 %v430_v46, %v427_v34  ;;  %v3246_v19 = vpop.eup %3245  ;;  %3265 = vpow2.f32 %v309_v3  ;;  %v366_v2 = vadd.f32 %v3242_v18, %v365_v1  ;;  %v5457_v5 = vpop.permute.xlu1 %2144 }
 0x14a   :  { %v384_v13 = vadd.f32 %v3244_v21, %v383_v16  ;;  %v438_v17 = vmul.f32 %v3242_v18, %v7203_v4  ;;  %v3248_v6 = vpop.eup %3247  ;;  %3267 = vpow2.f32 %v311_v36  ;;  %v439_v42 = vmul.f32 %v3244_v21, %v7206_v63 }
 0x14b   :  { %v484_v57 = vadd.f32 %v483_v58, %v432_v12  ;;  %v502_v37 = vadd.f32 %v501_v15, %v433_v45  ;;  %v3250_v38 = vpop.eup %3249  ;;  %3269 = vpow2.f32 %v5382_v27  ;;  %v367_v40 = vadd.f32 %v3246_v19, %v366_v2 }
 0x14c   :  { %v385_v22 = vadd.f32 %v3248_v6, %v384_v13  ;;  %v441_v34 = vmul.f32 %v3246_v19, %v7208_v60  ;;  %v3252_v28 = vpop.eup %3251  ;;  %3271 = vpow2.f32 %v5385_v43  ;;  %v442_v3 = vmul.f32 %v3248_v6, %v7209_v61  ;;  %v5467_v19 = vpop.permute.xlu0 %2150 }
 0x14d   :  { %v485_v24 = vadd.f32 %v484_v57, %v435_v49  ;;  %v503_v4 = vadd.f32 %v502_v37, %v436_v48  ;;  %v3254_v36 = vpop.eup %3253  ;;  %3273 = vpow2.f32 %v5388_v32  ;;  %v368_v12 = vadd.f32 %v3250_v38, %v367_v40  ;;  %v5473_v6 = vpop.permute.xlu1 %2148 }
 0x14e   :  { %v386_v63 = vadd.f32 %v3252_v28, %v385_v22  ;;  %v444_v27 = vmul.f32 %v3250_v38, %v7211_v7  ;;  %v3256_v46 = vpop.eup %3255  ;;  %3275 = vpow2.f32 %v5391_v62  ;;  %v445_v60 = vmul.f32 %v3252_v28, %v7212_v20 }
 0x14f   :  { %v486_v35 = vadd.f32 %v485_v24, %v438_v17  ;;  %v504_v43 = vadd.f32 %v503_v4, %v439_v42  ;;  %v3258_v61 = vpop.eup %3257  ;;  %3277 = vpow2.f32 %v5394_v52  ;;  %v369_v45 = vadd.f32 %v3254_v36, %v368_v12  ;;  %v7242_v12 = vld [vmem:[#allocation71_spill] sm:$0xff] }
 0x150   :  { %v387_v18 = vadd.f32 %v3256_v46, %v386_v63  ;;  %v447_v32 = vmul.f32 %v3254_v36, %v7213_v54  ;;  %v3260_v1 = vpop.eup %3259  ;;  %3279 = vpow2.f32 %v5397_v23  ;;  %v448_v7 = vmul.f32 %v3256_v46, %v7214_v56  ;;  %v5483_v24 = vpop.permute.xlu0 %2154 }
 0x151   :  { %v487_v16 = vadd.f32 %v486_v35, %v441_v34  ;;  %v505_v62 = vadd.f32 %v504_v43, %v442_v3  ;;  %v3262_v49 = vpop.eup %3261  ;;  %3281 = vpow2.f32 %v5400_v44  ;;  %v370_v20 = vadd.f32 %v3258_v61, %v369_v45  ;;  %v7244_v35 = vld [vmem:[#allocation97_spill] sm:$0xff]  ;;  %v7245_v43 = vld [vmem:[#allocation127_spill] sm:$0xff]  ;;  %v7246_v45 = vld [vmem:[#allocation128_spill] sm:$0xff] }
 0x152   :  { %v388_v21 = vadd.f32 %v3260_v1, %v387_v18  ;;  %v450_v48 = vmul.f32 %v3258_v61, %v7215_v51  ;;  %v3264_v58 = vpop.eup %3263  ;;  %3283 = vpow2.f32 %v5403_v0  ;;  %v451_v52 = vmul.f32 %v3260_v1, %v7216_v9 }
 0x153   :  { %v488_v54 = vadd.f32 %v487_v16, %v444_v27  ;;  %v506_v15 = vadd.f32 %v505_v62, %v445_v60  ;;  %v3266_v23 = vpop.eup %3265  ;;  %3285 = vpow2.f32 %v5408_v29  ;;  %v371_v56 = vadd.f32 %v3262_v49, %v370_v20  ;;  %v5489_v60 = vpop.permute.xlu1 %2152  ;;  %v7247_v16 = vld [vmem:[#allocation72_spill] sm:$0xff] }
 0x154   :  { %v389_v2 = vadd.f32 %v3264_v58, %v388_v21  ;;  %v453_v44 = vmul.f32 %v3262_v49, %v7218_v8  ;;  %v3268_v13 = vpop.eup %3267  ;;  %3287 = vpow2.f32 %v5411_v25  ;;  %v454_v51 = vmul.f32 %v3264_v58, %v7219_v31  ;;  %v7248_v49 = vld [vmem:[#allocation47_spill] sm:$0xff] }
 0x155   :  { %v489_v17 = vadd.f32 %v488_v54, %v447_v32  ;;  %v507_v0 = vadd.f32 %v506_v15, %v448_v7  ;;  %v3270_v9 = vpop.eup %3269  ;;  %3289 = vpow2.f32 %v5414_v14  ;;  %v372_v42 = vadd.f32 %v3266_v23, %v371_v56  ;;  %v7249_v54 = vld [vmem:[#allocation73_spill] sm:$0xff] }
 0x156   :  { %v390_v57 = vadd.f32 %v3268_v13, %v389_v2  ;;  %v456_v29 = vmul.f32 %v3266_v23, %v7220_v41  ;;  %v3272_v37 = vpop.eup %3271  ;;  %3291 = vpow2.f32 %v5417_v53  ;;  %v457_v8 = vmul.f32 %v3268_v13, %v7221_v30  ;;  %v7241_v30 = vld [vmem:[#allocation105_spill] sm:$0xff]  ;;  %v7250_v23 = vld [vmem:[#allocation99_spill] sm:$0xff] }
 0x157   :  { %v490_v38 = vadd.f32 %v489_v17, %v450_v48  ;;  %v508_v25 = vadd.f32 %v507_v0, %v451_v52  ;;  %v3274_v40 = vpop.eup %3273  ;;  %3293 = vpow2.f32 %v5420_v26  ;;  %v373_v31 = vadd.f32 %v3270_v9, %v372_v42  ;;  %v7251_v56 = vld [vmem:[#allocation133_spill] sm:$0xff]  ;;  %v7254_v42 = vld [vmem:[#allocation100_spill] sm:$0xff] }
 0x158   :  { %v391_v22 = vadd.f32 %v3272_v37, %v390_v57  ;;  %v459_v34 = vmul.f32 %v3270_v9, %v7222_v10  ;;  %v3276_v28 = vpop.eup %3275  ;;  %3295 = vpow2.f32 %v5423_v47  ;;  %v460_v14 = vmul.f32 %v3272_v37, %v7223_v33  ;;  %v7243_v10 = vld [vmem:[#allocation45_spill] sm:$0xff]  ;;  %v7253_v9 = vld [vmem:[#allocation94_spill] sm:$0xff] }
 0x159   :  { %v491_v41 = vadd.f32 %v490_v38, %v453_v44  ;;  %v509_v3 = vadd.f32 %v508_v25, %v454_v51  ;;  %v3278_v53 = vpop.eup %3277  ;;  %3297 = vpow2.f32 %v7241_v30  ;;  %v374_v4 = vadd.f32 %v3274_v40, %v373_v31  ;;  %v7252_v13 = vld [vmem:[#allocation49_spill] sm:$0xff]  ;;  %v7255_v25 = vld [vmem:[#allocation74_spill] sm:$0xff]  ;;  %v7256_v31 = vld [vmem:[#allocation95_spill] sm:$0xff]  ;;  %v5512_v30 = vpop.permute.xlu1 %2156 }
 0x15a   :  { %v392_v36 = vadd.f32 %v3276_v28, %v391_v22  ;;  %v462_v26 = vmul.f32 %v3274_v40, %v7242_v12  ;;  %v3280_v63 = vpop.eup %3279  ;;  %3299 = vpow2.f32 %v5435_v55  ;;  %v463_v27 = vmul.f32 %v3276_v28, %v7243_v10  ;;  %v7257_v28 = vld [vmem:[#allocation51_spill] sm:$0xff] }
 0x15b   :  { %v492_v46 = vadd.f32 %v491_v41, %v456_v29  ;;  %v510_v47 = vadd.f32 %v509_v3, %v457_v8  ;;  %v3282_v33 = vpop.eup %3281  ;;  %v1266_v61 = vmul.f32 %v7245_v43, %v7244_v35  ;;  %v1267_v18 = vmul.f32 %v7246_v45, %v7244_v35  ;;  %v5503_v29 = vpop.permute.xlu0 %2158  ;;  %v7260_v45 = vld [vmem:[#allocation53_spill] sm:$0xff] }
 0x15c   :  { %v375_v32 = vadd.f32 %v3278_v53, %v374_v4  ;;  %v393_v1 = vadd.f32 %v3280_v63, %v392_v36  ;;  %v3284_v7 = vpop.eup %3283  ;;  %v465_v62 = vmul.f32 %v3278_v53, %v7247_v16  ;;  %v466_v55 = vmul.f32 %v3280_v63, %v7248_v49  ;;  %v7258_v63 = vld [vmem:[#allocation75_spill] sm:$0xff] }
 0x15d   :  { %v493_v20 = vadd.f32 %v492_v46, %v459_v34  ;;  %v511_v21 = vadd.f32 %v510_v47, %v460_v14  ;;  %v3286_v48 = vpop.eup %3285  ;;  %v468_v15 = vmul.f32 %v3282_v33, %v7249_v54  ;;  %v1268_v2 = vmul.f32 %v7251_v56, %v7250_v23  ;;  %v7259_v47 = vld [vmem:[#allocation112_spill] sm:$0xff] }
 0x15e   :  { %v376_v58 = vadd.f32 %v3282_v33, %v375_v32  ;;  %v394_v52 = vadd.f32 %v3284_v7, %v393_v1  ;;  %v3288_v44 = vpop.eup %3287  ;;  %v469_v51 = vmul.f32 %v3284_v7, %v7252_v13  ;;  %v1287_v57 = vadd.f32 %v7254_v42, %v7253_v9  ;;  %v7261_v1 = vld [vmem:[#allocation78_spill] sm:$0xff]  ;;  %v7262_v7 = vld [vmem:[#allocation109_spill] sm:$0xff]  ;;  %v7265_v54 = vld [vmem:[#allocation76_spill] sm:$0xff] }
 0x15f   :  { %v494_v17 = vadd.f32 %v493_v20, %v462_v26  ;;  %v512_v0 = vadd.f32 %v511_v21, %v463_v27  ;;  %v3290_v37 = vpop.eup %3289  ;;  %v471_v40 = vmul.f32 %v3286_v48, %v7255_v25  ;;  %v5507_v22 = vadd.f32 %v7256_v31, %v1266_v61  ;;  %v5523_v20 = vpop.permute.xlu0 %2162  ;;  %v7269_v42 = vld [vmem:[#allocation83_spill] sm:$0xff]  ;;  %v7272_v25 = vld [vmem:[#allocation77_spill] sm:$0xff] }
 0x160   :  { %v377_v8 = vadd.f32 %v3286_v48, %v376_v58  ;;  %v395_v38 = vadd.f32 %v3288_v44, %v394_v52  ;;  %v3292_v34 = vpop.eup %3291  ;;  %v472_v14 = vmul.f32 %v3288_v44, %v7257_v28  ;;  %v5510_v53 = vadd.f32 %v1287_v57, %v1268_v2  ;;  %v7263_v58 = vld [vmem:[#allocation82_spill] sm:$0xff]  ;;  %v7267_v44 = vld [vmem:[#allocation107_spill] sm:$0xff]  ;;  %v7270_v57 = vld [vmem:[#allocation104_spill] sm:$0xff] }
 0x161   :  { %v495_v41 = vadd.f32 %v494_v17, %v465_v62  ;;  %v513_v3 = vadd.f32 %v512_v0, %v466_v55  ;;  %v3294_v4 = vpop.eup %3293  ;;  %v474_v10 = vmul.f32 %v3290_v37, %v7258_v63  ;;  %v5516_v33 = vadd.f32 %v7259_v47, %v1267_v18  ;;  %v7264_v52 = vld [vmem:[#allocation110_spill] sm:$0xff]  ;;  %v7268_v17 = vld [vmem:[#allocation55_spill] sm:$0xff] }
 0x162   :  { %v378_v36 = vadd.f32 %v3290_v37, %v377_v8  ;;  %v396_v12 = vadd.f32 %v3292_v34, %v395_v38  ;;  %v3296_v26 = vpop.eup %3295  ;;  %v475_v32 = vmul.f32 %v3292_v34, %v7260_v45  ;;  %v5521_v16 = vadd.f32 %v7262_v7, %v7261_v1  ;;  %v7266_v2 = vld [vmem:[#allocation18_spill] sm:$0xff]  ;;  %v7271_v8 = vld [vmem:[#allocation79_spill] sm:$0xff] }
 0x163   :  { %v496_v27 = vadd.f32 %v495_v41, %v468_v15  ;;  %v514_v46 = vadd.f32 %v513_v3, %v469_v51  ;;  %v3298_v35 = vpop.eup %3297  ;;  %v5527_v18 = vadd.f32 %v7264_v52, %v7263_v58  ;;  %v477_v15 = vmul.f32 %v3294_v4, %v7265_v54  ;;  %v5536_v51 = vpop.permute.xlu1 %2160  ;;  %v7273_v41 = vld [vmem:[#allocation84_spill] sm:$0xff]  ;;  %v7278_v63 = vld [vmem:[#allocation26_spill] sm:$0xff]  ;;  %v7281_v47 = vld [vmem:[#allocation27_spill] sm:$0xff] }
 0x164   :  { %v379_v43 = vadd.f32 %v3294_v4, %v378_v36  ;;  %v397_v61 = vadd.f32 %v3296_v26, %v396_v12  ;;  %v3300_v62 = vpop.eup %3299  ;;  %2248 = vrot.lane.b32.xlu0 %v5521_v16, %s3531_s13  ;;  %v5534_v13 = vadd.f32 %v7267_v44, %v7266_v2  ;;  %v478_v0 = vmul.f32 %v3296_v26, %v7268_v17  ;;  %v5552_v34 = vpop.permute.xlu0 %2166  ;;  %v7277_v26 = vld [vmem:[#allocation25_spill] sm:$0xff] }
 0x165   :  { %v497_v49 = vadd.f32 %v496_v27, %v471_v40  ;;  %v515_v55 = vadd.f32 %v514_v46, %v472_v14  ;;  %2246 = vrot.lane.b32.xlu1 %v5527_v18, %s3531_s13  ;;  %v5543_v37 = vadd.f32 %v7270_v57, %v7269_v42  ;;  %v5549_v38 = vadd.f32 %v5439_v11, %v7271_v8  ;;  %v7275_v11 = vld [vmem:[#allocation80_spill] sm:$0xff] }
 0x166   :  { %v380_v21 = vadd.f32 %v3298_v35, %v379_v43  ;;  %v398_v48 = vadd.f32 %v3300_v62, %v397_v61  ;;  %v480_v40 = vmul.f32 %v3298_v35, %v7272_v25  ;;  %v481_v28 = vmul.f32 %v3300_v62, %v7240_v39  ;;  %v7282_v43 = vld [vmem:[#allocation28_spill] sm:$0xff]  ;;  %v7285_v62 = vld [vmem:[#allocation30_spill] sm:$0xff]  ;;  %v7290_v25 = vld [vmem:[#allocation87_spill] sm:$0xff] }
 0x167   :  { %v498_v56 = vadd.f32 %v497_v49, %v474_v10  ;;  %v516_v9 = vadd.f32 %v515_v55, %v475_v32  ;;  %v5559_v3 = vadd.f32 %v5443_v50, %v7273_v41  ;;  %v5561_v4 = vpop.permute.xlu1 %2164  ;;  %v5567_v36 = vadd.f32 %v5451_v59, %v7275_v11  ;;  %v7279_v50 = vld [vmem:[#allocation85_spill] sm:$0xff] }
 0x168   :  { %3301 = vrcp.f32 %v380_v21  ;;  %2252 = vrot.lane.b32.xlu0 %v5534_v13, %s3531_s13  ;;  %v253_v39 = vmul.f32 1.442695, %v7277_v26  ;;  %v259_v10 = vmul.f32 1.442695, %v7278_v63  ;;  %v5575_v46 = vadd.f32 %v5457_v5, %v7279_v50  ;;  %v5579_v45 = vpop.permute.xlu0 %2170  ;;  %v7283_v32 = vld [vmem:[#allocation81_spill] sm:$0xff] }
 0x169   :  { %3303 = vrcp.f32 %v398_v48  ;;  %v499_v31 = vadd.f32 %v498_v56, %v477_v15  ;;  %v517_v14 = vadd.f32 %v516_v9, %v478_v0  ;;  %2250 = vrot.lane.b32.xlu1 %v5543_v37, %s3531_s13  ;;  %7274 = vst [vmem:[#allocation121_spill] sm:$0xff] %v5559_v3  ;;  %7276 = vst [vmem:[#allocation119_spill] sm:$0xff] %v5567_v36  ;;  %v265_v35 = vmul.f32 1.442695, %v7281_v47  ;;  %v7287_v15 = vld [vmem:[#allocation86_spill] sm:$0xff]  ;;  %v7289_v56 = vld [vmem:[#allocation32_spill] sm:$0xff] }
 0x16a   :  { %3305 = vlog2.f32 %v380_v21  ;;  %7280 = vst [vmem:[#allocation118_spill] sm:$0xff] %v5575_v46  ;;  %v271_v61 = vmul.f32 1.442695, %v7282_v43  ;;  %v5585_v7 = vadd.f32 %v5467_v19, %v7283_v32  ;;  %v277_v49 = vmul.f32 1.442695, %v7285_v62  ;;  %v7286_v21 = vld [vmem:[#allocation131_spill] sm:$0xff] }
 0x16b   :  { %3307 = vlog2.f32 %v398_v48  ;;  %v500_v12 = vadd.f32 %v499_v31, %v480_v40  ;;  %v518_v27 = vadd.f32 %v517_v14, %v481_v28  ;;  %v1269_v48 = vmul.f32 %v7286_v21, %v7250_v23  ;;  %v5590_v58 = vpop.permute.xlu1 %2168  ;;  %v7292_v31 = vld [vmem:[#allocation34_spill] sm:$0xff] }
 0x16c   :  { %2256 = vrot.lane.b32.xlu0 %v5549_v38, %s3531_s13  ;;  %3309 = vpow2.f32 %v253_v39  ;;  %7284 = vst [vmem:[#allocation114_spill] sm:$0xff] %v5585_v7  ;;  %v5596_v19 = vadd.f32 %v5473_v6, %v7287_v15  ;;  %v283_v44 = vmul.f32 1.442695, %v7289_v56  ;;  %v5604_v40 = vadd.f32 %v5483_v24, %v7290_v25  ;;  %v5607_v14 = vpop.permute.xlu0 %2174  ;;  %v7293_v39 = vld [vmem:[#allocation88_spill] sm:$0xff] }
 0x16d   :  { %2254 = vrot.lane.b32.xlu1 %v5559_v3, %s3531_s13  ;;  %3311 = vpow2.f32 %v259_v10  ;;  %v1306_v9 = vadd.f32 %v5507_v22, %v1269_v48  ;;  %v289_v28 = vmul.f32 1.442695, %v7292_v31  ;;  %v5613_v22 = vadd.f32 %v5489_v60, %v7293_v39  ;;  %v7295_v10 = vld [vmem:[#allocation36_spill] sm:$0xff]  ;;  %v7299_v48 = vld [vmem:[#allocation90_spill] sm:$0xff] }
 0x16e   :  { %3313 = vpow2.f32 %v265_v35  ;;  %7288 = vst [vmem:[#allocation115_spill] sm:$0xff] %v5596_v19  ;;  %7291 = vst [vmem:[#allocation59_spill] sm:$0xff] %v5604_v40 }
 0x16f   :  { %3315 = vpow2.f32 %v271_v61  ;;  %7294 = vst [vmem:[#allocation21_spill] sm:$0xff] %v5613_v22  ;;  %v5617_v35 = vpop.permute.xlu1 %2172 }
 0x170   :  { %2260 = vrot.lane.b32.xlu0 %v5567_v36, %s3531_s13  ;;  %3317 = vpow2.f32 %v277_v49 }
 0x171   :  { %2258 = vrot.lane.b32.xlu1 %v5575_v46, %s3531_s13  ;;  %3319 = vpow2.f32 %v283_v44  ;;  %v7301_v44 = vld [vmem:[#allocation40_spill] sm:$0xff] }
 0x172   :  { %v3302_v59 = vpop.eup %3301  ;;  %3321 = vpow2.f32 %v289_v28 }
 0x173   :  { %v3304_v5 = vpop.eup %3303  ;;  %v537_v55 = vmul.f32 %v3302_v59, %v500_v12  ;;  %v7296_v59 = vld [vmem:[#allocation89_spill] sm:$0xff] }
 0x174   :  { %v3306_v52 = vpop.eup %3305  ;;  %v538_v54 = vmul.f32 %v3304_v5, %v518_v27  ;;  %2264 = vrot.lane.b32.xlu0 %v5585_v7, %s3531_s13  ;;  %v295_v27 = vmul.f32 1.442695, %v7295_v10  ;;  %v5623_v49 = vadd.f32 %v5503_v29, %v7296_v59  ;;  %v7298_v5 = vld [vmem:[#allocation38_spill] sm:$0xff] }
 0x175   :  { %v3308_v17 = vpop.eup %3307  ;;  %v421_v0 = vmul.f32 0.6931472, %v3306_v52  ;;  %2262 = vrot.lane.b32.xlu1 %v5596_v19, %s3531_s13  ;;  %v5628_v52 = vadd.f32 %v5512_v30, %v7299_v48 }
 0x176   :  { %v423_v57 = vmul.f32 0.6931472, %v3308_v17  ;;  %7297 = vst [vmem:[#allocation60_spill] sm:$0xff] %v5623_v49  ;;  %v3310_v60 = vpop.eup %3309  ;;  %3323 = vpow2.f32 %v295_v27  ;;  %v307_v17 = vmul.f32 1.442695, %v7301_v44  ;;  %v7304_v27 = vld [vmem:[#allocation42_spill] sm:$0xff] }
 0x177   :  { %v540_v6 = vsub.f32 %v421_v0, %v537_v55  ;;  %v301_v55 = vmul.f32 1.442695, %v7298_v5  ;;  %7300 = vst [vmem:[#allocation22_spill] sm:$0xff] %v5628_v52  ;;  %v428_v29 = vmul.f32 %v3310_v60, %v7277_v26  ;;  %v313_v26 = vmul.f32 1.442695, %v7304_v27 }
 0x178   :  { %v541_v12 = vsub.f32 %v423_v57, %v538_v54  ;;  %2268 = vrot.lane.b32.xlu0 %v5604_v40, %s3531_s13  ;;  %v7302_v57 = vld [vmem:[#allocation92_spill] sm:$0xff]  ;;  %v5648_v40 = vpop.permute.xlu1 %2176 }
 0x179   :  { %v1325_v24 = vmul.f32 %v5510_v53, %v540_v6  ;;  %v3312_v53 = vpop.eup %3311  ;;  %2266 = vrot.lane.b32.xlu1 %v5613_v22, %s3531_s13  ;;  %v5638_v28 = vadd.f32 %v5523_v20, %v7302_v57  ;;  %v5640_v6 = vpop.permute.xlu0 %2178  ;;  %3325 = vpow2.f32 %v301_v55  ;;  %v7307_v55 = vld [vmem:[#allocation44_spill] sm:$0xff] }
 0x17a   :  { %v1326_v61 = vmul.f32 %v1306_v9, %v541_v12  ;;  %v3314_v0 = vpop.eup %3313  ;;  %v399_v30 = vadd.f32 %v3312_v53, %v3310_v60  ;;  %v431_v12 = vmul.f32 %v3312_v53, %v7278_v63  ;;  %v7305_v63 = vld [vmem:[#allocation93_spill] sm:$0xff]  ;;  %3327 = vpow2.f32 %v307_v17 }
 0x17b   :  { %v1328_v21 = vmul.f32 0.33962327, %v1325_v24  ;;  %7303 = vst [vmem:[#allocation61_spill] sm:$0xff] %v5638_v28  ;;  %v3316_v24 = vpop.eup %3315  ;;  %v434_v22 = vmul.f32 %v3314_v0, %v7281_v47  ;;  %v5655_v53 = vadd.f32 %v5536_v51, %v7305_v63  ;;  %3329 = vpow2.f32 %v313_v26  ;;  %v7312_v51 = vld [vmem:[#allocation46_spill] sm:$0xff] }
 0x17c   :  { %v5630_v54 = vmul.f32 0.33962327, %v1326_v61  ;;  %2272 = vrot.lane.b32.xlu0 %v5623_v49, %s3531_s13  ;;  %v400_v20 = vadd.f32 %v3314_v0, %v399_v30  ;;  %v437_v19 = vmul.f32 %v3316_v24, %v7282_v43  ;;  %v519_v7 = vadd.f32 %v431_v12, %v428_v29  ;;  %v3318_v60 = vpop.eup %3317  ;;  %v7310_v30 = vld [vmem:[#allocation96_spill] sm:$0xff] }
 0x17d   :  { %v2667_v9 = vrot.slane %v1328_v21, 1  ;;  %2270 = vrot.lane.b32.xlu1 %v5628_v52, %s3531_s13  ;;  %7306 = vst [vmem:[#allocation23_spill] sm:$0xff] %v5655_v53  ;;  %v319_v61 = vmul.f32 1.442695, %v7307_v55  ;;  %v440_v0 = vmul.f32 %v3318_v60, %v7285_v62  ;;  %v3320_v29 = vpop.eup %3319  ;;  %v5666_v12 = vadd.f32 %v5552_v34, %v7310_v30  ;;  %v5671_v36 = vpop.permute.xlu0 %2182  ;;  %v7315_v34 = vld [vmem:[#allocation48_spill] sm:$0xff] }
 0x17e   :  { %v7308_v49 = vrot.slane %v5630_v54, 1  ;;  %v401_v46 = vadd.f32 %v3316_v24, %v400_v20  ;;  %v520_v43 = vadd.f32 %v519_v7, %v434_v22  ;;  %v325_v17 = vmul.f32 1.442695, %v7312_v51  ;;  %v3322_v7 = vpop.eup %3321  ;;  %v7313_v22 = vld [vmem:[#allocation98_spill] sm:$0xff]  ;;  %v5681_v20 = vpop.permute.xlu1 %2180 }
 0x17f   :  { %7311 = vst [vmem:[#allocation62_spill] sm:$0xff] %v5666_v12  ;;  %v5678_v24 = vadd.f32 %v5561_v4, %v7313_v22  ;;  %3331 = vpow2.f32 %v319_v61  ;;  %v331_v26 = vmul.f32 1.442695, %v7315_v34  ;;  %v7318_v4 = vld [vmem:[#allocation50_spill] sm:$0xff] }
 0x180   :  { %v2669_v47 = vsel %vm7309_vm7, %v2667_v9, %v7308_v49  ;;  %2276 = vrot.lane.b32.xlu0 %v5638_v28, %s3531_s13  ;;  %v402_v49 = vadd.f32 %v3318_v60, %v401_v46  ;;  %v443_v9 = vmul.f32 %v3320_v29, %v7289_v56  ;;  %v521_v62 = vadd.f32 %v520_v43, %v437_v19  ;;  %v3324_v60 = vpop.eup %3323  ;;  %v7316_v19 = vld [vmem:[#allocation101_spill] sm:$0xff] }
 0x181   :  { %v5669_v52 = vadd.f32 %v2669_v47, %v1328_v21  ;;  %2274 = vrot.lane.b32.xlu1 %v5655_v53, %s3531_s13  ;;  %7314 = vst [vmem:[#allocation24_spill] sm:$0xff] %v5678_v24  ;;  %v446_v47 = vmul.f32 %v3322_v7, %v7292_v31  ;;  %v5688_v56 = vadd.f32 %v5579_v45, %v7316_v19  ;;  %3333 = vpow2.f32 %v325_v17  ;;  %v7319_v31 = vld [vmem:[#allocation102_spill] sm:$0xff]  ;;  %v2187_v45 = vpop.permute.xlu0 %2186 }
 0x182   :  { %v403_v21 = vadd.f32 %v3320_v29, %v402_v49  ;;  %v522_v46 = vadd.f32 %v521_v62, %v440_v0  ;;  %v337_v43 = vmul.f32 1.442695, %v7318_v4  ;;  %v449_v53 = vmul.f32 %v3324_v60, %v7295_v10  ;;  %v7320_v29 = vld [vmem:[#allocation52_spill] sm:$0xff]  ;;  %v7321_v10 = vld [vmem:[#allocation106_spill] sm:$0xff] }
 0x183   :  { %7317 = vst [vmem:[#allocation63_spill] sm:$0xff] %v5688_v56  ;;  %v3326_v3 = vpop.eup %3325  ;;  %v5696_v0 = vadd.f32 %v5590_v58, %v7319_v31  ;;  %3335 = vpow2.f32 %v331_v26  ;;  %v343_v49 = vmul.f32 1.442695, %v7320_v29 }
 0x184   :  { %2280 = vrot.lane.b32.xlu0 %v5666_v12, %s3531_s13  ;;  %v404_v61 = vadd.f32 %v3322_v7, %v403_v21  ;;  %v523_v28 = vadd.f32 %v522_v46, %v443_v9  ;;  %v452_v17 = vmul.f32 %v3326_v3, %v7298_v5  ;;  %v3328_v7 = vpop.eup %3327  ;;  %v5704_v9 = vadd.f32 %v5607_v14, %v7321_v10  ;;  %v7322_v21 = vld [vmem:[#allocation54_spill] sm:$0xff]  ;;  %v2185_v46 = vpop.permute.xlu1 %2184  ;;  %v7323_v5 = vld [vmem:[#allocation108_spill] sm:$0xff] }
 0x185   :  { %2278 = vrot.lane.b32.xlu1 %v5678_v24, %s3531_s13  ;;  %3337 = vpow2.f32 %v337_v43  ;;  %v349_v58 = vmul.f32 1.442695, %v7322_v21  ;;  %v455_v24 = vmul.f32 %v3328_v7, %v7301_v44 }
 0x186   :  { %v405_v62 = vadd.f32 %v3324_v60, %v404_v61  ;;  %v524_v19 = vadd.f32 %v523_v28, %v446_v47  ;;  %v3330_v60 = vpop.eup %3329  ;;  %v5712_v28 = vadd.f32 %v5617_v35, %v7323_v5  ;;  %3339 = vpow2.f32 %v343_v49  ;;  %v7324_v47 = vld [vmem:[#allocation56_spill] sm:$0xff]  ;;  %v2191_v35 = vpop.permute.xlu0 %2190 }
 0x187   :  { %v355_v14 = vmul.f32 1.442695, %v7324_v47  ;;  %v458_v43 = vmul.f32 %v3330_v60, %v7304_v27  ;;  %3341 = vpow2.f32 %v349_v58  ;;  %v7327_v27 = vld [vmem:[#allocation113_spill] sm:$0xff] }
 0x188   :  { %2284 = vrot.lane.b32.xlu0 %v5688_v56, %s3531_s13  ;;  %v406_v26 = vadd.f32 %v3326_v3, %v405_v62  ;;  %v525_v12 = vadd.f32 %v524_v19, %v449_v53  ;;  %v7325_v3 = vld [vmem:[#allocation111_spill] sm:$0xff]  ;;  %v7326_v53 = vld [vmem:[#allocation58_spill] sm:$0xff] }
 0x189   :  { %2282 = vrot.lane.b32.xlu1 %v5696_v0, %s3531_s13  ;;  %v3332_v56 = vpop.eup %3331  ;;  %v5720_v44 = vadd.f32 %v5640_v6, %v7325_v3  ;;  %v361_v19 = vmul.f32 1.442695, %v7326_v53  ;;  %3343 = vpow2.f32 %v355_v14 }
 0x18a   :  { %v407_v61 = vadd.f32 %v3328_v7, %v406_v26  ;;  %v526_v10 = vadd.f32 %v525_v12, %v452_v17  ;;  %v461_v49 = vmul.f32 %v3332_v56, %v7307_v55  ;;  %v5728_v12 = vadd.f32 %v5648_v40, %v7327_v27  ;;  %v2189_v17 = vpop.permute.xlu1 %2188  ;;  %v7328_v55 = vld [vmem:[#allocation116_spill] sm:$0xff] }
 0x18b   :  { %v3334_v7 = vpop.eup %3333  ;;  %3345 = vpow2.f32 %v361_v19  ;;  %v7330_v19 = vld [vmem:[#allocation120_spill] sm:$0xff] }
 0x18c   :  { %2288 = vrot.lane.b32.xlu0 %v5704_v9, %s3531_s13  ;;  %v408_v62 = vadd.f32 %v3330_v60, %v407_v61  ;;  %v527_v5 = vadd.f32 %v526_v10, %v455_v24  ;;  %v464_v58 = vmul.f32 %v3334_v7, %v7312_v51  ;;  %v5735_v24 = vadd.f32 %v5671_v36, %v7328_v55 }
 0x18d   :  { %2286 = vrot.lane.b32.xlu1 %v5712_v28, %s3531_s13  ;;  %v3336_v3 = vpop.eup %3335 }
 0x18e   :  { %v409_v6 = vadd.f32 %v3332_v56, %v408_v62  ;;  %v528_v26 = vadd.f32 %v527_v5, %v458_v43  ;;  %v467_v60 = vmul.f32 %v3336_v3, %v7315_v34  ;;  %v7329_v56 = vld [vmem:[#allocation117_spill] sm:$0xff]  ;;  %v2195_v5 = vpop.permute.xlu0 %2194  ;;  %v5748_v34 = vadd.f32 %v2187_v45, %v7330_v19  ;;  %v7332_v45 = vld [vmem:[#allocation123_spill] sm:$0xff] }
 0x18f   :  { %v3338_v61 = vpop.eup %3337  ;;  %v5742_v51 = vadd.f32 %v5681_v20, %v7329_v56  ;;  %v7331_v20 = vld [vmem:[#allocation122_spill] sm:$0xff] }
 0x190   :  { %2292 = vrot.lane.b32.xlu0 %v5720_v44, %s3531_s13  ;;  %v410_v10 = vadd.f32 %v3334_v7, %v409_v6  ;;  %v529_v40 = vadd.f32 %v528_v26, %v461_v49  ;;  %v470_v43 = vmul.f32 %v3338_v61, %v7318_v4  ;;  %v3340_v36 = vpop.eup %3339  ;;  %v2193_v49 = vpop.permute.xlu1 %2192  ;;  %v5753_v55 = vadd.f32 %v2185_v46, %v7331_v20 }
 0x191   :  { %2290 = vrot.lane.b32.xlu1 %v5728_v12, %s3531_s13  ;;  %v3342_v26 = vpop.eup %3341  ;;  %v473_v4 = vmul.f32 %v3340_v36, %v7320_v29 }
 0x192   :  { %v411_v14 = vadd.f32 %v3336_v3, %v410_v10  ;;  %v530_v62 = vadd.f32 %v529_v40, %v464_v58  ;;  %v5759_v40 = vadd.f32 %v2191_v35, %v7332_v45  ;;  %v476_v29 = vmul.f32 %v3342_v26, %v7322_v21 }
 0x193   :  { %v3344_v10 = vpop.eup %3343 }
 0x194   :  { %2296 = vrot.lane.b32.xlu0 %v5735_v24, %s3531_s13  ;;  %v412_v7 = vadd.f32 %v3338_v61, %v411_v14  ;;  %v531_v6 = vadd.f32 %v530_v62, %v467_v60  ;;  %v2199_v61 = vpop.permute.xlu0 %2198  ;;  %v7333_v62 = vld [vmem:[#allocation124_spill] sm:$0xff] }
 0x195   :  { %2294 = vrot.lane.b32.xlu1 %v5742_v51, %s3531_s13  ;;  %v3346_v14 = vpop.eup %3345  ;;  %v5764_v46 = vadd.f32 %v2189_v17, %v7333_v62  ;;  %v479_v17 = vmul.f32 %v3344_v10, %v7324_v47 }
 0x196   :  { %v413_v3 = vadd.f32 %v3340_v36, %v412_v7  ;;  %v532_v58 = vadd.f32 %v531_v6, %v470_v43  ;;  %v2197_v43 = vpop.permute.xlu1 %2196  ;;  %v7334_v6 = vld [vmem:[#allocation125_spill] sm:$0xff] }
 0x197   :  { %v5770_v35 = vadd.f32 %v2195_v5, %v7334_v6 }
 0x198   :  { %2300 = vrot.lane.b32.xlu0 %v5748_v34, %s3531_s13  ;;  %v414_v60 = vadd.f32 %v3342_v26, %v413_v3  ;;  %v533_v36 = vadd.f32 %v532_v58, %v473_v4  ;;  %v7335_v3 = vld [vmem:[#allocation126_spill] sm:$0xff]  ;;  %v2203_v21 = vpop.permute.xlu0 %2202  ;;  %v7336_v26 = vld [vmem:[#allocation129_spill] sm:$0xff] }
 0x199   :  { %2298 = vrot.lane.b32.xlu1 %v5753_v55, %s3531_s13  ;;  %v5775_v19 = vadd.f32 %v2193_v49, %v7335_v3  ;;  %v5781_v4 = vadd.f32 %v2199_v61, %v7336_v26  ;;  %v7337_v58 = vld [vmem:[#allocation130_spill] sm:$0xff]  ;;  %v482_v49 = vmul.f32 %v3346_v14, %v7326_v53  ;;  %v7340_v53 = vld [vmem:[#allocation91_spill] sm:$0xff] }
 0x19a   :  { %v415_v7 = vadd.f32 %v3344_v10, %v414_v60  ;;  %v534_v62 = vadd.f32 %v533_v36, %v476_v29  ;;  %v2201_v5 = vpop.permute.xlu1 %2200  ;;  %v5786_v60 = vadd.f32 %v2197_v43, %v7337_v58  ;;  %v7338_v10 = vld [vmem:[#allocation134_spill] sm:$0xff]  ;;  %v7341_v43 = vld [vmem:[#allocation132_spill] sm:$0xff] }
 0x19b   :  { %v5792_v29 = vadd.f32 %v2203_v21, %v7338_v10  ;;  %v7342_v10 = vld [vmem:[#allocation103_spill] sm:$0xff] }
 0x19c   :  { %2304 = vrot.lane.b32.xlu0 %v5759_v40, %s3531_s13  ;;  %v416_v45 = vadd.f32 %v3346_v14, %v415_v7  ;;  %v535_v47 = vadd.f32 %v534_v62, %v479_v17  ;;  %v1270_v17 = vmul.f32 %v7341_v43, %v7250_v23 }
 0x19d   :  { %2302 = vrot.lane.b32.xlu1 %v5764_v46, %s3531_s13 }
 0x19e   :  { %3347 = vrcp.f32 %v416_v45  ;;  %v536_v7 = vadd.f32 %v535_v47, %v482_v49  ;;  %v1324_v49 = vadd.f32 %v5516_v33, %v1270_v17  ;;  %v2681_v33 = vrot.slane %v5669_v52, 2 }
 0x19f   :  { %3349 = vlog2.f32 %v416_v45  ;;  %v2207_v36 = vpop.permute.xlu0 %2206  ;;  %v7339_v45 = vld [vmem:[#allocation135_spill] sm:$0xff] }
 0x1a0   :  { %2308 = vrot.lane.b32.xlu0 %v5770_v35, %s3531_s13  ;;  %v5797_v61 = vadd.f32 %v2201_v5, %v7339_v45  ;;  %v5802_v14 = vadd.f32 %v2207_v36, %v7340_v53  ;;  %v7343_v45 = vrot.slane %v5630_v54, 1 }
 0x1a1   :  { %2306 = vrot.lane.b32.xlu1 %v5775_v19, %s3531_s13  ;;  %v2205_v26 = vpop.permute.xlu1 %2204 }
 0x1a2   :  { %v5809_v58 = vadd.f32 %v2205_v26, %v7342_v10 }
 0x1a4   :  { %2312 = vrot.lane.b32.xlu0 %v5781_v4, %s3531_s13 }
 0x1a5   :  { %2310 = vrot.lane.b32.xlu1 %v5786_v60, %s3531_s13 }
 0x1a8   :  { %2316 = vrot.lane.b32.xlu0 %v5792_v29, %s3531_s13  ;;  %v3348_v62 = vpop.eup %3347 }
 0x1a9   :  { %v3350_v21 = vpop.eup %3349  ;;  %2314 = vrot.lane.b32.xlu1 %v5797_v61, %s3531_s13  ;;  %v539_v5 = vmul.f32 %v3348_v62, %v536_v7 }
 0x1aa   :  { %v425_v47 = vmul.f32 0.6931472, %v3350_v21 }
 0x1ac   :  { %2320 = vrot.lane.b32.xlu0 %v5802_v14, %s3531_s13  ;;  %v542_v36 = vsub.f32 %v425_v47, %v539_v5 }
 0x1ad   :  { %2318 = vrot.lane.b32.xlu1 %v5809_v58, %s3531_s13 }
 0x1ae   :  { %v1327_v53 = vmul.f32 %v1324_v49, %v542_v36 }
 0x1b0   :  { %v1330_v23 = vmul.f32 0.33962327, %v1327_v53 }
 0x1b2   :  { %v2670_v43 = vrot.slane %v1330_v23, 1 }
 0x1b4   :  { %v2671_v3 = vsel %vm7344_vm1, %v7343_v45, %v2670_v43  ;;  %v2677_v26 = vadd.f32 %v2670_v43, %v1330_v23 }
 0x1b5   :  { %v2676_v7 = vadd.f32 %v2671_v3, %v5630_v54 }
 0x1b6   :  { %v2684_v62 = vrot.slane %v2677_v26, 2 }
 0x1b7   :  { %v2682_v17 = vrot.slane %v2676_v7, 2 }
 0x1b8   :  { %v2691_v21 = vadd.f32 %v2684_v62, %v2677_v26 }
 0x1b9   :  { %v2685_v5 = vsel %vm7345_vm11, %v2682_v17, %v2684_v62  ;;  %v2683_v47 = vsel %vm7346_vm2, %v2681_v33, %v2682_v17  ;;  %v7355_v62 = vld [vmem:[#allocation115_spill] sm:$0xff] }
 0x1ba   :  { %v2690_v10 = vadd.f32 %v2685_v5, %v2676_v7  ;;  %v2689_v53 = vadd.f32 %v2683_v47, %v5669_v52  ;;  %v2698_v36 = vrot.slane %v2691_v21, 4  ;;  %v5847_v52 = vpop.permute.xlu1 %2550  ;;  %v7354_v7 = vld [vmem:[#allocation114_spill] sm:$0xff]  ;;  %v7356_v47 = vld [vmem:[#allocation59_spill] sm:$0xff] }
 0x1bc   :  { %v2696_v49 = vrot.slane %v2690_v10, 4  ;;  %v2695_v6 = vrot.slane %v2689_v53, 4 }
 0x1be   :  { %v2699_v45 = vsel %vm7347_vm8, %v2696_v49, %v2698_v36  ;;  %v2697_v43 = vsel %vm7348_vm13, %v2695_v6, %v2696_v49  ;;  %v7353_v6 = vld [vmem:[#allocation118_spill] sm:$0xff]  ;;  %v7357_v49 = vld [vmem:[#allocation21_spill] sm:$0xff] }
 0x1bf   :  { %v2703_v3 = vadd.f32 %v2699_v45, %v2690_v10  ;;  %v2702_v20 = vadd.f32 %v2697_v43, %v2689_v53 }
 0x1c1   :  { %v5826_v56 = vadd.f32 %v2703_v3, %v1330_v23  ;;  %v5829_v26 = vadd.f32 %v2702_v20, %v5630_v54  ;;  %v7358_v3 = vld [vmem:[#allocation60_spill] sm:$0xff] }
 0x1c3   :  { %7349 = vst [vmem:[#allocation29_spill] sm:$0xff] %v5826_v56  ;;  %7350 = vst [vmem:[#allocation64_spill] sm:$0xff] %v5829_v26  ;;  %2708 = vrot.lane.b32.xlu0 %v5826_v56, %s3529_s1  ;;  %2706 = vrot.lane.b32.xlu1 %v5829_v26, %s3529_s1 }
 0x1c7   :  { %2552 = vrot.lane.b32.xlu0 %v7261_v1, %s3530_s12  ;;  %2554 = vrot.lane.b32.xlu1 %v7269_v42, %s3530_s12 }
 0x1cb   :  { %2556 = vrot.lane.b32.xlu0 %v7266_v2, %s3530_s12  ;;  %2558 = vrot.lane.b32.xlu1 %v7273_v41, %s3530_s12 }
 0x1cf   :  { %2560 = vrot.lane.b32.xlu0 %v7271_v8, %s3530_s12  ;;  %2562 = vrot.lane.b32.xlu1 %v7279_v50, %s3530_s12 }
 0x1d3   :  { %2564 = vrot.lane.b32.xlu0 %v7275_v11, %s3530_s12  ;;  %2566 = vrot.lane.b32.xlu1 %v7287_v15, %s3530_s12 }
 0x1d6   :  { %v2249_v1 = vpop.permute.xlu0 %2248 }
 0x1d7   :  { %2568 = vrot.lane.b32.xlu0 %v7283_v32, %s3530_s12  ;;  %2570 = vrot.lane.b32.xlu1 %v7293_v39, %s3530_s12  ;;  %v2247_v2 = vpop.permute.xlu1 %2246 }
 0x1d8   :  { %v5877_v39 = vadd.f32 %v2247_v2, %v5527_v18  ;;  %v7359_v2 = vld [vmem:[#allocation22_spill] sm:$0xff] }
 0x1da   :  { %v2253_v42 = vpop.permute.xlu0 %2252 }
 0x1db   :  { %2572 = vrot.lane.b32.xlu0 %v7290_v25, %s3530_s12  ;;  %2574 = vrot.lane.b32.xlu1 %v7299_v48, %s3530_s12  ;;  %v2251_v8 = vpop.permute.xlu1 %2250  ;;  %v5874_v25 = vadd.f32 %v2249_v1, %v5521_v16  ;;  %v5884_v54 = vadd.f32 %v2253_v42, %v5534_v13 }
 0x1de   :  { %v2257_v41 = vpop.permute.xlu0 %2256 }
 0x1df   :  { %2576 = vrot.lane.b32.xlu0 %v7296_v59, %s3530_s12  ;;  %2578 = vrot.lane.b32.xlu1 %v7305_v63, %s3530_s12  ;;  %v2255_v11 = vpop.permute.xlu1 %2254  ;;  %v5894_v18 = vadd.f32 %v2257_v41, %v5549_v38 }
 0x1e2   :  { %v2261_v50 = vpop.permute.xlu0 %2260 }
 0x1e3   :  { %2580 = vrot.lane.b32.xlu0 %v7302_v57, %s3530_s12  ;;  %2582 = vrot.lane.b32.xlu1 %v7313_v22, %s3530_s12  ;;  %v2259_v32 = vpop.permute.xlu1 %2258  ;;  %v5887_v57 = vadd.f32 %v2251_v8, %v5543_v37  ;;  %v7352_v37 = vld [vmem:[#allocation119_spill] sm:$0xff] }
 0x1e4   :  { %v5904_v20 = vadd.f32 %v2261_v50, %v7352_v37  ;;  %v5907_v10 = vadd.f32 %v2259_v32, %v7353_v6  ;;  %v7361_v32 = vld [vmem:[#allocation23_spill] sm:$0xff] }
 0x1e6   :  { %v2265_v15 = vpop.permute.xlu0 %2264 }
 0x1e7   :  { %2584 = vrot.lane.b32.xlu0 %v7310_v30, %s3530_s12  ;;  %2586 = vrot.lane.b32.xlu1 %v7319_v31, %s3530_s12  ;;  %v2263_v59 = vpop.permute.xlu1 %2262  ;;  %v7351_v30 = vld [vmem:[#allocation121_spill] sm:$0xff]  ;;  %v5914_v33 = vadd.f32 %v2265_v15, %v7354_v7 }
 0x1e8   :  { %v5897_v22 = vadd.f32 %v2255_v11, %v7351_v30  ;;  %v5917_v17 = vadd.f32 %v2263_v59, %v7355_v62  ;;  %v7360_v11 = vld [vmem:[#allocation61_spill] sm:$0xff] }
 0x1ea   :  { %v2269_v48 = vpop.permute.xlu0 %2268 }
 0x1eb   :  { %2362 = vrot.lane.b32.xlu0 %v5874_v25, %s3530_s12  ;;  %2360 = vrot.lane.b32.xlu1 %v5877_v39, %s3530_s12  ;;  %v2267_v63 = vpop.permute.xlu1 %2266  ;;  %v5924_v53 = vadd.f32 %v2269_v48, %v7356_v47  ;;  %v7362_v48 = vld [vmem:[#allocation62_spill] sm:$0xff] }
 0x1ec   :  { %v5927_v36 = vadd.f32 %v2267_v63, %v7357_v49 }
 0x1ee   :  { %v2273_v16 = vpop.permute.xlu0 %2272 }
 0x1ef   :  { %2366 = vrot.lane.b32.xlu0 %v5884_v54, %s3530_s12  ;;  %2364 = vrot.lane.b32.xlu1 %v5887_v57, %s3530_s12  ;;  %v2271_v31 = vpop.permute.xlu1 %2270  ;;  %v5934_v1 = vadd.f32 %v2273_v16, %v7358_v3  ;;  %v7363_v16 = vld [vmem:[#allocation24_spill] sm:$0xff] }
 0x1f0   :  { %v5937_v42 = vadd.f32 %v2271_v31, %v7359_v2 }
 0x1f2   :  { %v2277_v13 = vpop.permute.xlu0 %2276 }
 0x1f3   :  { %2370 = vrot.lane.b32.xlu0 %v5894_v18, %s3530_s12  ;;  %2368 = vrot.lane.b32.xlu1 %v5897_v22, %s3530_s12  ;;  %v2275_v23 = vpop.permute.xlu1 %2274  ;;  %v5944_v50 = vadd.f32 %v2277_v13, %v7360_v11  ;;  %v7364_v13 = vld [vmem:[#allocation63_spill] sm:$0xff] }
 0x1f4   :  { %v5947_v15 = vadd.f32 %v2275_v23, %v7361_v32 }
 0x1f6   :  { %v2281_v38 = vpop.permute.xlu0 %2280 }
 0x1f7   :  { %2374 = vrot.lane.b32.xlu0 %v5904_v20, %s3530_s12  ;;  %2372 = vrot.lane.b32.xlu1 %v5907_v10, %s3530_s12  ;;  %v2279_v21 = vpop.permute.xlu1 %2278  ;;  %v5954_v63 = vadd.f32 %v2281_v38, %v7362_v48  ;;  %v7366_v48 = vld [vmem:[#allocation108_spill] sm:$0xff] }
 0x1f8   :  { %v5957_v30 = vadd.f32 %v2279_v21, %v7363_v16 }
 0x1fa   :  { %v2285_v5 = vpop.permute.xlu0 %2284 }
 0x1fb   :  { %2378 = vrot.lane.b32.xlu0 %v5914_v33, %s3530_s12  ;;  %2376 = vrot.lane.b32.xlu1 %v5917_v17, %s3530_s12  ;;  %v2283_v45 = vpop.permute.xlu1 %2282  ;;  %v5964_v6 = vadd.f32 %v2285_v5, %v7364_v13 }
 0x1fc   :  { %v5967_v23 = vadd.f32 %v2283_v45, %v5696_v0 }
 0x1fe   :  { %v2289_v43 = vpop.permute.xlu0 %2288 }
 0x1ff   :  { %2382 = vrot.lane.b32.xlu0 %v5924_v53, %s3530_s12  ;;  %2380 = vrot.lane.b32.xlu1 %v5927_v36, %s3530_s12  ;;  %v2287_v8 = vpop.permute.xlu1 %2286  ;;  %v5974_v62 = vadd.f32 %v2289_v43, %v5704_v9 }
 0x200   :  { %v5977_v21 = vadd.f32 %v2287_v8, %v5712_v28 }
 0x202   :  { %v2293_v41 = vpop.permute.xlu0 %2292 }
 0x203   :  { %2386 = vrot.lane.b32.xlu0 %v5934_v1, %s3530_s12  ;;  %2384 = vrot.lane.b32.xlu1 %v5937_v42, %s3530_s12  ;;  %v2291_v59 = vpop.permute.xlu1 %2290  ;;  %v5984_v0 = vadd.f32 %v2293_v41, %v5720_v44 }
 0x204   :  { %v5987_v5 = vadd.f32 %v2291_v59, %v5728_v12  ;;  %v7365_v59 = vld [vmem:[#allocation101_spill] sm:$0xff] }
 0x206   :  { %v2297_v31 = vpop.permute.xlu0 %2296 }
 0x207   :  { %2390 = vrot.lane.b32.xlu0 %v5944_v50, %s3530_s12  ;;  %2388 = vrot.lane.b32.xlu1 %v5947_v15, %s3530_s12  ;;  %v2295_v37 = vpop.permute.xlu1 %2294  ;;  %v5994_v9 = vadd.f32 %v2297_v31, %v5735_v24 }
 0x208   :  { %v5997_v28 = vadd.f32 %v2295_v37, %v5742_v51 }
 0x20a   :  { %v2301_v7 = vpop.permute.xlu0 %2300 }
 0x20b   :  { %2394 = vrot.lane.b32.xlu0 %v5954_v63, %s3530_s12  ;;  %2392 = vrot.lane.b32.xlu1 %v5957_v30, %s3530_s12  ;;  %v2299_v38 = vpop.permute.xlu1 %2298  ;;  %v6004_v12 = vadd.f32 %v2301_v7, %v5748_v34  ;;  %v7367_v7 = vld [vmem:[#allocation106_spill] sm:$0xff] }
 0x20c   :  { %v6007_v43 = vadd.f32 %v2299_v38, %v5753_v55 }
 0x20e   :  { %v2305_v47 = vpop.permute.xlu0 %2304 }
 0x20f   :  { %2398 = vrot.lane.b32.xlu0 %v5964_v6, %s3530_s12  ;;  %2396 = vrot.lane.b32.xlu1 %v5967_v23, %s3530_s12  ;;  %v2303_v49 = vpop.permute.xlu1 %2302  ;;  %v6014_v24 = vadd.f32 %v2305_v47, %v5759_v40 }
 0x210   :  { %v6017_v51 = vadd.f32 %v2303_v49, %v5764_v46  ;;  %v7368_v49 = vld [vmem:[#allocation111_spill] sm:$0xff] }
 0x212   :  { %v2309_v45 = vpop.permute.xlu0 %2308 }
 0x213   :  { %2402 = vrot.lane.b32.xlu0 %v5974_v62, %s3530_s12  ;;  %2400 = vrot.lane.b32.xlu1 %v5977_v21, %s3530_s12  ;;  %v2307_v44 = vpop.permute.xlu1 %2306  ;;  %v6024_v55 = vadd.f32 %v2309_v45, %v5770_v35  ;;  %v7369_v45 = vld [vmem:[#allocation117_spill] sm:$0xff] }
 0x214   :  { %v6027_v34 = vadd.f32 %v2307_v44, %v5775_v19 }
 0x216   :  { %v2313_v3 = vpop.permute.xlu0 %2312 }
 0x217   :  { %2406 = vrot.lane.b32.xlu0 %v5984_v0, %s3530_s12  ;;  %2404 = vrot.lane.b32.xlu1 %v5987_v5, %s3530_s12  ;;  %v2311_v2 = vpop.permute.xlu1 %2310  ;;  %v6034_v46 = vadd.f32 %v2313_v3, %v5781_v4 }
 0x218   :  { %v6037_v41 = vadd.f32 %v2311_v2, %v5786_v60  ;;  %v7370_v2 = vld [vmem:[#allocation116_spill] sm:$0xff] }
 0x21a   :  { %v2317_v8 = vpop.permute.xlu0 %2316 }
 0x21b   :  { %2410 = vrot.lane.b32.xlu0 %v5994_v9, %s3530_s12  ;;  %2408 = vrot.lane.b32.xlu1 %v5997_v28, %s3530_s12  ;;  %v2315_v40 = vpop.permute.xlu1 %2314  ;;  %v6044_v19 = vadd.f32 %v2317_v8, %v5792_v29  ;;  %v7371_v8 = vld [vmem:[#allocation122_spill] sm:$0xff] }
 0x21c   :  { %v6047_v35 = vadd.f32 %v2315_v40, %v5797_v61 }
 0x21e   :  { %v2321_v11 = vpop.permute.xlu0 %2320 }
 0x21f   :  { %2414 = vrot.lane.b32.xlu0 %v6004_v12, %s3530_s12  ;;  %2412 = vrot.lane.b32.xlu1 %v6007_v43, %s3530_s12  ;;  %v2319_v32 = vpop.permute.xlu1 %2318  ;;  %v6054_v4 = vadd.f32 %v2321_v11, %v5802_v14  ;;  %v7372_v11 = vld [vmem:[#allocation120_spill] sm:$0xff] }
 0x220   :  { %v6057_v60 = vadd.f32 %v2319_v32, %v5809_v58 }
 0x223   :  { %2418 = vrot.lane.b32.xlu0 %v6014_v24, %s3530_s12  ;;  %2416 = vrot.lane.b32.xlu1 %v6017_v51, %s3530_s12 }
 0x227   :  { %2422 = vrot.lane.b32.xlu0 %v6024_v55, %s3530_s12  ;;  %2420 = vrot.lane.b32.xlu1 %v6027_v34, %s3530_s12 }
 0x22b   :  { %2426 = vrot.lane.b32.xlu0 %v6034_v46, %s3530_s12  ;;  %2424 = vrot.lane.b32.xlu1 %v6037_v41, %s3530_s12 }
 0x22f   :  { %2430 = vrot.lane.b32.xlu0 %v6044_v19, %s3530_s12  ;;  %2428 = vrot.lane.b32.xlu1 %v6047_v35, %s3530_s12 }
 0x233   :  { %2434 = vrot.lane.b32.xlu0 %v6054_v4, %s3530_s12  ;;  %2432 = vrot.lane.b32.xlu1 %v6057_v60, %s3530_s12 }
 0x235   :  { %v2709_v29 = vpop.permute.xlu0 %2708  ;;  %v2707_v61 = vpop.permute.xlu1 %2706 }
 0x236   :  { %v6068_v14 = vadd.f32 %v2709_v29, %v5826_v56  ;;  %v6071_v58 = vadd.f32 %v2707_v61, %v5829_v26 }
 0x237   :  { %2588 = vrot.lane.b32.xlu0 %v7365_v59, %s3530_s12  ;;  %2590 = vrot.lane.b32.xlu1 %v7366_v48, %s3530_s12 }
 0x239   :  { %v6073_v16 = vpop.permute.xlu0 %2552  ;;  %v6075_v31 = vpop.permute.xlu1 %2554 }
 0x23b   :  { %2714 = vrot.lane.b32.xlu0 %v6068_v14, %s3531_s13  ;;  %2712 = vrot.lane.b32.xlu1 %v6071_v58, %s3531_s13 }
 0x23d   :  { %v6081_v37 = vpop.permute.xlu0 %2556  ;;  %v6083_v13 = vpop.permute.xlu1 %2558 }
 0x23f   :  { %2592 = vrot.lane.b32.xlu0 %v7367_v7, %s3530_s12  ;;  %2594 = vrot.lane.b32.xlu1 %v7327_v27, %s3530_s12 }
 0x241   :  { %v6089_v38 = vpop.permute.xlu0 %2560  ;;  %v6091_v47 = vpop.permute.xlu1 %2562 }
 0x243   :  { %2596 = vrot.lane.b32.xlu0 %v7368_v49, %s3530_s12  ;;  %2598 = vrot.lane.b32.xlu1 %v7369_v45, %s3530_s12 }
 0x245   :  { %v6097_v44 = vpop.permute.xlu0 %2564  ;;  %v6099_v3 = vpop.permute.xlu1 %2566 }
 0x247   :  { %2600 = vrot.lane.b32.xlu0 %v7370_v2, %s3530_s12  ;;  %2602 = vrot.lane.b32.xlu1 %v7371_v8, %s3530_s12 }
 0x249   :  { %v6105_v27 = vpop.permute.xlu0 %2568  ;;  %v6107_v40 = vpop.permute.xlu1 %2570 }
 0x24b   :  { %2604 = vrot.lane.b32.xlu0 %v7372_v11, %s3530_s12 }
 0x24d   :  { %v6111_v32 = vpop.permute.xlu0 %2572  ;;  %v6113_v29 = vpop.permute.xlu1 %2574 }
 0x251   :  { %v6115_v61 = vpop.permute.xlu0 %2576  ;;  %v6117_v59 = vpop.permute.xlu1 %2578 }
 0x252   :  { %7373 = vst [vmem:[#allocation31_spill] sm:$0xff] %v6117_v59 }
 0x255   :  { %v6119_v48 = vpop.permute.xlu0 %2580  ;;  %v6121_v7 = vpop.permute.xlu1 %2582 }
 0x256   :  { %7374 = vst [vmem:[#allocation65_spill] sm:$0xff] %v6119_v48  ;;  %7375 = vst [vmem:[#allocation33_spill] sm:$0xff] %v6121_v7 }
 0x259   :  { %v6123_v49 = vpop.permute.xlu0 %2584  ;;  %v6125_v45 = vpop.permute.xlu1 %2586 }
 0x25a   :  { %7376 = vst [vmem:[#allocation66_spill] sm:$0xff] %v6123_v49  ;;  %7377 = vst [vmem:[#allocation35_spill] sm:$0xff] %v6125_v45 }
 0x25d   :  { %v2363_v2 = vpop.permute.xlu0 %2362  ;;  %v2361_v8 = vpop.permute.xlu1 %2360 }
 0x25e   :  { %v2437_v11 = vadd.f32 %v2363_v2, %v5874_v25  ;;  %v2436_v26 = vadd.f32 %v2361_v8, %v5877_v39 }
 0x260   :  { %2476 = vrot.lane.b32.xlu0 %v2437_v11, %s3532_s14  ;;  %2474 = vrot.lane.b32.xlu1 %v2436_v26, %s3532_s14 }
 0x261   :  { %v2367_v56 = vpop.permute.xlu0 %2366  ;;  %v2365_v59 = vpop.permute.xlu1 %2364 }
 0x262   :  { %v2439_v48 = vadd.f32 %v2367_v56, %v5884_v54  ;;  %v2438_v7 = vadd.f32 %v2365_v59, %v5887_v57 }
 0x264   :  { %2480 = vrot.lane.b32.xlu0 %v2439_v48, %s3532_s14  ;;  %2478 = vrot.lane.b32.xlu1 %v2438_v7, %s3532_s14 }
 0x265   :  { %v2371_v45 = vpop.permute.xlu0 %2370  ;;  %v2369_v49 = vpop.permute.xlu1 %2368 }
 0x266   :  { %v2441_v25 = vadd.f32 %v2371_v45, %v5894_v18  ;;  %v2440_v39 = vadd.f32 %v2369_v49, %v5897_v22 }
 0x268   :  { %2484 = vrot.lane.b32.xlu0 %v2441_v25, %s3532_s14  ;;  %2482 = vrot.lane.b32.xlu1 %v2440_v39, %s3532_s14 }
 0x269   :  { %v2375_v26 = vpop.permute.xlu0 %2374  ;;  %v2373_v2 = vpop.permute.xlu1 %2372 }
 0x26a   :  { %v2443_v56 = vadd.f32 %v2375_v26, %v5904_v20  ;;  %v2442_v54 = vadd.f32 %v2373_v2, %v5907_v10 }
 0x26c   :  { %2488 = vrot.lane.b32.xlu0 %v2443_v56, %s3532_s14  ;;  %2486 = vrot.lane.b32.xlu1 %v2442_v54, %s3532_s14 }
 0x26d   :  { %v2379_v57 = vpop.permute.xlu0 %2378  ;;  %v2377_v59 = vpop.permute.xlu1 %2376 }
 0x26e   :  { %v2445_v18 = vadd.f32 %v2379_v57, %v5914_v33  ;;  %v2444_v22 = vadd.f32 %v2377_v59, %v5917_v17 }
 0x270   :  { %2492 = vrot.lane.b32.xlu0 %v2445_v18, %s3532_s14  ;;  %2490 = vrot.lane.b32.xlu1 %v2444_v22, %s3532_s14 }
 0x271   :  { %v2383_v48 = vpop.permute.xlu0 %2382  ;;  %v2381_v7 = vpop.permute.xlu1 %2380 }
 0x272   :  { %v2447_v20 = vadd.f32 %v2383_v48, %v5924_v53  ;;  %v2446_v10 = vadd.f32 %v2381_v7, %v5927_v36 }
 0x274   :  { %2496 = vrot.lane.b32.xlu0 %v2447_v20, %s3532_s14  ;;  %2494 = vrot.lane.b32.xlu1 %v2446_v10, %s3532_s14 }
 0x275   :  { %v2387_v49 = vpop.permute.xlu0 %2386  ;;  %v2385_v45 = vpop.permute.xlu1 %2384 }
 0x276   :  { %v2449_v33 = vadd.f32 %v2387_v49, %v5934_v1  ;;  %v2448_v17 = vadd.f32 %v2385_v45, %v5937_v42 }
 0x278   :  { %2500 = vrot.lane.b32.xlu0 %v2449_v33, %s3532_s14  ;;  %2498 = vrot.lane.b32.xlu1 %v2448_v17, %s3532_s14 }
 0x279   :  { %v2391_v8 = vpop.permute.xlu0 %2390  ;;  %v2389_v11 = vpop.permute.xlu1 %2388 }
 0x27a   :  { %v2451_v53 = vadd.f32 %v2391_v8, %v5944_v50  ;;  %v2450_v36 = vadd.f32 %v2389_v11, %v5947_v15 }
 0x27c   :  { %2504 = vrot.lane.b32.xlu0 %v2451_v53, %s3532_s14  ;;  %2502 = vrot.lane.b32.xlu1 %v2450_v36, %s3532_s14 }
 0x27d   :  { %v2395_v25 = vpop.permute.xlu0 %2394  ;;  %v2393_v39 = vpop.permute.xlu1 %2392 }
 0x27e   :  { %v2453_v1 = vadd.f32 %v2395_v25, %v5954_v63  ;;  %v2452_v42 = vadd.f32 %v2393_v39, %v5957_v30 }
 0x280   :  { %2508 = vrot.lane.b32.xlu0 %v2453_v1, %s3532_s14  ;;  %2506 = vrot.lane.b32.xlu1 %v2452_v42, %s3532_s14 }
 0x281   :  { %v2399_v26 = vpop.permute.xlu0 %2398  ;;  %v2397_v2 = vpop.permute.xlu1 %2396 }
 0x282   :  { %v2455_v50 = vadd.f32 %v2399_v26, %v5964_v6  ;;  %v2454_v15 = vadd.f32 %v2397_v2, %v5967_v23 }
 0x284   :  { %2512 = vrot.lane.b32.xlu0 %v2455_v50, %s3532_s14  ;;  %2510 = vrot.lane.b32.xlu1 %v2454_v15, %s3532_s14 }
 0x285   :  { %v2403_v56 = vpop.permute.xlu0 %2402  ;;  %v2401_v54 = vpop.permute.xlu1 %2400 }
 0x286   :  { %v2457_v63 = vadd.f32 %v2403_v56, %v5974_v62  ;;  %v2456_v30 = vadd.f32 %v2401_v54, %v5977_v21 }
 0x288   :  { %2516 = vrot.lane.b32.xlu0 %v2457_v63, %s3532_s14  ;;  %2514 = vrot.lane.b32.xlu1 %v2456_v30, %s3532_s14  ;;  %v7382_v30 = vld [vmem:[#allocation129_spill] sm:$0xff] }
 0x289   :  { %v2407_v57 = vpop.permute.xlu0 %2406  ;;  %v2405_v59 = vpop.permute.xlu1 %2404 }
 0x28a   :  { %v2459_v6 = vadd.f32 %v2407_v57, %v5984_v0  ;;  %v2458_v23 = vadd.f32 %v2405_v59, %v5987_v5  ;;  %v7383_v57 = vld [vmem:[#allocation130_spill] sm:$0xff] }
 0x28c   :  { %2520 = vrot.lane.b32.xlu0 %v2459_v6, %s3532_s14  ;;  %2518 = vrot.lane.b32.xlu1 %v2458_v23, %s3532_s14  ;;  %v7384_v23 = vld [vmem:[#allocation134_spill] sm:$0xff] }
 0x28d   :  { %v2411_v18 = vpop.permute.xlu0 %2410  ;;  %v2409_v22 = vpop.permute.xlu1 %2408 }
 0x28e   :  { %v2461_v62 = vadd.f32 %v2411_v18, %v5994_v9  ;;  %v2460_v21 = vadd.f32 %v2409_v22, %v5997_v28  ;;  %v7385_v18 = vld [vmem:[#allocation135_spill] sm:$0xff] }
 0x290   :  { %2524 = vrot.lane.b32.xlu0 %v2461_v62, %s3532_s14  ;;  %2522 = vrot.lane.b32.xlu1 %v2460_v21, %s3532_s14 }
 0x291   :  { %v2415_v48 = vpop.permute.xlu0 %2414  ;;  %v2413_v7 = vpop.permute.xlu1 %2412 }
 0x292   :  { %v2463_v0 = vadd.f32 %v2415_v48, %v6004_v12  ;;  %v2462_v5 = vadd.f32 %v2413_v7, %v6007_v43  ;;  %v7386_v7 = vld [vmem:[#allocation91_spill] sm:$0xff] }
 0x294   :  { %2528 = vrot.lane.b32.xlu0 %v2463_v0, %s3532_s14  ;;  %2526 = vrot.lane.b32.xlu1 %v2462_v5, %s3532_s14  ;;  %v7387_v0 = vld [vmem:[#allocation103_spill] sm:$0xff] }
 0x295   :  { %v2419_v20 = vpop.permute.xlu0 %2418  ;;  %v2417_v10 = vpop.permute.xlu1 %2416 }
 0x296   :  { %v2465_v1 = vadd.f32 %v2419_v20, %v6014_v24  ;;  %v2464_v42 = vadd.f32 %v2417_v10, %v6017_v51  ;;  %v7380_v24 = vld [vmem:[#allocation125_spill] sm:$0xff]  ;;  %v7381_v51 = vld [vmem:[#allocation126_spill] sm:$0xff] }
 0x299   :  { %v2423_v49 = vpop.permute.xlu0 %2422  ;;  %v2421_v9 = vpop.permute.xlu1 %2420 }
 0x29a   :  { %v2467_v26 = vadd.f32 %v2423_v49, %v6024_v55  ;;  %v2466_v2 = vadd.f32 %v2421_v9, %v6027_v34 }
 0x29d   :  { %v2427_v45 = vpop.permute.xlu0 %2426  ;;  %v2425_v28 = vpop.permute.xlu1 %2424 }
 0x29e   :  { %v2469_v55 = vadd.f32 %v2427_v45, %v6034_v46  ;;  %v2468_v34 = vadd.f32 %v2425_v28, %v6037_v41  ;;  %v7388_v28 = vld [vmem:[#allocation19_spill] sm:$0xff] }
 0x29f   :  { %vm2765_vm4 = vcmp.gt.s32.totalorder %v7388_v28, 1 }
 0x2a1   :  { %v2431_v33 = vpop.permute.xlu0 %2430  ;;  %v2429_v17 = vpop.permute.xlu1 %2428 }
 0x2a2   :  { %v2471_v59 = vadd.f32 %v2431_v33, %v6044_v19  ;;  %v2470_v46 = vadd.f32 %v2429_v17, %v6047_v35  ;;  %v7389_v33 = vld [vmem:[#allocation20_spill] sm:$0xff]  ;;  %v2766_v17 = vsel %vm2765_vm4, %v7388_v28, 1 }
 0x2a3   :  { %vm2763_vm3 = vcmp.gt.s32.totalorder %v7389_v33, 1 }
 0x2a5   :  { %v2435_v8 = vpop.permute.xlu0 %2434  ;;  %v2433_v11 = vpop.permute.xlu1 %2432 }
 0x2a6   :  { %v2473_v22 = vadd.f32 %v2435_v8, %v6054_v4  ;;  %v2472_v19 = vadd.f32 %v2433_v11, %v6057_v60  ;;  %v2764_v8 = vsel %vm2763_vm3, %v7389_v33, 1 }
 0x2a9   :  { %v6183_v53 = vpop.permute.xlu0 %2588  ;;  %v6185_v36 = vpop.permute.xlu1 %2590 }
 0x2ad   :  { %v2715_v12 = vpop.permute.xlu0 %2714  ;;  %v2713_v43 = vpop.permute.xlu1 %2712 }
 0x2ae   :  { %v6188_v25 = vadd.f32 %v2715_v12, %v6068_v14  ;;  %v6191_v39 = vadd.f32 %v2713_v43, %v6071_v58  ;;  %v7378_v14 = vld [vmem:[#allocation123_spill] sm:$0xff]  ;;  %v7379_v58 = vld [vmem:[#allocation124_spill] sm:$0xff]  ;;  %v2768_v43 = vcvt.s32.f32 %v2766_v17 }
 0x2b0   :  { %2720 = vrot.lane.b32.xlu0 %v6188_v25, %s3530_s12  ;;  %2718 = vrot.lane.b32.xlu1 %v6191_v39, %s3530_s12  ;;  %3351 = vrcp.f32 %v2768_v43 }
 0x2b1   :  { %v6207_v50 = vpop.permute.xlu0 %2592  ;;  %v6217_v56 = vpop.permute.xlu1 %2594 }
 0x2b4   :  { %2532 = vrot.lane.b32.xlu0 %v2465_v1, %s3532_s14  ;;  %2530 = vrot.lane.b32.xlu1 %v2464_v42, %s3532_s14  ;;  %v2767_v1 = vcvt.s32.f32 %v2764_v8 }
 0x2b5   :  { %v6215_v15 = vpop.permute.xlu0 %2596  ;;  %v6225_v63 = vpop.permute.xlu1 %2598 }
 0x2b6   :  { %3353 = vrcp.f32 %v2767_v1 }
 0x2b8   :  { %2608 = vrot.lane.b32.xlu0 %v7378_v14, %s3530_s12  ;;  %2606 = vrot.lane.b32.xlu1 %v7379_v58, %s3530_s12 }
 0x2b9   :  { %v6223_v54 = vpop.permute.xlu0 %2600  ;;  %v6237_v6 = vpop.permute.xlu1 %2602 }
 0x2bc   :  { %2536 = vrot.lane.b32.xlu0 %v2467_v26, %s3532_s14  ;;  %2534 = vrot.lane.b32.xlu1 %v2466_v2, %s3532_s14 }
 0x2bd   :  { %v6235_v41 = vpop.permute.xlu0 %2604 }
 0x2c0   :  { %2612 = vrot.lane.b32.xlu0 %v7380_v24, %s3530_s12  ;;  %2610 = vrot.lane.b32.xlu1 %v7381_v51, %s3530_s12  ;;  %v6268_v24 = vpop.eup %3351 }
 0x2c4   :  { %2540 = vrot.lane.b32.xlu0 %v2469_v55, %s3532_s14  ;;  %2538 = vrot.lane.b32.xlu1 %v2468_v34, %s3532_s14  ;;  %v6271_v55 = vpop.eup %3353 }
 0x2c8   :  { %2616 = vrot.lane.b32.xlu0 %v7382_v30, %s3530_s12  ;;  %2614 = vrot.lane.b32.xlu1 %v7383_v57, %s3530_s12 }
 0x2cc   :  { %2544 = vrot.lane.b32.xlu0 %v2471_v59, %s3532_s14  ;;  %2542 = vrot.lane.b32.xlu1 %v2470_v46, %s3532_s14 }
 0x2d0   :  { %2620 = vrot.lane.b32.xlu0 %v7384_v23, %s3530_s12  ;;  %2618 = vrot.lane.b32.xlu1 %v7385_v18, %s3530_s12 }
 0x2d2   :  { %v2477_v62 = vpop.permute.xlu0 %2476  ;;  %v2475_v35 = vpop.permute.xlu1 %2474 }
 0x2d3   :  { %v2627_v2 = vadd.f32 %v6073_v16, %v2477_v62  ;;  %v2626_v51 = vadd.f32 %v5847_v52, %v2475_v35 }
 0x2d4   :  { %2548 = vrot.lane.b32.xlu0 %v2473_v22, %s3532_s14  ;;  %2546 = vrot.lane.b32.xlu1 %v2472_v19, %s3532_s14 }
 0x2d5   :  { %v6279_v59 = vmul.f32 %v6268_v24, %v2627_v2  ;;  %v6283_v23 = vmul.f32 %v6271_v55, %v2626_v51 }
 0x2d6   :  { %v2481_v21 = vpop.permute.xlu0 %2480  ;;  %v2479_v48 = vpop.permute.xlu1 %2478 }
 0x2d7   :  { %v2629_v34 = vadd.f32 %v6081_v37, %v2481_v21  ;;  %v2628_v46 = vadd.f32 %v6075_v31, %v2479_v48  ;;  %v2848_v37 = vadd.f32 1e-06, %v6279_v59  ;;  %v2847_v62 = vadd.f32 1e-06, %v6283_v23 }
 0x2d8   :  { %2624 = vrot.lane.b32.xlu0 %v7386_v7, %s3530_s12  ;;  %2622 = vrot.lane.b32.xlu1 %v7387_v0, %s3530_s12 }
 0x2d9   :  { %v6287_v52 = vmul.f32 %v6268_v24, %v2629_v34  ;;  %v6292_v22 = vmul.f32 %v6271_v55, %v2628_v46  ;;  %3355 = vlog2.f32 %v2848_v37 }
 0x2da   :  { %v2485_v5 = vpop.permute.xlu0 %2484  ;;  %v2483_v20 = vpop.permute.xlu1 %2482  ;;  %3357 = vlog2.f32 %v2847_v62 }
 0x2db   :  { %v2631_v16 = vadd.f32 %v6089_v38, %v2485_v5  ;;  %v2630_v18 = vadd.f32 %v6083_v13, %v2483_v20  ;;  %v2850_v13 = vadd.f32 1e-06, %v6287_v52 }
 0x2dd   :  { %v6297_v31 = vmul.f32 %v6268_v24, %v2631_v16  ;;  %v6306_v48 = vmul.f32 %v6271_v55, %v2630_v18  ;;  %3359 = vlog2.f32 %v2850_v13  ;;  %v2809_v13 = vsub.f32 0.0, %v6283_v23 }
 0x2de   :  { %v2489_v10 = vpop.permute.xlu0 %2488  ;;  %v2487_v4 = vpop.permute.xlu1 %2486 }
 0x2df   :  { %v2633_v19 = vadd.f32 %v6097_v44, %v2489_v10  ;;  %v2632_v35 = vadd.f32 %v6091_v47, %v2487_v4  ;;  %v2849_v44 = vadd.f32 1e-06, %v6292_v22  ;;  %v2852_v47 = vadd.f32 1e-06, %v6297_v31 }
 0x2e0   :  { %v2851_v10 = vadd.f32 1e-06, %v6306_v48  ;;  %v2813_v23 = vsub.f32 0.0, %v6306_v48 }
 0x2e1   :  { %v6311_v0 = vmul.f32 %v6268_v24, %v2633_v19  ;;  %v6316_v20 = vmul.f32 %v6271_v55, %v2632_v35  ;;  %3361 = vlog2.f32 %v2849_v44  ;;  %v2810_v19 = vsub.f32 0.0, %v6279_v59 }
 0x2e2   :  { %v2493_v49 = vpop.permute.xlu0 %2492  ;;  %v2491_v60 = vpop.permute.xlu1 %2490  ;;  %3363 = vlog2.f32 %v2852_v47  ;;  %v2812_v47 = vsub.f32 0.0, %v6287_v52 }
 0x2e3   :  { %v2635_v7 = vadd.f32 %v6105_v27, %v2493_v49  ;;  %v2634_v5 = vadd.f32 %v6099_v3, %v2491_v60  ;;  %v2854_v28 = vadd.f32 1e-06, %v6311_v0  ;;  %v2853_v33 = vadd.f32 1e-06, %v6316_v20 }
 0x2e4   :  { %3365 = vlog2.f32 %v2851_v10  ;;  %v2815_v52 = vsub.f32 0.0, %v6316_v20 }
 0x2e5   :  { %v6320_v4 = vmul.f32 %v6268_v24, %v2635_v7  ;;  %v6328_v3 = vmul.f32 %v6271_v55, %v2634_v5  ;;  %3367 = vlog2.f32 %v2854_v28 }
 0x2e6   :  { %v2497_v9 = vpop.permute.xlu0 %2496  ;;  %v2495_v45 = vpop.permute.xlu1 %2494  ;;  %3369 = vlog2.f32 %v2853_v33 }
 0x2e7   :  { %v2637_v60 = vadd.f32 %v6111_v32, %v2497_v9  ;;  %v2636_v17 = vadd.f32 %v6107_v40, %v2495_v45  ;;  %v2856_v8 = vadd.f32 1e-06, %v6320_v4  ;;  %v2855_v43 = vadd.f32 1e-06, %v6328_v3  ;;  %v3356_v9 = vpop.eup %3355 }
 0x2e8   :  { %v3358_v34 = vpop.eup %3357  ;;  %v2888_v62 = vmul.f32 0.6931472, %v3356_v9 }
 0x2e9   :  { %v6336_v1 = vmul.f32 %v6268_v24, %v2637_v60  ;;  %v6339_v2 = vmul.f32 %v6271_v55, %v2636_v17  ;;  %3371 = vlog2.f32 %v2856_v8  ;;  %v3360_v45 = vpop.eup %3359  ;;  %v2886_v7 = vmul.f32 0.6931472, %v3358_v34  ;;  %v7390_v34 = vld [vmem:[#allocation65_spill] sm:$0xff] }
 0x2ea   :  { %v6255_v11 = vpop.permute.xlu0 %2500  ;;  %v6257_v12 = vpop.permute.xlu1 %2498  ;;  %3373 = vlog2.f32 %v2855_v43  ;;  %v2892_v44 = vmul.f32 0.6931472, %v3360_v45  ;;  %v2962_v33 = vmul.f32 %v2888_v62, %v2810_v19  ;;  %v2816_v8 = vsub.f32 0.0, %v6311_v0 }
 0x2eb   :  { %v2639_v40 = vadd.f32 %v6115_v61, %v6255_v11  ;;  %v2858_v46 = vadd.f32 1e-06, %v6336_v1  ;;  %v2857_v16 = vadd.f32 1e-06, %v6339_v2  ;;  %v2638_v18 = vadd.f32 %v6113_v29, %v6257_v12  ;;  %v3362_v37 = vpop.eup %3361 }
 0x2ec   :  { %v3364_v35 = vpop.eup %3363  ;;  %v2811_v29 = vsub.f32 0.0, %v6292_v22  ;;  %v2814_v12 = vsub.f32 0.0, %v6297_v31  ;;  %v2890_v10 = vmul.f32 0.6931472, %v3362_v37  ;;  %v2961_v22 = vmul.f32 %v2886_v7, %v2809_v13 }
 0x2ed   :  { %v6354_v61 = vmul.f32 %v6268_v24, %v2639_v40  ;;  %3375 = vlog2.f32 %v2858_v46  ;;  %v6365_v28 = vmul.f32 %v6271_v55, %v2638_v18  ;;  %v2896_v17 = vmul.f32 0.6931472, %v3364_v35 }
 0x2ee   :  { %v6259_v42 = vpop.permute.xlu0 %2504  ;;  %v6261_v14 = vpop.permute.xlu1 %2502  ;;  %3377 = vlog2.f32 %v2857_v16  ;;  %v2964_v9 = vmul.f32 %v2892_v44, %v2812_v47  ;;  %v7391_v16 = vld [vmem:[#allocation31_spill] sm:$0xff]  ;;  %v2963_v20 = vmul.f32 %v2890_v10, %v2811_v29  ;;  %v2818_v35 = vsub.f32 0.0, %v6320_v4 }
 0x2ef   :  { %v3366_v59 = vpop.eup %3365  ;;  %v2860_v31 = vadd.f32 1e-06, %v6354_v61  ;;  %v2641_v40 = vadd.f32 %v7390_v34, %v6259_v42  ;;  %v2640_v18 = vadd.f32 %v7391_v16, %v6261_v14  ;;  %v2859_v13 = vadd.f32 1e-06, %v6365_v28  ;;  %v7393_v14 = vld [vmem:[#allocation33_spill] sm:$0xff] }
 0x2f0   :  { %v3368_v60 = vpop.eup %3367  ;;  %v2894_v46 = vmul.f32 0.6931472, %v3366_v59  ;;  %v2966_v44 = vmul.f32 %v2896_v17, %v2814_v12  ;;  %v2817_v47 = vsub.f32 0.0, %v6328_v3  ;;  %v7392_v59 = vld [vmem:[#allocation66_spill] sm:$0xff]  ;;  %v3017_v3 = vadd.f32 %v2964_v9, %v2962_v33  ;;  %v7394_v16 = vld [vmem:[#allocation29_spill] sm:$0xff] }
 0x2f1   :  { %v3370_v43 = vpop.eup %3369  ;;  %v2900_v62 = vmul.f32 0.6931472, %v3368_v60  ;;  %3379 = vlog2.f32 %v2860_v31  ;;  %v6394_v60 = vmul.f32 %v6271_v55, %v2640_v18  ;;  %v2999_v17 = vadd.f32 %v2963_v20, %v2961_v22 }
 0x2f2   :  { %v6263_v58 = vpop.permute.xlu0 %2508  ;;  %v6265_v26 = vpop.permute.xlu1 %2506  ;;  %v2898_v42 = vmul.f32 0.6931472, %v3370_v43  ;;  %v2965_v10 = vmul.f32 %v2894_v46, %v2813_v23  ;;  %3381 = vlog2.f32 %v2859_v13  ;;  %v7395_v23 = vld [vmem:[#allocation64_spill] sm:$0xff]  ;;  %v2822_v22 = vsub.f32 0.0, %v6354_v61  ;;  %v7396_v13 = vld [vmem:[#allocation35_spill] sm:$0xff] }
 0x2f3   :  { %v3372_v19 = vpop.eup %3371  ;;  %v2643_v34 = vadd.f32 %v7392_v59, %v6263_v58  ;;  %v2642_v4 = vadd.f32 %v7393_v14, %v6265_v26  ;;  %v2968_v43 = vmul.f32 %v2900_v62, %v2816_v8 }
 0x2f4   :  { %v3374_v7 = vpop.eup %3373  ;;  %v2904_v58 = vmul.f32 0.6931472, %v3372_v19  ;;  %v3000_v18 = vadd.f32 %v2999_v17, %v2965_v10  ;;  %v2861_v19 = vadd.f32 1e-06, %v6394_v60 }
 0x2f5   :  { %v6398_v26 = vmul.f32 %v6268_v24, %v2643_v34  ;;  %v6407_v9 = vmul.f32 %v6271_v55, %v2642_v4 }
 0x2f6   :  { %v6274_v30 = vpop.permute.xlu0 %2512  ;;  %v6276_v57 = vpop.permute.xlu1 %2510 }
 0x2f7   :  { %v3376_v31 = vpop.eup %3375  ;;  %v2826_v17 = vsub.f32 0.0, %v6398_v26 }
 0x2f8   :  { %v3378_v33 = vpop.eup %3377 }
 0x2f9   :  { %v2906_v59 = vmul.f32 0.6931472, %v3378_v33 }
 0x2fa   :  { %v6300_v38 = vpop.permute.xlu0 %2516  ;;  %v6302_v21 = vpop.permute.xlu1 %2514 }
 0x2fb   :  { %v2647_v34 = vadd.f32 %v6207_v50, %v6300_v38  ;;  %v3380_v10 = vpop.eup %3379 }
 0x2fc   :  { %v2912_v33 = vmul.f32 0.6931472, %v3380_v10 }
 0x2fe   :  { %v6322_v27 = vpop.permute.xlu0 %2520  ;;  %v6324_v49 = vpop.permute.xlu1 %2518 }
 0x302   :  { %v6341_v51 = vpop.permute.xlu0 %2524  ;;  %v6343_v32 = vpop.permute.xlu1 %2522 }
 0x306   :  { %v6356_v11 = vpop.permute.xlu0 %2528  ;;  %v6358_v5 = vpop.permute.xlu1 %2526 }
 0x322   :  { %v2721_v48 = vpop.permute.xlu0 %2720  ;;  %v2719_v45 = vpop.permute.xlu1 %2718 }
 0x323   :  { %v2723_v37 = vadd.f32 %v2721_v48, %v6188_v25  ;;  %v2722_v0 = vadd.f32 %v2719_v45, %v6191_v39  ;;  %v2820_v25 = vsub.f32 0.0, %v6336_v1  ;;  %v6385_v39 = vmul.f32 %v6268_v24, %v2641_v40 }
 0x324   :  { %v2902_v1 = vmul.f32 0.6931472, %v3374_v7  ;;  %v3018_v40 = vadd.f32 %v3017_v3, %v2966_v44  ;;  %v2967_v48 = vmul.f32 %v2898_v42, %v2815_v52  ;;  %v2819_v45 = vsub.f32 0.0, %v6339_v2 }
 0x325   :  { %2726 = vrot.lane.b32.xlu0 %v2723_v37, %s3532_s14  ;;  %2724 = vrot.lane.b32.xlu1 %v2722_v0, %s3532_s14  ;;  %v2862_v8 = vadd.f32 1e-06, %v6385_v39  ;;  %v2645_v2 = vadd.f32 %v6183_v53, %v6274_v30  ;;  %v2970_v37 = vmul.f32 %v2904_v58, %v2818_v35  ;;  %v2821_v0 = vsub.f32 0.0, %v6365_v28 }
 0x326   :  { %v6389_v29 = vpop.permute.xlu0 %2532  ;;  %v6391_v12 = vpop.permute.xlu1 %2530  ;;  %v3019_v20 = vadd.f32 %v3018_v40, %v2968_v43  ;;  %v2969_v62 = vmul.f32 %v2902_v1, %v2817_v47  ;;  %v2824_v61 = vsub.f32 0.0, %v6385_v39  ;;  %v2644_v7 = vadd.f32 %v7396_v13, %v6276_v57 }
 0x327   :  { %v3001_v44 = vadd.f32 %v3000_v18, %v2967_v48  ;;  %v2908_v42 = vmul.f32 0.6931472, %v3376_v31  ;;  %v2864_v53 = vadd.f32 1e-06, %v6398_v26  ;;  %3383 = vlog2.f32 %v2862_v8  ;;  %v3382_v40 = vpop.eup %3381 }
 0x328   :  { %v2863_v30 = vadd.f32 1e-06, %v6407_v9  ;;  %v6421_v35 = vmul.f32 %v6268_v24, %v2645_v2  ;;  %v3020_v4 = vadd.f32 %v3019_v20, %v2970_v37  ;;  %v2823_v3 = vsub.f32 0.0, %v6394_v60 }
 0x329   :  { %2730 = vrot.lane.b32.xlu0 %v7394_v16, %s3530_s12  ;;  %2728 = vrot.lane.b32.xlu1 %v7395_v23, %s3530_s12  ;;  %3385 = vlog2.f32 %v2861_v19  ;;  %v2646_v57 = vadd.f32 %v6185_v36, %v6302_v21  ;;  %v3002_v58 = vadd.f32 %v3001_v44, %v2969_v62  ;;  %v6430_v43 = vmul.f32 %v6271_v55, %v2644_v7 }
 0x32a   :  { %v2609_v52 = vpop.permute.xlu0 %2608  ;;  %v6411_v46 = vpop.permute.xlu1 %2606  ;;  %v2649_v1 = vadd.f32 %v6215_v15, %v6322_v27  ;;  %v2972_v50 = vmul.f32 %v2908_v42, %v2820_v25  ;;  %v2971_v38 = vmul.f32 %v2906_v59, %v2819_v45  ;;  %3387 = vlog2.f32 %v2864_v53 }
 0x32b   :  { %v2825_v31 = vsub.f32 0.0, %v6407_v9  ;;  %3389 = vlog2.f32 %v2863_v30  ;;  %v2866_v48 = vadd.f32 1e-06, %v6421_v35  ;;  %v6437_v36 = vmul.f32 %v6268_v24, %v2647_v34 }
 0x32c   :  { %v2648_v21 = vadd.f32 %v6217_v56, %v6324_v49  ;;  %v2828_v15 = vsub.f32 0.0, %v6421_v35  ;;  %v6443_v27 = vmul.f32 %v6271_v55, %v2646_v57  ;;  %v2651_v25 = vadd.f32 %v6223_v54, %v6341_v51 }
 0x32d   :  { %v2827_v45 = vsub.f32 0.0, %v6430_v43  ;;  %v2865_v8 = vadd.f32 1e-06, %v6430_v43  ;;  %v6450_v2 = vmul.f32 %v6268_v24, %v2649_v1  ;;  %v2650_v56 = vadd.f32 %v6225_v63, %v6343_v32 }
 0x32e   :  { %v2537_v47 = vpop.permute.xlu0 %2536  ;;  %v2535_v14 = vpop.permute.xlu1 %2534  ;;  %v3021_v49 = vadd.f32 %v3020_v4, %v2972_v50  ;;  %v3003_v18 = vadd.f32 %v3002_v58, %v2971_v38  ;;  %v2910_v37 = vmul.f32 0.6931472, %v3382_v40  ;;  %v2653_v19 = vadd.f32 %v6235_v41, %v6356_v11 }
 0x32f   :  { %3391 = vlog2.f32 %v2866_v48  ;;  %v2868_v20 = vadd.f32 1e-06, %v6437_v36  ;;  %v6458_v54 = vmul.f32 %v6271_v55, %v2648_v21  ;;  %v2652_v51 = vadd.f32 %v6237_v6, %v6358_v5 }
 0x330   :  { %v2974_v7 = vmul.f32 %v2912_v33, %v2822_v22  ;;  %v2867_v63 = vadd.f32 1e-06, %v6443_v27  ;;  %v6464_v32 = vmul.f32 %v6268_v24, %v2651_v25  ;;  %v2655_v44 = vadd.f32 %v2609_v52, %v6389_v29 }
 0x331   :  { %v3384_v41 = vpop.eup %3383  ;;  %3393 = vlog2.f32 %v2865_v8  ;;  %v2870_v11 = vadd.f32 1e-06, %v6450_v2  ;;  %v6469_v42 = vmul.f32 %v6271_v55, %v2650_v56  ;;  %v2654_v6 = vadd.f32 %v6411_v46, %v6391_v12 }
 0x332   :  { %v2613_v16 = vpop.permute.xlu0 %2612  ;;  %v2611_v23 = vpop.permute.xlu1 %2610  ;;  %v2973_v22 = vmul.f32 %v2910_v37, %v2821_v0  ;;  %v2830_v59 = vsub.f32 0.0, %v6437_v36  ;;  %v6477_v53 = vmul.f32 %v6268_v24, %v2653_v19  ;;  %3395 = vlog2.f32 %v2868_v20 }
 0x333   :  { %v3386_v5 = vpop.eup %3385  ;;  %v2657_v29 = vadd.f32 %v2613_v16, %v2537_v47  ;;  %v2869_v52 = vadd.f32 1e-06, %v6458_v54  ;;  %v6481_v30 = vmul.f32 %v6271_v55, %v2652_v51  ;;  %v2656_v34 = vadd.f32 %v2611_v23, %v2535_v14 }
 0x334   :  { %v3388_v12 = vpop.eup %3387  ;;  %3397 = vlog2.f32 %v2867_v63  ;;  %v2872_v28 = vadd.f32 1e-06, %v6464_v32  ;;  %v6485_v46 = vmul.f32 %v6268_v24, %v2655_v44  ;;  %v2871_v47 = vadd.f32 1e-06, %v6469_v42 }
 0x335   :  { %v3390_v10 = vpop.eup %3389  ;;  %3399 = vlog2.f32 %v2870_v11  ;;  %v6489_v58 = vmul.f32 %v6271_v55, %v2654_v6  ;;  %v2916_v50 = vmul.f32 0.6931472, %v3384_v41  ;;  %v2914_v14 = vmul.f32 0.6931472, %v3386_v5 }
 0x336   :  { %v2541_v62 = vpop.permute.xlu0 %2540  ;;  %v2539_v13 = vpop.permute.xlu1 %2538  ;;  %v2874_v38 = vadd.f32 1e-06, %v6477_v53  ;;  %v6493_v40 = vmul.f32 %v6268_v24, %v2657_v29  ;;  %v2829_v48 = vsub.f32 0.0, %v6443_v27  ;;  %3401 = vlog2.f32 %v2869_v52 }
 0x337   :  { %v2873_v21 = vadd.f32 1e-06, %v6481_v30  ;;  %v6498_v16 = vmul.f32 %v6271_v55, %v2656_v34  ;;  %v3022_v25 = vadd.f32 %v3021_v49, %v2974_v7  ;;  %3403 = vlog2.f32 %v2872_v28 }
 0x338   :  { %v2876_v8 = vadd.f32 1e-06, %v6485_v46  ;;  %v3004_v19 = vadd.f32 %v3003_v18, %v2973_v22  ;;  %3405 = vlog2.f32 %v2871_v47  ;;  %v2875_v20 = vadd.f32 1e-06, %v6489_v58 }
 0x339   :  { %v3392_v37 = vpop.eup %3391  ;;  %v2975_v49 = vmul.f32 %v2914_v14, %v2823_v3  ;;  %3407 = vlog2.f32 %v2874_v38  ;;  %v2920_v63 = vmul.f32 0.6931472, %v3388_v12  ;;  %v2918_v44 = vmul.f32 0.6931472, %v3390_v10 }
 0x33a   :  { %v2617_v4 = vpop.permute.xlu0 %2616  ;;  %v2615_v57 = vpop.permute.xlu1 %2614  ;;  %3409 = vlog2.f32 %v2873_v21  ;;  %v2877_v18 = vadd.f32 1e-06, %v6498_v16  ;;  %v2924_v22 = vmul.f32 0.6931472, %v3392_v37  ;;  %v2832_v60 = vsub.f32 0.0, %v6450_v2 }
 0x33b   :  { %v2659_v0 = vadd.f32 %v2617_v4, %v2541_v62  ;;  %v2658_v1 = vadd.f32 %v2615_v57, %v2539_v13  ;;  %v2976_v62 = vmul.f32 %v2916_v50, %v2824_v61  ;;  %v2878_v13 = vadd.f32 1e-06, %v6493_v40  ;;  %v3394_v7 = vpop.eup %3393 }
 0x33c   :  { %3411 = vlog2.f32 %v2876_v8  ;;  %v3396_v61 = vpop.eup %3395  ;;  %v2978_v12 = vmul.f32 %v2920_v63, %v2826_v17  ;;  %v2922_v28 = vmul.f32 0.6931472, %v3394_v7  ;;  %v2977_v47 = vmul.f32 %v2918_v44, %v2825_v31 }
 0x33d   :  { %v6502_v56 = vmul.f32 %v6268_v24, %v2659_v0  ;;  %v6506_v51 = vmul.f32 %v6271_v55, %v2658_v1  ;;  %3413 = vlog2.f32 %v2875_v20  ;;  %v3023_v52 = vadd.f32 %v3022_v25, %v2976_v62 }
 0x33e   :  { %v2545_v23 = vpop.permute.xlu0 %2544  ;;  %v2543_v33 = vpop.permute.xlu1 %2542  ;;  %3415 = vlog2.f32 %v2878_v13  ;;  %v2831_v0 = vsub.f32 0.0, %v6458_v54  ;;  %v2928_v1 = vmul.f32 0.6931472, %v3396_v61  ;;  %v2980_v38 = vmul.f32 %v2924_v22, %v2828_v15 }
 0x33f   :  { %v2880_v6 = vadd.f32 1e-06, %v6502_v56  ;;  %v2879_v3 = vadd.f32 1e-06, %v6506_v51  ;;  %v3398_v29 = vpop.eup %3397  ;;  %3417 = vlog2.f32 %v2877_v18  ;;  %v3005_v54 = vadd.f32 %v3004_v19, %v2975_v49 }
 0x340   :  { %v3400_v57 = vpop.eup %3399  ;;  %v2926_v21 = vmul.f32 0.6931472, %v3398_v29  ;;  %v3024_v31 = vadd.f32 %v3023_v52, %v2978_v12  ;;  %v2979_v25 = vmul.f32 %v2922_v28, %v2827_v45  ;;  %v2833_v8 = vsub.f32 0.0, %v6469_v42 }
 0x341   :  { %3419 = vlog2.f32 %v2880_v6  ;;  %v3402_v14 = vpop.eup %3401  ;;  %v2982_v20 = vmul.f32 %v2928_v1, %v2830_v59 }
 0x342   :  { %v2621_v41 = vpop.permute.xlu0 %2620  ;;  %v2619_v11 = vpop.permute.xlu1 %2618  ;;  %3421 = vlog2.f32 %v2879_v3  ;;  %v2930_v62 = vmul.f32 0.6931472, %v3402_v14  ;;  %v3025_v7 = vadd.f32 %v3024_v31, %v2980_v38  ;;  %v2981_v63 = vmul.f32 %v2926_v21, %v2829_v48 }
 0x343   :  { %v2661_v5 = vadd.f32 %v2621_v41, %v2545_v23  ;;  %v2660_v39 = vadd.f32 %v2619_v11, %v2543_v33  ;;  %v3404_v17 = vpop.eup %3403  ;;  %v2932_v23 = vmul.f32 0.6931472, %v3400_v57  ;;  %v2834_v33 = vsub.f32 0.0, %v6464_v32 }
 0x344   :  { %v3406_v9 = vpop.eup %3405  ;;  %v3006_v32 = vadd.f32 %v3005_v54, %v2977_v47  ;;  %v2936_v43 = vmul.f32 0.6931472, %v3404_v17  ;;  %v2836_v11 = vsub.f32 0.0, %v6477_v53  ;;  %v3026_v27 = vadd.f32 %v3025_v7, %v2982_v20 }
 0x345   :  { %v6518_v34 = vmul.f32 %v6268_v24, %v2661_v5  ;;  %v6521_v4 = vmul.f32 %v6271_v55, %v2660_v39  ;;  %v3408_v37 = vpop.eup %3407  ;;  %v2984_v44 = vmul.f32 %v2932_v23, %v2832_v60  ;;  %v2934_v42 = vmul.f32 0.6931472, %v3406_v9 }
 0x346   :  { %v2549_v2 = vpop.permute.xlu0 %2548  ;;  %v2547_v10 = vpop.permute.xlu1 %2546  ;;  %v3007_v59 = vadd.f32 %v3006_v32, %v2979_v25  ;;  %v2940_v6 = vmul.f32 0.6931472, %v3408_v37  ;;  %v2835_v5 = vsub.f32 0.0, %v6481_v30  ;;  %v2983_v48 = vmul.f32 %v2930_v62, %v2831_v0 }
 0x347   :  { %v2882_v50 = vadd.f32 1e-06, %v6518_v34  ;;  %v2881_v26 = vadd.f32 1e-06, %v6521_v4  ;;  %v3410_v13 = vpop.eup %3409  ;;  %v2986_v29 = vmul.f32 %v2936_v43, %v2834_v33  ;;  %v3027_v28 = vadd.f32 %v3026_v27, %v2984_v44 }
 0x348   :  { %v3412_v45 = vpop.eup %3411  ;;  %v2938_v61 = vmul.f32 0.6931472, %v3410_v13  ;;  %v3008_v3 = vadd.f32 %v3007_v59, %v2981_v63  ;;  %v2988_v47 = vmul.f32 %v2940_v6, %v2836_v11  ;;  %v2838_v30 = vsub.f32 0.0, %v6485_v46 }
 0x349   :  { %3423 = vlog2.f32 %v2882_v50  ;;  %v3414_v36 = vpop.eup %3413  ;;  %v2944_v52 = vmul.f32 0.6931472, %v3412_v45  ;;  %v2837_v38 = vsub.f32 0.0, %v6489_v58  ;;  %v3028_v17 = vadd.f32 %v3027_v28, %v2986_v29 }
 0x34a   :  { %3425 = vlog2.f32 %v2881_v26  ;;  %v2625_v35 = vpop.permute.xlu0 %2624  ;;  %v2623_v15 = vpop.permute.xlu1 %2622  ;;  %v3009_v50 = vadd.f32 %v3008_v3, %v2983_v48  ;;  %v2987_v14 = vmul.f32 %v2938_v61, %v2835_v5  ;;  %v2840_v23 = vsub.f32 0.0, %v6493_v40 }
 0x34b   :  { %v2663_v19 = vadd.f32 %v2625_v35, %v2549_v2  ;;  %v2662_v49 = vadd.f32 %v2623_v15, %v2547_v10  ;;  %v3416_v39 = vpop.eup %3415  ;;  %v2985_v2 = vmul.f32 %v2934_v42, %v2833_v8  ;;  %v2942_v10 = vmul.f32 0.6931472, %v3414_v36 }
 0x34c   :  { %v3418_v60 = vpop.eup %3417  ;;  %v2948_v1 = vmul.f32 0.6931472, %v3416_v39  ;;  %v2990_v54 = vmul.f32 %v2944_v52, %v2838_v30  ;;  %v2839_v25 = vsub.f32 0.0, %v6498_v16  ;;  %v3029_v46 = vadd.f32 %v3028_v17, %v2988_v47 }
 0x34d   :  { %v6541_v18 = vmul.f32 %v6268_v24, %v2663_v19  ;;  %v6544_v41 = vmul.f32 %v6271_v55, %v2662_v49  ;;  %v3420_v12 = vpop.eup %3419  ;;  %v2946_v21 = vmul.f32 0.6931472, %v3418_v60  ;;  %v3010_v9 = vadd.f32 %v3009_v50, %v2985_v2 }
 0x34e   :  { %v3422_v53 = vpop.eup %3421  ;;  %v2952_v33 = vmul.f32 0.6931472, %v3420_v12  ;;  %v2989_v31 = vmul.f32 %v2942_v10, %v2837_v38  ;;  %v2992_v35 = vmul.f32 %v2948_v1, %v2840_v23  ;;  %v2842_v15 = vsub.f32 0.0, %v6502_v56 }
 0x34f   :  { %v2884_v22 = vadd.f32 1e-06, %v6541_v18  ;;  %v2883_v57 = vadd.f32 1e-06, %v6544_v41  ;;  %v2950_v8 = vmul.f32 0.6931472, %v3422_v53  ;;  %v3011_v20 = vadd.f32 %v3010_v9, %v2987_v14 }
 0x350   :  { %v2991_v62 = vmul.f32 %v2946_v21, %v2839_v25  ;;  %v2841_v58 = vsub.f32 0.0, %v6506_v51  ;;  %v3030_v49 = vadd.f32 %v3029_v46, %v2990_v54  ;;  %v2994_v13 = vmul.f32 %v2952_v33, %v2842_v15 }
 0x351   :  { %3427 = vlog2.f32 %v2884_v22  ;;  %v2844_v40 = vsub.f32 0.0, %v6518_v34  ;;  %v3012_v32 = vadd.f32 %v3011_v20, %v2989_v31  ;;  %v2843_v63 = vsub.f32 0.0, %v6521_v4 }
 0x352   :  { %3429 = vlog2.f32 %v2883_v57  ;;  %v2993_v7 = vmul.f32 %v2950_v8, %v2841_v58  ;;  %v3031_v16 = vadd.f32 %v3030_v49, %v2992_v35  ;;  %v2846_v59 = vsub.f32 0.0, %v6541_v18 }
 0x353   :  { %v3424_v0 = vpop.eup %3423  ;;  %v3013_v44 = vadd.f32 %v3012_v32, %v2991_v62  ;;  %v2845_v6 = vsub.f32 0.0, %v6544_v41 }
 0x354   :  { %v3426_v26 = vpop.eup %3425  ;;  %v2956_v37 = vmul.f32 0.6931472, %v3424_v0  ;;  %v3032_v36 = vadd.f32 %v3031_v16, %v2994_v13 }
 0x355   :  { %v2954_v19 = vmul.f32 0.6931472, %v3426_v26  ;;  %v3014_v51 = vadd.f32 %v3013_v44, %v2993_v7 }
 0x356   :  { %v2996_v43 = vmul.f32 %v2956_v37, %v2844_v40 }
 0x357   :  { %v2995_v42 = vmul.f32 %v2954_v19, %v2843_v63 }
 0x358   :  { %v3033_v39 = vadd.f32 %v3032_v36, %v2996_v43 }
 0x359   :  { %v3015_v27 = vadd.f32 %v3014_v51, %v2995_v42 }
 0x35b   :  { %v3428_v45 = vpop.eup %3427 }
 0x35c   :  { %v3430_v56 = vpop.eup %3429  ;;  %v2960_v11 = vmul.f32 0.6931472, %v3428_v45 }
 0x35d   :  { %v2958_v5 = vmul.f32 0.6931472, %v3430_v56 }
 0x35e   :  { %v2998_v34 = vmul.f32 %v2960_v11, %v2846_v59 }
 0x35f   :  { %v2997_v48 = vmul.f32 %v2958_v5, %v2845_v6 }
 0x360   :  { %v3034_v61 = vadd.f32 %v3033_v39, %v2998_v34 }
 0x361   :  { %v3016_v4 = vadd.f32 %v3015_v27, %v2997_v48 }
 0x362   :  { %v3036_v22 = vmul.f32 0.33962327, %v3034_v61 }
 0x363   :  { %v3035_v60 = vmul.f32 0.33962327, %v3016_v4 }
 0x364   :  { %3040 = vst [vmem:[#allocation6 + $0x8] sm:$0xff] %v3036_v22 }
 0x365   :  { %3039 = vst [vmem:[#allocation6] sm:$0xff] %v3035_v60 }
 0x366   :  { %3464 = shalt.err (!%p3461_p12)
}
 0x367   :  { %s3465_s20 = scalar_lea.hbm %s6617_s3, 256 }
 0x368   :  { %p3466_p13 = scmp.ne.s32.totalorder %s6617_s3, %s3465_s20  ;;  %p3469_p0 = scmp.lt.u32.totalorder %s3465_s20, %s6617_s3 }
 0x36a   :  { %p3471_p1 = pnand %p3469_p0, %p3466_p13 }
 0x36c   :  { %3474 = shalt.err (!%p3471_p1)
}
 0x36d   :  { %s3534_s25 = smov 128   ;;  %s3535_s26 = smov 8  }
 0x36e   :  { %3078 = dma.vmem_to_hbm [thread:$0]  %s3073_s16, 256, %s6617_s3, [#allocation7], %s3534_s25, %s3534_s25, %s3535_s26  }
 0x36f   :  { %s3536_s29 = smov [#allocation8]   ;;  %s3537_s5 = smov [#allocation4]  }
 0x370   :  { %s3088_s30 = sshll.u32 %s3536_s29, 4  ;;  %s3056_s0 = sshll.u32 %s3537_s5, 4  ;;  %s3089_s30 = int_to_ptr.vmem [resolvable:$true] %s3088_s30  ;;  %s6577_s0 = int_to_ptr.vmem [resolvable:$true] %s3056_s0 }
 0x371   :  { %s3475_s3 = scalar_lea.vmem %s3089_s30, 256  ;;  %p3480_p3 = scmp.lt.s32.totalorder %s3089_s30, %s3089_s30 }
 0x372   :  { %p3476_p2 = scmp.ne.s32.totalorder %s3089_s30, %s3475_s3  ;;  %p3481_p4 = scmp.lt.s32.totalorder %s3475_s3, %s3475_s3 }
 0x374   :  { %p3482_p5 = por %p3481_p4, %p3480_p3 }
 0x376   :  { %p3483_p6 = pnand %p3482_p5, %p3476_p2 }
 0x397   :  { %v2727_v18 = vpop.permute.xlu0 %2726  ;;  %v2725_v41 = vpop.permute.xlu1 %2724 }
 0x39b   :  { %v2731_v3 = vpop.permute.xlu0 %2730  ;;  %v2729_v29 = vpop.permute.xlu1 %2728 }
 0x39c   :  { %v2733_v52 = vadd.f32 %v2731_v3, %v2727_v18  ;;  %v2732_v57 = vadd.f32 %v2729_v29, %v2725_v41 }
 0x39e   :  { %v3038_v12 = vmul.f32 %v6268_v24, %v2733_v52  ;;  %v3037_v28 = vmul.f32 %v6271_v55, %v2732_v57 }
 0x3a0   :  { %3042 = vst [vmem:[#allocation8 + $0x8] sm:$0xff] %v3038_v12  ;;  %v3044_v2 = vmul.f32 %v3038_v12, %v3036_v22  ;;  %3041 = vst [vmem:[#allocation8] sm:$0xff] %v3037_v28  ;;  %v3043_v10 = vmul.f32 %v3037_v28, %v3035_v60 }
 0x3a1   :  { %3486 = shalt.err (!%p3483_p6)
}
 0x3a2   :  { %s3487_s8 = scalar_lea.hbm %s6618_s4, 256 }
 0x3a3   :  { %p3488_p7 = scmp.ne.s32.totalorder %s6618_s4, %s3487_s8  ;;  %p3491_p8 = scmp.lt.u32.totalorder %s3487_s8, %s6618_s4 }
 0x3a5   :  { %p3493_p9 = pnand %p3491_p8, %p3488_p7 }
 0x3a7   :  { %3496 = shalt.err (!%p3493_p9)
}
 0x3a8   :  { %3094 = dma.vmem_to_hbm [thread:$0]  %s3089_s30, 256, %s6618_s4, [#allocation7], %s3534_s25, %s3534_s25, %s3535_s26   ;;  %3046 = vst [vmem:[#allocation4 + $0x8] sm:$0xff] %v3044_v2  ;;  %3045 = vst [vmem:[#allocation4] sm:$0xff] %v3043_v10 }
 0x3a9   :  { %s3497_s14 = scalar_lea.vmem %s6577_s0, 256  ;;  %p3502_p11 = scmp.lt.s32.totalorder %s6577_s0, %s6577_s0 }
 0x3aa   :  { %p3498_p10 = scmp.ne.s32.totalorder %s6577_s0, %s3497_s14  ;;  %p3503_p12 = scmp.lt.s32.totalorder %s3497_s14, %s3497_s14 }
 0x3ac   :  { %p3504_p13 = por %p3503_p12, %p3502_p11 }
 0x3ae   :  { %p3505_p0 = pnand %p3504_p13, %p3498_p10 }
 0x3b0   :  { %3508 = shalt.err (!%p3505_p0)
}
 0x3b1   :  { %s3509_s17 = scalar_lea.hbm %s6616_s2, 256 }
 0x3b2   :  { %p3510_p1 = scmp.ne.s32.totalorder %s6616_s2, %s3509_s17  ;;  %p3513_p2 = scmp.lt.u32.totalorder %s3509_s17, %s6616_s2 }
 0x3b4   :  { %p3515_p3 = pnand %p3513_p2, %p3510_p1 }
 0x3b6   :  { %3518 = shalt.err (!%p3515_p3)
}
 0x3b7   :  { %3062 = dma.vmem_to_hbm [thread:$0]  %s6577_s0, 256, %s6616_s2, [#allocation5], %s3534_s25, %s3534_s25, %s3535_s26  }
 0x3b8   :  { %3521 = dma.done.wait [#allocation5], 256  }
 0x3b9   :  { %3522 = vsyncadd [#allocation5], 4294967040 }
 0x3ba   :  { %3523 = dma.done.wait [#allocation7], 512  }
 0x3bb   :  { %3524 = vsyncadd [#allocation7], 4294966784 }
 0x3bc   :  { %3104 = vsyncpa [#allocation5], 1 }
 0x3bd   :  { %3105 = vsyncpa [#allocation7], 1 }
 0x3be   :  { %3106 = vsyncmov [#allocation3] }
 0x3c1   :  { %s3107_s23 = vpop.sfrf %3106 }
 0x3c2   :  { %p3208_p4 = scmp.ne.s32.totalorder %s3107_s23, 0 }
 0x3c4   :  { %3111 = shalt.err (%p3208_p4)  }
 0x3c5   :  { %3113 = vsyncmov [#allocation3 + $0x1] }
 0x3c8   :  { %s3114_s24 = vpop.sfrf %3113 }
 0x3c9   :  { %p3209_p5 = scmp.ne.s32.totalorder %s3114_s24, 0 }
 0x3cb   :  { %3118 = shalt.err (%p3209_p5)  }

</bundles_post_ra>
